<compile_context>
chip_gen: v6e
topology: v6e:2x2x1
jax: 0.10.0
libtpu: 0.0.40
codegen_flags: <defaults>
</compile_context>

<pallas_src>
import jax
import jax.numpy as jnp
from jax import lax
from jax.experimental import pallas as pl
from jax.experimental.pallas import tpu as pltpu


def _write_kernel(emb_ref, dec_ref, h0_ref, c0_ref, ctx_ref,
                  w_ih_ref, b_ih_ref, w_hh_ref, b_hh_ref,
                  w_in_ref, b_in_ref, w_cx_ref, b_cx_ref,
                  v_ref, w_out_hs_ref, w_out_ht_ref, b_out_ref,
                  out_ref, ptr_ref, hfin_ref, cfin_ref):
    B, L, E = emb_ref.shape
    H = h0_ref.shape[1]

    emb = emb_ref[...]            # (B, L, E)
    ctx_in = ctx_ref[...]         # (B, L, H)
    w_ih = w_ih_ref[...]          # (E, 4H)
    b_ih = b_ih_ref[...]          # (1, 4H)
    w_hh = w_hh_ref[...]          # (H, 4H)
    b_hh = b_hh_ref[...]          # (1, 4H)
    w_in = w_in_ref[...]          # (H, H)   attention input_linear
    b_in = b_in_ref[...]          # (1, H)
    w_cx = w_cx_ref[...]          # (H, H)   attention context_linear (Conv1d k=1)
    b_cx = b_cx_ref[...]          # (1, H)
    v_row = v_ref[...].reshape(1, 1, H)       # (1, 1, H)
    w_out_hs = w_out_hs_ref[...]  # (H, H)   hidden_out, hidden_state half
    w_out_ht = w_out_ht_ref[...]  # (H, H)   hidden_out, h_t half
    b_out = b_out_ref[...]        # (1, H)

    # ---- loop-invariant precompute (hoisted out of the serial decode loop) ----
    # Conv1d(k=1) on context: per-position matmul, constant over decode steps.
    ctx_pre = (jnp.dot(ctx_in.reshape(B * L, H), w_cx,
                       preferred_element_type=jnp.float32)
               + b_cx).reshape(B, L, H)                      # (B, L, H)
    # Fused RHS for {attention read-out, next-input gather}: one MXU push per step.
    ctx_emb = jnp.concatenate([ctx_pre, emb], axis=-1)       # (B, L, H+E)
    iota_l = lax.broadcasted_iota(jnp.int32, (B, L), 1)
    neg_inf = jnp.float32(-jnp.inf)

    def body(t, carry):
        mask, h, c, dec_in, ptrs = carry

        # ----- LSTM cell (split gate matmuls: no lane concat, torch summation order) -----
        gates = ((jnp.dot(dec_in, w_ih, preferred_element_type=jnp.float32) + b_ih)
                 + (jnp.dot(h, w_hh, preferred_element_type=jnp.float32) + b_hh))   # (B, 4H)
        i_g = jax.nn.sigmoid(gates[:, 0 * H:1 * H])
        f_g = jax.nn.sigmoid(gates[:, 1 * H:2 * H])
        g_g = jnp.tanh(gates[:, 2 * H:3 * H])
        o_g = jax.nn.sigmoid(gates[:, 3 * H:4 * H])
        c_t = f_g * c + i_g * g_g
        h_t = o_g * jnp.tanh(c_t)                            # (B, H)

        # h_t half of hidden_out issued now so it overlaps the attention chain.
        ht_out = jnp.dot(h_t, w_out_ht, preferred_element_type=jnp.float32)  # (B, H)

        # ----- Attention -----
        inp = jnp.dot(h_t, w_in, preferred_element_type=jnp.float32) + b_in  # (B, H)
        act = jnp.tanh(inp[:, None, :] + ctx_pre)            # (B, L, H)
        # score: VPU multiply + XLU lane-reduce (no transpose of act)
        att = jnp.sum(act * v_row, axis=-1)                  # (B, L)
        # positions already selected (mask == 0) get -inf before softmax
        att = jnp.where(mask == 0.0, neg_inf, att)
        att_max = jnp.max(att, axis=1, keepdims=True)
        e = jnp.exp(att - att_max)
        alpha = e / jnp.sum(e, axis=1, keepdims=True)        # (B, L), exact f32

        # ----- pointer selection (torch.max first-index semantics) -----
        # masked positions have alpha == 0 exactly (exp(-inf)); the reference's
        # extra `alpha * mask` is a no-op and omitted.
        mx = jnp.max(alpha, axis=1, keepdims=True)
        idx = jnp.min(jnp.where(alpha == mx, iota_l, jnp.int32(L)),
                      axis=1, keepdims=True)                 # (B, 1) first argmax
        one_hot = (iota_l == idx).astype(jnp.float32)        # (B, L)
        new_mask = mask * (1.0 - one_hot)

        # ----- fused read-out + next-input gather (single batched MXU contraction) -----
        lhs = jnp.concatenate([alpha[:, None, :], one_hot[:, None, :]], axis=1)   # (B, 2, L)
        fused = jnp.einsum('bkl,blf->bkf', lhs, ctx_emb,
                           preferred_element_type=jnp.float32)                    # (B, 2, H+E)
        hidden_state = fused[:, 0, 0:H]                      # (B, H)  = ctx_pre^T @ alpha
        new_dec = fused[:, 1, H:H + E]                       # (B, E)  = gathered embedding

        hidden_t = jnp.tanh(jnp.dot(hidden_state, w_out_hs,
                                    preferred_element_type=jnp.float32)
                            + ht_out + b_out)                # (B, H)

        # store this step's alpha row directly in the final (B, L, L) layout
        out_ref[:, pl.ds(t, 1), :] = alpha[:, None, :]
        # pointers accumulate in the carry (single store after the loop)
        new_ptrs = jnp.where(iota_l == t, idx, ptrs)         # (B, L) int32

        return (new_mask, hidden_t, c_t, new_dec, new_ptrs)

    mask0 = jnp.ones((B, L), jnp.float32)
    ptrs0 = jnp.zeros((B, L), jnp.int32)
    carry = (mask0, h0_ref[...], c0_ref[...], dec_ref[...], ptrs0)
    # Fully unroll short decode loops so the LLO scheduler can overlap MXU/EUP/stores
    # across iterations; partial unroll keeps compile time bounded for long L.
    unroll = True if L <= 32 else 4
    _, h_f, c_f, _, ptrs_f = lax.fori_loop(0, L, body, carry, unroll=unroll)

    ptr_ref[...] = ptrs_f
    hfin_ref[...] = h_f
    cfin_ref[...] = c_f


def write_forward(params, embedded_inputs, decoder_input, hidden, context):
    """embedded_inputs: (B, E, L), decoder_input: (B, E), hidden: ((B,H),(B,H)),
    context: (B, H, L).  Returns (outputs (B,L,L), pointers (B,L) int32, (h,c))."""
    B, E, L = embedded_inputs.shape
    H = hidden[0].shape[1]

    emb_t = jnp.transpose(embedded_inputs, (0, 2, 1))   # (B, L, E)
    ctx_t = jnp.transpose(context, (0, 2, 1))           # (B, L, H)

    # One-time parameter split (outside the kernel): hidden_out halves so the
    # h_t contribution can be issued before the attention chain inside the kernel.
    w_out_hs = params["w_out"][:H]                       # (H, H)
    w_out_ht = params["w_out"][H:]                       # (H, H)

    vmem = pl.BlockSpec(memory_space=pltpu.MemorySpace.VMEM)
    inputs = (emb_t, decoder_input, hidden[0], hidden[1], ctx_t,
              params["w_ih"], params["b_ih"], params["w_hh"], params["b_hh"],
              params["w_in"], params["b_in"], params["w_cx"], params["b_cx"],
              params["v"], w_out_hs, w_out_ht, params["b_out"])

    out_shapes = (
        jax.ShapeDtypeStruct((B, L, L), jnp.float32),    # per-step alphas, final layout
        jax.ShapeDtypeStruct((B, L), jnp.int32),         # pointers, final layout
        jax.ShapeDtypeStruct((B, H), jnp.float32),       # final h (post-attention)
        jax.ShapeDtypeStruct((B, H), jnp.float32),       # final c
    )

    # Size scoped VMEM to the actual resident footprint (+headroom), clamped to the
    # chip's real VMEM (64 MiB/TC on v7x, 128 MiB on v5e/v6e) minus headroom for
    # Mosaic internal scratch.
    resident_elems = (sum(int(x.size) for x in inputs)
                      + 2 * B * L * H + B * L * (H + E)      # ctx_pre, act, ctx_emb
                      + B * L * L + B * L + 2 * B * H)       # outputs
    phys_vmem = 64 * 2**20
    try:
        phys_vmem = int(pltpu.get_tpu_info().vmem_capacity_bytes)
    except Exception:
        pass
    vmem_limit = int(min(int(0.8 * phys_vmem),
                         max(8 * 2**20, 4 * 4 * resident_elems)))

    # TODO(synk): for production sizes (large B / L), grid over batch with
    # dimension_semantics=("parallel",) to engage the second TensorCore on v7x,
    # bound per-call VMEM, and stream the (B,L,L) alpha output; at the demo B=2
    # a grid would have a single step.
    outputs, pointers, h_f, c_f = pl.pallas_call(
        _write_kernel,
        out_shape=out_shapes,
        in_specs=[vmem] * len(inputs),
        out_specs=tuple([vmem] * 4),
        compiler_params=pltpu.CompilerParams(vmem_limit_bytes=vmem_limit),
    )(*inputs)

    return outputs, pointers, (h_f, c_f)


def init_params(key, E, H):
    ks = jax.random.split(key, 11)

    def lin(k, fan_in, shape):
        bound = 1.0 / (fan_in ** 0.5)
        return jax.random.uniform(k, shape, jnp.float32, -bound, bound)

    return dict(
        w_ih=lin(ks[0], E, (E, 4 * H)),  b_ih=lin(ks[1], E, (1, 4 * H)),
        w_hh=lin(ks[2], H, (H, 4 * H)),  b_hh=lin(ks[3], H, (1, 4 * H)),
        w_in=lin(ks[4], H, (H, H)),      b_in=lin(ks[5], H, (1, H)),
        w_cx=lin(ks[6], H, (H, H)),      b_cx=lin(ks[7], H, (1, H)),
        v=jax.random.uniform(ks[8], (1, H), jnp.float32, -1.0, 1.0),
        w_out=lin(ks[9], 2 * H, (2 * H, H)), b_out=lin(ks[10], 2 * H, (1, H)),
    )


if __name__ == "__main__":
    B, E, H, L = 2, 32, 32, 8   # batch, embedding_dim, hidden_dim, input_length
    key = jax.random.PRNGKey(0)
    k_emb, k_dec, k_h, k_c, k_ctx, k_par = jax.random.split(key, 6)

    embedded_inputs = jax.random.normal(k_emb, (B, E, L), jnp.float32)
    decoder_input = jax.random.normal(k_dec, (B, E), jnp.float32)
    h0 = jax.random.normal(k_h, (B, H), jnp.float32)
    c0 = jax.random.normal(k_c, (B, H), jnp.float32)
    context = jax.random.normal(k_ctx, (B, H, L), jnp.float32)
    params = init_params(k_par, E, H)

    outputs, pointers, (h_f, c_f) = write_forward(
        params, embedded_inputs, decoder_input, (h0, c0), context)
    jax.block_until_ready((outputs, pointers, h_f, c_f))

    assert outputs.shape == (B, L, L)
    assert pointers.shape == (B, L) and pointers.dtype == jnp.int32
    assert h_f.shape == (B, H) and c_f.shape == (B, H)
    # each decode step must pick a distinct position (pointer-net property)
    assert all(len(set(map(int, row))) == L for row in pointers.tolist())
    print("KERNEL_OK")
</pallas_src>

<mosaic_0001>
module attributes {stable_mosaic.version = 11 : i64} {
  func.func @_write_kernel(%arg0: memref<2x8x32xf32, #tpu.memory_space<vmem>>, %arg1: memref<2x32xf32, #tpu.memory_space<vmem>>, %arg2: memref<2x32xf32, #tpu.memory_space<vmem>>, %arg3: memref<2x32xf32, #tpu.memory_space<vmem>>, %arg4: memref<2x8x32xf32, #tpu.memory_space<vmem>>, %arg5: memref<32x128xf32, #tpu.memory_space<vmem>>, %arg6: memref<1x128xf32, #tpu.memory_space<vmem>>, %arg7: memref<32x128xf32, #tpu.memory_space<vmem>>, %arg8: memref<1x128xf32, #tpu.memory_space<vmem>>, %arg9: memref<32x32xf32, #tpu.memory_space<vmem>>, %arg10: memref<1x32xf32, #tpu.memory_space<vmem>>, %arg11: memref<32x32xf32, #tpu.memory_space<vmem>>, %arg12: memref<1x32xf32, #tpu.memory_space<vmem>>, %arg13: memref<1x32xf32, #tpu.memory_space<vmem>>, %arg14: memref<32x32xf32, #tpu.memory_space<vmem>>, %arg15: memref<32x32xf32, #tpu.memory_space<vmem>>, %arg16: memref<1x32xf32, #tpu.memory_space<vmem>>, %arg17: memref<2x8x8xf32, #tpu.memory_space<vmem>>, %arg18: memref<2x8xi32, #tpu.memory_space<vmem>>, %arg19: memref<2x32xf32, #tpu.memory_space<vmem>>, %arg20: memref<2x32xf32, #tpu.memory_space<vmem>>) attributes {dimension_semantics = [], scalar_prefetch = 0 : i64, scratch_operands = 0 : i64, tpu.core_type = #tpu.core_type<tc>} {
    %c0 = arith.constant 0 : index
    %c0_0 = arith.constant 0 : index
    %c0_1 = arith.constant 0 : index
    %0 = vector.load %arg0[%c0, %c0_0, %c0_1] : memref<2x8x32xf32, #tpu.memory_space<vmem>>, vector<2x8x32xf32>
    %c0_2 = arith.constant 0 : index
    %c0_3 = arith.constant 0 : index
    %c0_4 = arith.constant 0 : index
    %1 = vector.load %arg4[%c0_2, %c0_3, %c0_4] : memref<2x8x32xf32, #tpu.memory_space<vmem>>, vector<2x8x32xf32>
    %c0_5 = arith.constant 0 : index
    %c0_6 = arith.constant 0 : index
    %2 = vector.load %arg5[%c0_5, %c0_6] : memref<32x128xf32, #tpu.memory_space<vmem>>, vector<32x128xf32>
    %c0_7 = arith.constant 0 : index
    %c0_8 = arith.constant 0 : index
    %3 = vector.load %arg6[%c0_7, %c0_8] : memref<1x128xf32, #tpu.memory_space<vmem>>, vector<1x128xf32>
    %c0_9 = arith.constant 0 : index
    %c0_10 = arith.constant 0 : index
    %4 = vector.load %arg7[%c0_9, %c0_10] : memref<32x128xf32, #tpu.memory_space<vmem>>, vector<32x128xf32>
    %c0_11 = arith.constant 0 : index
    %c0_12 = arith.constant 0 : index
    %5 = vector.load %arg8[%c0_11, %c0_12] : memref<1x128xf32, #tpu.memory_space<vmem>>, vector<1x128xf32>
    %c0_13 = arith.constant 0 : index
    %c0_14 = arith.constant 0 : index
    %6 = vector.load %arg9[%c0_13, %c0_14] : memref<32x32xf32, #tpu.memory_space<vmem>>, vector<32x32xf32>
    %c0_15 = arith.constant 0 : index
    %c0_16 = arith.constant 0 : index
    %7 = vector.load %arg10[%c0_15, %c0_16] : memref<1x32xf32, #tpu.memory_space<vmem>>, vector<1x32xf32>
    %c0_17 = arith.constant 0 : index
    %c0_18 = arith.constant 0 : index
    %8 = vector.load %arg11[%c0_17, %c0_18] : memref<32x32xf32, #tpu.memory_space<vmem>>, vector<32x32xf32>
    %c0_19 = arith.constant 0 : index
    %c0_20 = arith.constant 0 : index
    %9 = vector.load %arg12[%c0_19, %c0_20] : memref<1x32xf32, #tpu.memory_space<vmem>>, vector<1x32xf32>
    %c0_21 = arith.constant 0 : index
    %c0_22 = arith.constant 0 : index
    %10 = vector.load %arg13[%c0_21, %c0_22] : memref<1x32xf32, #tpu.memory_space<vmem>>, vector<1x32xf32>
    %11 = vector.shape_cast %10 : vector<1x32xf32> to vector<1x1x32xf32>
    %c0_23 = arith.constant 0 : index
    %c0_24 = arith.constant 0 : index
    %12 = vector.load %arg14[%c0_23, %c0_24] : memref<32x32xf32, #tpu.memory_space<vmem>>, vector<32x32xf32>
    %c0_25 = arith.constant 0 : index
    %c0_26 = arith.constant 0 : index
    %13 = vector.load %arg15[%c0_25, %c0_26] : memref<32x32xf32, #tpu.memory_space<vmem>>, vector<32x32xf32>
    %c0_27 = arith.constant 0 : index
    %c0_28 = arith.constant 0 : index
    %14 = vector.load %arg16[%c0_27, %c0_28] : memref<1x32xf32, #tpu.memory_space<vmem>>, vector<1x32xf32>
    %15 = vector.shape_cast %1 : vector<2x8x32xf32> to vector<16x32xf32>
    %cst = arith.constant dense<0.000000e+00> : vector<16x32xf32>
    %16 = tpu.matmul %15, %8, %cst {dimension_numbers = #tpu.dot_dimension_numbers<[1], [0], [0], [1], [0, 0, 1, 1], [], []>} : vector<16x32xf32>, vector<32x32xf32>, vector<16x32xf32> -> vector<16x32xf32>
    %17 = vector.broadcast %9 : vector<1x32xf32> to vector<16x32xf32>
    %18 = arith.addf %16, %17 : vector<16x32xf32>
    %19 = vector.shape_cast %18 : vector<16x32xf32> to vector<2x8x32xf32>
    %20 = tpu.concatenate %19, %0 in 2 : vector<2x8x32xf32>, vector<2x8x32xf32> -> vector<2x8x64xf32>
    %21 = tpu.iota {dimensions = array<i32: 1>} : vector<2x8xi32>
    %cst_29 = arith.constant 1.000000e+00 : f32
    %22 = vector.broadcast %cst_29 : f32 to vector<2x8xf32>
    %c0_i32 = arith.constant 0 : i32
    %23 = vector.broadcast %c0_i32 : i32 to vector<2x8xi32>
    %c0_30 = arith.constant 0 : index
    %c0_31 = arith.constant 0 : index
    %24 = vector.load %arg2[%c0_30, %c0_31] : memref<2x32xf32, #tpu.memory_space<vmem>>, vector<2x32xf32>
    %c0_32 = arith.constant 0 : index
    %c0_33 = arith.constant 0 : index
    %25 = vector.load %arg3[%c0_32, %c0_33] : memref<2x32xf32, #tpu.memory_space<vmem>>, vector<2x32xf32>
    %c0_34 = arith.constant 0 : index
    %c0_35 = arith.constant 0 : index
    %26 = vector.load %arg1[%c0_34, %c0_35] : memref<2x32xf32, #tpu.memory_space<vmem>>, vector<2x32xf32>
    %cst_36 = arith.constant 0xFF800000 : f32
    %c0_i32_37 = arith.constant 0 : i32
    %cst_38 = arith.constant dense<0.000000e+00> : vector<2x128xf32>
    %27 = tpu.matmul %26, %2, %cst_38 {dimension_numbers = #tpu.dot_dimension_numbers<[1], [0], [0], [1], [0, 0, 1, 1], [], []>} : vector<2x32xf32>, vector<32x128xf32>, vector<2x128xf32> -> vector<2x128xf32>
    %28 = vector.broadcast %3 : vector<1x128xf32> to vector<2x128xf32>
    %29 = arith.addf %27, %28 : vector<2x128xf32>
    %cst_39 = arith.constant dense<0.000000e+00> : vector<2x128xf32>
    %30 = tpu.matmul %24, %4, %cst_39 {dimension_numbers = #tpu.dot_dimension_numbers<[1], [0], [0], [1], [0, 0, 1, 1], [], []>} : vector<2x32xf32>, vector<32x128xf32>, vector<2x128xf32> -> vector<2x128xf32>
    %31 = vector.broadcast %5 : vector<1x128xf32> to vector<2x128xf32>
    %32 = arith.addf %30, %31 : vector<2x128xf32>
    %33 = arith.addf %29, %32 : vector<2x128xf32>
    %34 = vector.extract_strided_slice %33 {offsets = [0, 0], sizes = [2, 32], strides = [1, 1]} : vector<2x128xf32> to vector<2x32xf32>
    %35 = arith.negf %34 : vector<2x32xf32>
    %36 = math.exp %35 : vector<2x32xf32>
    %cst_40 = arith.constant 1.000000e+00 : f32
    %37 = vector.broadcast %cst_40 : f32 to vector<2x32xf32>
    %38 = arith.addf %37, %36 : vector<2x32xf32>
    %39 = arith.divf %37, %38 : vector<2x32xf32>
    %40 = vector.extract_strided_slice %33 {offsets = [0, 32], sizes = [2, 32], strides = [1, 1]} : vector<2x128xf32> to vector<2x32xf32>
    %41 = arith.negf %40 : vector<2x32xf32>
    %42 = math.exp %41 : vector<2x32xf32>
    %cst_41 = arith.constant 1.000000e+00 : f32
    %43 = vector.broadcast %cst_41 : f32 to vector<2x32xf32>
    %44 = arith.addf %43, %42 : vector<2x32xf32>
    %45 = arith.divf %43, %44 : vector<2x32xf32>
    %46 = vector.extract_strided_slice %33 {offsets = [0, 64], sizes = [2, 32], strides = [1, 1]} : vector<2x128xf32> to vector<2x32xf32>
    %47 = math.tanh %46 : vector<2x32xf32>
    %48 = vector.extract_strided_slice %33 {offsets = [0, 96], sizes = [2, 32], strides = [1, 1]} : vector<2x128xf32> to vector<2x32xf32>
    %49 = arith.negf %48 : vector<2x32xf32>
    %50 = math.exp %49 : vector<2x32xf32>
    %cst_42 = arith.constant 1.000000e+00 : f32
    %51 = vector.broadcast %cst_42 : f32 to vector<2x32xf32>
    %52 = arith.addf %51, %50 : vector<2x32xf32>
    %53 = arith.divf %51, %52 : vector<2x32xf32>
    %54 = arith.mulf %45, %25 : vector<2x32xf32>
    %55 = arith.mulf %39, %47 : vector<2x32xf32>
    %56 = arith.addf %54, %55 : vector<2x32xf32>
    %57 = math.tanh %56 : vector<2x32xf32>
    %58 = arith.mulf %53, %57 : vector<2x32xf32>
    %cst_43 = arith.constant dense<0.000000e+00> : vector<2x32xf32>
    %59 = tpu.matmul %58, %13, %cst_43 {dimension_numbers = #tpu.dot_dimension_numbers<[1], [0], [0], [1], [0, 0, 1, 1], [], []>} : vector<2x32xf32>, vector<32x32xf32>, vector<2x32xf32> -> vector<2x32xf32>
    %cst_44 = arith.constant dense<0.000000e+00> : vector<2x32xf32>
    %60 = tpu.matmul %58, %6, %cst_44 {dimension_numbers = #tpu.dot_dimension_numbers<[1], [0], [0], [1], [0, 0, 1, 1], [], []>} : vector<2x32xf32>, vector<32x32xf32>, vector<2x32xf32> -> vector<2x32xf32>
    %61 = vector.broadcast %7 : vector<1x32xf32> to vector<2x32xf32>
    %62 = arith.addf %60, %61 : vector<2x32xf32>
    %63 = vector.shape_cast %62 : vector<2x32xf32> to vector<2x1x32xf32>
    %64 = vector.broadcast %63 : vector<2x1x32xf32> to vector<2x8x32xf32>
    %65 = arith.addf %64, %19 : vector<2x8x32xf32>
    %66 = math.tanh %65 : vector<2x8x32xf32>
    %67 = vector.broadcast %11 : vector<1x1x32xf32> to vector<2x8x32xf32>
    %68 = arith.mulf %66, %67 : vector<2x8x32xf32>
    %cst_45 = arith.constant dense<0.000000e+00> : vector<2x8xf32>
    %69 = vector.multi_reduction <add>, %68, %cst_45 [2] : vector<2x8x32xf32> to vector<2x8xf32>
    %cst_46 = arith.constant 0.000000e+00 : f32
    %70 = vector.broadcast %cst_46 : f32 to vector<2x8xf32>
    %71 = arith.cmpf oeq, %22, %70 : vector<2x8xf32>
    %72 = vector.broadcast %cst_36 : f32 to vector<2x8xf32>
    %73 = arith.select %71, %72, %69 : vector<2x8xi1>, vector<2x8xf32>
    %cst_47 = arith.constant dense<0xFF800000> : vector<2xf32>
    %74 = vector.multi_reduction <maximumf>, %73, %cst_47 [1] : vector<2x8xf32> to vector<2xf32>
    %75 = vector.shape_cast %74 : vector<2xf32> to vector<2x1xf32>
    %76 = vector.broadcast %75 : vector<2x1xf32> to vector<2x8xf32>
    %77 = arith.subf %73, %76 : vector<2x8xf32>
    %78 = math.exp %77 : vector<2x8xf32>
    %cst_48 = arith.constant dense<0.000000e+00> : vector<2xf32>
    %79 = vector.multi_reduction <add>, %78, %cst_48 [1] : vector<2x8xf32> to vector<2xf32>
    %80 = vector.shape_cast %79 : vector<2xf32> to vector<2x1xf32>
    %81 = vector.broadcast %80 : vector<2x1xf32> to vector<2x8xf32>
    %82 = arith.divf %78, %81 : vector<2x8xf32>
    %cst_49 = arith.constant dense<0xFF800000> : vector<2xf32>
    %83 = vector.multi_reduction <maximumf>, %82, %cst_49 [1] : vector<2x8xf32> to vector<2xf32>
    %84 = vector.shape_cast %83 : vector<2xf32> to vector<2x1xf32>
    %85 = vector.broadcast %84 : vector<2x1xf32> to vector<2x8xf32>
    %86 = arith.cmpf oeq, %82, %85 : vector<2x8xf32>
    %c8_i32 = arith.constant 8 : i32
    %87 = vector.broadcast %c8_i32 : i32 to vector<2x8xi32>
    %88 = arith.select %86, %21, %87 : vector<2x8xi1>, vector<2x8xi32>
    %cst_50 = arith.constant dense<2147483647> : vector<2xi32>
    %89 = vector.multi_reduction <minsi>, %88, %cst_50 [1] : vector<2x8xi32> to vector<2xi32>
    %90 = vector.shape_cast %89 : vector<2xi32> to vector<2x1xi32>
    %91 = vector.broadcast %90 : vector<2x1xi32> to vector<2x8xi32>
    %92 = arith.cmpi eq, %21, %91 : vector<2x8xi32>
    %93 = arith.extui %92 : vector<2x8xi1> to vector<2x8xi32>
    %94 = arith.sitofp %93 : vector<2x8xi32> to vector<2x8xf32>
    %cst_51 = arith.constant 1.000000e+00 : f32
    %95 = vector.broadcast %cst_51 : f32 to vector<2x8xf32>
    %96 = arith.subf %95, %94 : vector<2x8xf32>
    %97 = arith.mulf %22, %96 : vector<2x8xf32>
    %98 = vector.shape_cast %82 : vector<2x8xf32> to vector<2x1x8xf32>
    %99 = vector.shape_cast %94 : vector<2x8xf32> to vector<2x1x8xf32>
    %100 = tpu.concatenate %98, %99 in 1 : vector<2x1x8xf32>, vector<2x1x8xf32> -> vector<2x2x8xf32>
    "tpu.trace_start"() <{level = 10 : i32, message = "bkl,blf->bkf"}> : () -> ()
    %cst_52 = arith.constant dense<0.000000e+00> : vector<2x2x64xf32>
    %101 = tpu.matmul %100, %20, %cst_52 {dimension_numbers = #tpu.dot_dimension_numbers<[2], [1], [1], [2], [0, 0, 0, 1, 1, 2], [0], [0]>} : vector<2x2x8xf32>, vector<2x8x64xf32>, vector<2x2x64xf32> -> vector<2x2x64xf32>
    "tpu.trace_stop"() : () -> ()
    %102 = vector.extract_strided_slice %101 {offsets = [0, 0, 0], sizes = [2, 1, 32], strides = [1, 1, 1]} : vector<2x2x64xf32> to vector<2x1x32xf32>
    %103 = vector.shape_cast %102 : vector<2x1x32xf32> to vector<2x32xf32>
    %104 = vector.extract_strided_slice %101 {offsets = [0, 1, 32], sizes = [2, 1, 32], strides = [1, 1, 1]} : vector<2x2x64xf32> to vector<2x1x32xf32>
    %105 = vector.shape_cast %104 : vector<2x1x32xf32> to vector<2x32xf32>
    %cst_53 = arith.constant dense<0.000000e+00> : vector<2x32xf32>
    %106 = tpu.matmul %103, %12, %cst_53 {dimension_numbers = #tpu.dot_dimension_numbers<[1], [0], [0], [1], [0, 0, 1, 1], [], []>} : vector<2x32xf32>, vector<32x32xf32>, vector<2x32xf32> -> vector<2x32xf32>
    %107 = arith.addf %106, %59 : vector<2x32xf32>
    %108 = vector.broadcast %14 : vector<1x32xf32> to vector<2x32xf32>
    %109 = arith.addf %107, %108 : vector<2x32xf32>
    %110 = math.tanh %109 : vector<2x32xf32>
    %111 = vector.shape_cast %82 : vector<2x8xf32> to vector<2x1x8xf32>
    %c0_54 = arith.constant 0 : index
    %112 = arith.index_cast %c0_i32_37 : i32 to index
    %c0_55 = arith.constant 0 : index
    %113 = vector.load %arg17[%c0_54, %112, %c0_55] : memref<2x8x8xf32, #tpu.memory_space<vmem>>, vector<2x1x8xf32>
    tpu.vector_store %arg17[%c0_54, %112, %c0_55], %111 {strides = array<i32>} : memref<2x8x8xf32, #tpu.memory_space<vmem>>, vector<2x1x8xf32>,
    %114 = vector.broadcast %c0_i32_37 : i32 to vector<2x8xi32>
    %115 = arith.cmpi eq, %21, %114 : vector<2x8xi32>
    %116 = vector.shape_cast %90 : vector<2x1xi32> to vector<2x1xi32>
    %117 = vector.broadcast %116 : vector<2x1xi32> to vector<2x8xi32>
    %118 = arith.select %115, %117, %23 : vector<2x8xi1>, vector<2x8xi32>
    %c1_i32 = arith.constant 1 : i32
    %cst_56 = arith.constant dense<0.000000e+00> : vector<2x128xf32>
    %119 = tpu.matmul %105, %2, %cst_56 {dimension_numbers = #tpu.dot_dimension_numbers<[1], [0], [0], [1], [0, 0, 1, 1], [], []>} : vector<2x32xf32>, vector<32x128xf32>, vector<2x128xf32> -> vector<2x128xf32>
    %120 = vector.broadcast %3 : vector<1x128xf32> to vector<2x128xf32>
    %121 = arith.addf %119, %120 : vector<2x128xf32>
    %cst_57 = arith.constant dense<0.000000e+00> : vector<2x128xf32>
    %122 = tpu.matmul %110, %4, %cst_57 {dimension_numbers = #tpu.dot_dimension_numbers<[1], [0], [0], [1], [0, 0, 1, 1], [], []>} : vector<2x32xf32>, vector<32x128xf32>, vector<2x128xf32> -> vector<2x128xf32>
    %123 = vector.broadcast %5 : vector<1x128xf32> to vector<2x128xf32>
    %124 = arith.addf %122, %123 : vector<2x128xf32>
    %125 = arith.addf %121, %124 : vector<2x128xf32>
    %126 = vector.extract_strided_slice %125 {offsets = [0, 0], sizes = [2, 32], strides = [1, 1]} : vector<2x128xf32> to vector<2x32xf32>
    %127 = arith.negf %126 : vector<2x32xf32>
    %128 = math.exp %127 : vector<2x32xf32>
    %cst_58 = arith.constant 1.000000e+00 : f32
    %129 = vector.broadcast %cst_58 : f32 to vector<2x32xf32>
    %130 = arith.addf %129, %128 : vector<2x32xf32>
    %131 = arith.divf %129, %130 : vector<2x32xf32>
    %132 = vector.extract_strided_slice %125 {offsets = [0, 32], sizes = [2, 32], strides = [1, 1]} : vector<2x128xf32> to vector<2x32xf32>
    %133 = arith.negf %132 : vector<2x32xf32>
    %134 = math.exp %133 : vector<2x32xf32>
    %cst_59 = arith.constant 1.000000e+00 : f32
    %135 = vector.broadcast %cst_59 : f32 to vector<2x32xf32>
    %136 = arith.addf %135, %134 : vector<2x32xf32>
    %137 = arith.divf %135, %136 : vector<2x32xf32>
    %138 = vector.extract_strided_slice %125 {offsets = [0, 64], sizes = [2, 32], strides = [1, 1]} : vector<2x128xf32> to vector<2x32xf32>
    %139 = math.tanh %138 : vector<2x32xf32>
    %140 = vector.extract_strided_slice %125 {offsets = [0, 96], sizes = [2, 32], strides = [1, 1]} : vector<2x128xf32> to vector<2x32xf32>
    %141 = arith.negf %140 : vector<2x32xf32>
    %142 = math.exp %141 : vector<2x32xf32>
    %cst_60 = arith.constant 1.000000e+00 : f32
    %143 = vector.broadcast %cst_60 : f32 to vector<2x32xf32>
    %144 = arith.addf %143, %142 : vector<2x32xf32>
    %145 = arith.divf %143, %144 : vector<2x32xf32>
    %146 = arith.mulf %137, %56 : vector<2x32xf32>
    %147 = arith.mulf %131, %139 : vector<2x32xf32>
    %148 = arith.addf %146, %147 : vector<2x32xf32>
    %149 = math.tanh %148 : vector<2x32xf32>
    %150 = arith.mulf %145, %149 : vector<2x32xf32>
    %cst_61 = arith.constant dense<0.000000e+00> : vector<2x32xf32>
    %151 = tpu.matmul %150, %13, %cst_61 {dimension_numbers = #tpu.dot_dimension_numbers<[1], [0], [0], [1], [0, 0, 1, 1], [], []>} : vector<2x32xf32>, vector<32x32xf32>, vector<2x32xf32> -> vector<2x32xf32>
    %cst_62 = arith.constant dense<0.000000e+00> : vector<2x32xf32>
    %152 = tpu.matmul %150, %6, %cst_62 {dimension_numbers = #tpu.dot_dimension_numbers<[1], [0], [0], [1], [0, 0, 1, 1], [], []>} : vector<2x32xf32>, vector<32x32xf32>, vector<2x32xf32> -> vector<2x32xf32>
    %153 = vector.broadcast %7 : vector<1x32xf32> to vector<2x32xf32>
    %154 = arith.addf %152, %153 : vector<2x32xf32>
    %155 = vector.shape_cast %154 : vector<2x32xf32> to vector<2x1x32xf32>
    %156 = vector.broadcast %155 : vector<2x1x32xf32> to vector<2x8x32xf32>
    %157 = arith.addf %156, %19 : vector<2x8x32xf32>
    %158 = math.tanh %157 : vector<2x8x32xf32>
    %159 = vector.broadcast %11 : vector<1x1x32xf32> to vector<2x8x32xf32>
    %160 = arith.mulf %158, %159 : vector<2x8x32xf32>
    %cst_63 = arith.constant dense<0.000000e+00> : vector<2x8xf32>
    %161 = vector.multi_reduction <add>, %160, %cst_63 [2] : vector<2x8x32xf32> to vector<2x8xf32>
    %cst_64 = arith.constant 0.000000e+00 : f32
    %162 = vector.broadcast %cst_64 : f32 to vector<2x8xf32>
    %163 = arith.cmpf oeq, %97, %162 : vector<2x8xf32>
    %164 = vector.broadcast %cst_36 : f32 to vector<2x8xf32>
    %165 = arith.select %163, %164, %161 : vector<2x8xi1>, vector<2x8xf32>
    %cst_65 = arith.constant dense<0xFF800000> : vector<2xf32>
    %166 = vector.multi_reduction <maximumf>, %165, %cst_65 [1] : vector<2x8xf32> to vector<2xf32>
    %167 = vector.shape_cast %166 : vector<2xf32> to vector<2x1xf32>
    %168 = vector.broadcast %167 : vector<2x1xf32> to vector<2x8xf32>
    %169 = arith.subf %165, %168 : vector<2x8xf32>
    %170 = math.exp %169 : vector<2x8xf32>
    %cst_66 = arith.constant dense<0.000000e+00> : vector<2xf32>
    %171 = vector.multi_reduction <add>, %170, %cst_66 [1] : vector<2x8xf32> to vector<2xf32>
    %172 = vector.shape_cast %171 : vector<2xf32> to vector<2x1xf32>
    %173 = vector.broadcast %172 : vector<2x1xf32> to vector<2x8xf32>
    %174 = arith.divf %170, %173 : vector<2x8xf32>
    %cst_67 = arith.constant dense<0xFF800000> : vector<2xf32>
    %175 = vector.multi_reduction <maximumf>, %174, %cst_67 [1] : vector<2x8xf32> to vector<2xf32>
    %176 = vector.shape_cast %175 : vector<2xf32> to vector<2x1xf32>
    %177 = vector.broadcast %176 : vector<2x1xf32> to vector<2x8xf32>
    %178 = arith.cmpf oeq, %174, %177 : vector<2x8xf32>
    %c8_i32_68 = arith.constant 8 : i32
    %179 = vector.broadcast %c8_i32_68 : i32 to vector<2x8xi32>
    %180 = arith.select %178, %21, %179 : vector<2x8xi1>, vector<2x8xi32>
    %cst_69 = arith.constant dense<2147483647> : vector<2xi32>
    %181 = vector.multi_reduction <minsi>, %180, %cst_69 [1] : vector<2x8xi32> to vector<2xi32>
    %182 = vector.shape_cast %181 : vector<2xi32> to vector<2x1xi32>
    %183 = vector.broadcast %182 : vector<2x1xi32> to vector<2x8xi32>
    %184 = arith.cmpi eq, %21, %183 : vector<2x8xi32>
    %185 = arith.extui %184 : vector<2x8xi1> to vector<2x8xi32>
    %186 = arith.sitofp %185 : vector<2x8xi32> to vector<2x8xf32>
    %cst_70 = arith.constant 1.000000e+00 : f32
    %187 = vector.broadcast %cst_70 : f32 to vector<2x8xf32>
    %188 = arith.subf %187, %186 : vector<2x8xf32>
    %189 = arith.mulf %97, %188 : vector<2x8xf32>
    %190 = vector.shape_cast %174 : vector<2x8xf32> to vector<2x1x8xf32>
    %191 = vector.shape_cast %186 : vector<2x8xf32> to vector<2x1x8xf32>
    %192 = tpu.concatenate %190, %191 in 1 : vector<2x1x8xf32>, vector<2x1x8xf32> -> vector<2x2x8xf32>
    "tpu.trace_start"() <{level = 10 : i32, message = "bkl,blf->bkf"}> : () -> ()
    %cst_71 = arith.constant dense<0.000000e+00> : vector<2x2x64xf32>
    %193 = tpu.matmul %192, %20, %cst_71 {dimension_numbers = #tpu.dot_dimension_numbers<[2], [1], [1], [2], [0, 0, 0, 1, 1, 2], [0], [0]>} : vector<2x2x8xf32>, vector<2x8x64xf32>, vector<2x2x64xf32> -> vector<2x2x64xf32>
    "tpu.trace_stop"() : () -> ()
    %194 = vector.extract_strided_slice %193 {offsets = [0, 0, 0], sizes = [2, 1, 32], strides = [1, 1, 1]} : vector<2x2x64xf32> to vector<2x1x32xf32>
    %195 = vector.shape_cast %194 : vector<2x1x32xf32> to vector<2x32xf32>
    %196 = vector.extract_strided_slice %193 {offsets = [0, 1, 32], sizes = [2, 1, 32], strides = [1, 1, 1]} : vector<2x2x64xf32> to vector<2x1x32xf32>
    %197 = vector.shape_cast %196 : vector<2x1x32xf32> to vector<2x32xf32>
    %cst_72 = arith.constant dense<0.000000e+00> : vector<2x32xf32>
    %198 = tpu.matmul %195, %12, %cst_72 {dimension_numbers = #tpu.dot_dimension_numbers<[1], [0], [0], [1], [0, 0, 1, 1], [], []>} : vector<2x32xf32>, vector<32x32xf32>, vector<2x32xf32> -> vector<2x32xf32>
    %199 = arith.addf %198, %151 : vector<2x32xf32>
    %200 = vector.broadcast %14 : vector<1x32xf32> to vector<2x32xf32>
    %201 = arith.addf %199, %200 : vector<2x32xf32>
    %202 = math.tanh %201 : vector<2x32xf32>
    %203 = vector.shape_cast %174 : vector<2x8xf32> to vector<2x1x8xf32>
    %c0_73 = arith.constant 0 : index
    %204 = arith.index_cast %c1_i32 : i32 to index
    %c0_74 = arith.constant 0 : index
    %205 = vector.load %arg17[%c0_73, %204, %c0_74] : memref<2x8x8xf32, #tpu.memory_space<vmem>>, vector<2x1x8xf32>
    tpu.vector_store %arg17[%c0_73, %204, %c0_74], %203 {strides = array<i32>} : memref<2x8x8xf32, #tpu.memory_space<vmem>>, vector<2x1x8xf32>,
    %206 = vector.broadcast %c1_i32 : i32 to vector<2x8xi32>
    %207 = arith.cmpi eq, %21, %206 : vector<2x8xi32>
    %208 = vector.shape_cast %182 : vector<2x1xi32> to vector<2x1xi32>
    %209 = vector.broadcast %208 : vector<2x1xi32> to vector<2x8xi32>
    %210 = arith.select %207, %209, %118 : vector<2x8xi1>, vector<2x8xi32>
    %c2_i32 = arith.constant 2 : i32
    %cst_75 = arith.constant dense<0.000000e+00> : vector<2x128xf32>
    %211 = tpu.matmul %197, %2, %cst_75 {dimension_numbers = #tpu.dot_dimension_numbers<[1], [0], [0], [1], [0, 0, 1, 1], [], []>} : vector<2x32xf32>, vector<32x128xf32>, vector<2x128xf32> -> vector<2x128xf32>
    %212 = vector.broadcast %3 : vector<1x128xf32> to vector<2x128xf32>
    %213 = arith.addf %211, %212 : vector<2x128xf32>
    %cst_76 = arith.constant dense<0.000000e+00> : vector<2x128xf32>
    %214 = tpu.matmul %202, %4, %cst_76 {dimension_numbers = #tpu.dot_dimension_numbers<[1], [0], [0], [1], [0, 0, 1, 1], [], []>} : vector<2x32xf32>, vector<32x128xf32>, vector<2x128xf32> -> vector<2x128xf32>
    %215 = vector.broadcast %5 : vector<1x128xf32> to vector<2x128xf32>
    %216 = arith.addf %214, %215 : vector<2x128xf32>
    %217 = arith.addf %213, %216 : vector<2x128xf32>
    %218 = vector.extract_strided_slice %217 {offsets = [0, 0], sizes = [2, 32], strides = [1, 1]} : vector<2x128xf32> to vector<2x32xf32>
    %219 = arith.negf %218 : vector<2x32xf32>
    %220 = math.exp %219 : vector<2x32xf32>
    %cst_77 = arith.constant 1.000000e+00 : f32
    %221 = vector.broadcast %cst_77 : f32 to vector<2x32xf32>
    %222 = arith.addf %221, %220 : vector<2x32xf32>
    %223 = arith.divf %221, %222 : vector<2x32xf32>
    %224 = vector.extract_strided_slice %217 {offsets = [0, 32], sizes = [2, 32], strides = [1, 1]} : vector<2x128xf32> to vector<2x32xf32>
    %225 = arith.negf %224 : vector<2x32xf32>
    %226 = math.exp %225 : vector<2x32xf32>
    %cst_78 = arith.constant 1.000000e+00 : f32
    %227 = vector.broadcast %cst_78 : f32 to vector<2x32xf32>
    %228 = arith.addf %227, %226 : vector<2x32xf32>
    %229 = arith.divf %227, %228 : vector<2x32xf32>
    %230 = vector.extract_strided_slice %217 {offsets = [0, 64], sizes = [2, 32], strides = [1, 1]} : vector<2x128xf32> to vector<2x32xf32>
    %231 = math.tanh %230 : vector<2x32xf32>
    %232 = vector.extract_strided_slice %217 {offsets = [0, 96], sizes = [2, 32], strides = [1, 1]} : vector<2x128xf32> to vector<2x32xf32>
    %233 = arith.negf %232 : vector<2x32xf32>
    %234 = math.exp %233 : vector<2x32xf32>
    %cst_79 = arith.constant 1.000000e+00 : f32
    %235 = vector.broadcast %cst_79 : f32 to vector<2x32xf32>
    %236 = arith.addf %235, %234 : vector<2x32xf32>
    %237 = arith.divf %235, %236 : vector<2x32xf32>
    %238 = arith.mulf %229, %148 : vector<2x32xf32>
    %239 = arith.mulf %223, %231 : vector<2x32xf32>
    %240 = arith.addf %238, %239 : vector<2x32xf32>
    %241 = math.tanh %240 : vector<2x32xf32>
    %242 = arith.mulf %237, %241 : vector<2x32xf32>
    %cst_80 = arith.constant dense<0.000000e+00> : vector<2x32xf32>
    %243 = tpu.matmul %242, %13, %cst_80 {dimension_numbers = #tpu.dot_dimension_numbers<[1], [0], [0], [1], [0, 0, 1, 1], [], []>} : vector<2x32xf32>, vector<32x32xf32>, vector<2x32xf32> -> vector<2x32xf32>
    %cst_81 = arith.constant dense<0.000000e+00> : vector<2x32xf32>
    %244 = tpu.matmul %242, %6, %cst_81 {dimension_numbers = #tpu.dot_dimension_numbers<[1], [0], [0], [1], [0, 0, 1, 1], [], []>} : vector<2x32xf32>, vector<32x32xf32>, vector<2x32xf32> -> vector<2x32xf32>
    %245 = vector.broadcast %7 : vector<1x32xf32> to vector<2x32xf32>
    %246 = arith.addf %244, %245 : vector<2x32xf32>
    %247 = vector.shape_cast %246 : vector<2x32xf32> to vector<2x1x32xf32>
    %248 = vector.broadcast %247 : vector<2x1x32xf32> to vector<2x8x32xf32>
    %249 = arith.addf %248, %19 : vector<2x8x32xf32>
    %250 = math.tanh %249 : vector<2x8x32xf32>
    %251 = vector.broadcast %11 : vector<1x1x32xf32> to vector<2x8x32xf32>
    %252 = arith.mulf %250, %251 : vector<2x8x32xf32>
    %cst_82 = arith.constant dense<0.000000e+00> : vector<2x8xf32>
    %253 = vector.multi_reduction <add>, %252, %cst_82 [2] : vector<2x8x32xf32> to vector<2x8xf32>
    %cst_83 = arith.constant 0.000000e+00 : f32
    %254 = vector.broadcast %cst_83 : f32 to vector<2x8xf32>
    %255 = arith.cmpf oeq, %189, %254 : vector<2x8xf32>
    %256 = vector.broadcast %cst_36 : f32 to vector<2x8xf32>
    %257 = arith.select %255, %256, %253 : vector<2x8xi1>, vector<2x8xf32>
    %cst_84 = arith.constant dense<0xFF800000> : vector<2xf32>
    %258 = vector.multi_reduction <maximumf>, %257, %cst_84 [1] : vector<2x8xf32> to vector<2xf32>
    %259 = vector.shape_cast %258 : vector<2xf32> to vector<2x1xf32>
    %260 = vector.broadcast %259 : vector<2x1xf32> to vector<2x8xf32>
    %261 = arith.subf %257, %260 : vector<2x8xf32>
    %262 = math.exp %261 : vector<2x8xf32>
    %cst_85 = arith.constant dense<0.000000e+00> : vector<2xf32>
    %263 = vector.multi_reduction <add>, %262, %cst_85 [1] : vector<2x8xf32> to vector<2xf32>
    %264 = vector.shape_cast %263 : vector<2xf32> to vector<2x1xf32>
    %265 = vector.broadcast %264 : vector<2x1xf32> to vector<2x8xf32>
    %266 = arith.divf %262, %265 : vector<2x8xf32>
    %cst_86 = arith.constant dense<0xFF800000> : vector<2xf32>
    %267 = vector.multi_reduction <maximumf>, %266, %cst_86 [1] : vector<2x8xf32> to vector<2xf32>
    %268 = vector.shape_cast %267 : vector<2xf32> to vector<2x1xf32>
    %269 = vector.broadcast %268 : vector<2x1xf32> to vector<2x8xf32>
    %270 = arith.cmpf oeq, %266, %269 : vector<2x8xf32>
    %c8_i32_87 = arith.constant 8 : i32
    %271 = vector.broadcast %c8_i32_87 : i32 to vector<2x8xi32>
    %272 = arith.select %270, %21, %271 : vector<2x8xi1>, vector<2x8xi32>
    %cst_88 = arith.constant dense<2147483647> : vector<2xi32>
    %273 = vector.multi_reduction <minsi>, %272, %cst_88 [1] : vector<2x8xi32> to vector<2xi32>
    %274 = vector.shape_cast %273 : vector<2xi32> to vector<2x1xi32>
    %275 = vector.broadcast %274 : vector<2x1xi32> to vector<2x8xi32>
    %276 = arith.cmpi eq, %21, %275 : vector<2x8xi32>
    %277 = arith.extui %276 : vector<2x8xi1> to vector<2x8xi32>
    %278 = arith.sitofp %277 : vector<2x8xi32> to vector<2x8xf32>
    %cst_89 = arith.constant 1.000000e+00 : f32
    %279 = vector.broadcast %cst_89 : f32 to vector<2x8xf32>
    %280 = arith.subf %279, %278 : vector<2x8xf32>
    %281 = arith.mulf %189, %280 : vector<2x8xf32>
    %282 = vector.shape_cast %266 : vector<2x8xf32> to vector<2x1x8xf32>
    %283 = vector.shape_cast %278 : vector<2x8xf32> to vector<2x1x8xf32>
    %284 = tpu.concatenate %282, %283 in 1 : vector<2x1x8xf32>, vector<2x1x8xf32> -> vector<2x2x8xf32>
    "tpu.trace_start"() <{level = 10 : i32, message = "bkl,blf->bkf"}> : () -> ()
    %cst_90 = arith.constant dense<0.000000e+00> : vector<2x2x64xf32>
    %285 = tpu.matmul %284, %20, %cst_90 {dimension_numbers = #tpu.dot_dimension_numbers<[2], [1], [1], [2], [0, 0, 0, 1, 1, 2], [0], [0]>} : vector<2x2x8xf32>, vector<2x8x64xf32>, vector<2x2x64xf32> -> vector<2x2x64xf32>
    "tpu.trace_stop"() : () -> ()
    %286 = vector.extract_strided_slice %285 {offsets = [0, 0, 0], sizes = [2, 1, 32], strides = [1, 1, 1]} : vector<2x2x64xf32> to vector<2x1x32xf32>
    %287 = vector.shape_cast %286 : vector<2x1x32xf32> to vector<2x32xf32>
    %288 = vector.extract_strided_slice %285 {offsets = [0, 1, 32], sizes = [2, 1, 32], strides = [1, 1, 1]} : vector<2x2x64xf32> to vector<2x1x32xf32>
    %289 = vector.shape_cast %288 : vector<2x1x32xf32> to vector<2x32xf32>
    %cst_91 = arith.constant dense<0.000000e+00> : vector<2x32xf32>
    %290 = tpu.matmul %287, %12, %cst_91 {dimension_numbers = #tpu.dot_dimension_numbers<[1], [0], [0], [1], [0, 0, 1, 1], [], []>} : vector<2x32xf32>, vector<32x32xf32>, vector<2x32xf32> -> vector<2x32xf32>
    %291 = arith.addf %290, %243 : vector<2x32xf32>
    %292 = vector.broadcast %14 : vector<1x32xf32> to vector<2x32xf32>
    %293 = arith.addf %291, %292 : vector<2x32xf32>
    %294 = math.tanh %293 : vector<2x32xf32>
    %295 = vector.shape_cast %266 : vector<2x8xf32> to vector<2x1x8xf32>
    %c0_92 = arith.constant 0 : index
    %296 = arith.index_cast %c2_i32 : i32 to index
    %c0_93 = arith.constant 0 : index
    %297 = vector.load %arg17[%c0_92, %296, %c0_93] : memref<2x8x8xf32, #tpu.memory_space<vmem>>, vector<2x1x8xf32>
    tpu.vector_store %arg17[%c0_92, %296, %c0_93], %295 {strides = array<i32>} : memref<2x8x8xf32, #tpu.memory_space<vmem>>, vector<2x1x8xf32>,
    %298 = vector.broadcast %c2_i32 : i32 to vector<2x8xi32>
    %299 = arith.cmpi eq, %21, %298 : vector<2x8xi32>
    %300 = vector.shape_cast %274 : vector<2x1xi32> to vector<2x1xi32>
    %301 = vector.broadcast %300 : vector<2x1xi32> to vector<2x8xi32>
    %302 = arith.select %299, %301, %210 : vector<2x8xi1>, vector<2x8xi32>
    %c3_i32 = arith.constant 3 : i32
    %cst_94 = arith.constant dense<0.000000e+00> : vector<2x128xf32>
    %303 = tpu.matmul %289, %2, %cst_94 {dimension_numbers = #tpu.dot_dimension_numbers<[1], [0], [0], [1], [0, 0, 1, 1], [], []>} : vector<2x32xf32>, vector<32x128xf32>, vector<2x128xf32> -> vector<2x128xf32>
    %304 = vector.broadcast %3 : vector<1x128xf32> to vector<2x128xf32>
    %305 = arith.addf %303, %304 : vector<2x128xf32>
    %cst_95 = arith.constant dense<0.000000e+00> : vector<2x128xf32>
    %306 = tpu.matmul %294, %4, %cst_95 {dimension_numbers = #tpu.dot_dimension_numbers<[1], [0], [0], [1], [0, 0, 1, 1], [], []>} : vector<2x32xf32>, vector<32x128xf32>, vector<2x128xf32> -> vector<2x128xf32>
    %307 = vector.broadcast %5 : vector<1x128xf32> to vector<2x128xf32>
    %308 = arith.addf %306, %307 : vector<2x128xf32>
    %309 = arith.addf %305, %308 : vector<2x128xf32>
    %310 = vector.extract_strided_slice %309 {offsets = [0, 0], sizes = [2, 32], strides = [1, 1]} : vector<2x128xf32> to vector<2x32xf32>
    %311 = arith.negf %310 : vector<2x32xf32>
    %312 = math.exp %311 : vector<2x32xf32>
    %cst_96 = arith.constant 1.000000e+00 : f32
    %313 = vector.broadcast %cst_96 : f32 to vector<2x32xf32>
    %314 = arith.addf %313, %312 : vector<2x32xf32>
    %315 = arith.divf %313, %314 : vector<2x32xf32>
    %316 = vector.extract_strided_slice %309 {offsets = [0, 32], sizes = [2, 32], strides = [1, 1]} : vector<2x128xf32> to vector<2x32xf32>
    %317 = arith.negf %316 : vector<2x32xf32>
    %318 = math.exp %317 : vector<2x32xf32>
    %cst_97 = arith.constant 1.000000e+00 : f32
    %319 = vector.broadcast %cst_97 : f32 to vector<2x32xf32>
    %320 = arith.addf %319, %318 : vector<2x32xf32>
    %321 = arith.divf %319, %320 : vector<2x32xf32>
    %322 = vector.extract_strided_slice %309 {offsets = [0, 64], sizes = [2, 32], strides = [1, 1]} : vector<2x128xf32> to vector<2x32xf32>
    %323 = math.tanh %322 : vector<2x32xf32>
    %324 = vector.extract_strided_slice %309 {offsets = [0, 96], sizes = [2, 32], strides = [1, 1]} : vector<2x128xf32> to vector<2x32xf32>
    %325 = arith.negf %324 : vector<2x32xf32>
    %326 = math.exp %325 : vector<2x32xf32>
    %cst_98 = arith.constant 1.000000e+00 : f32
    %327 = vector.broadcast %cst_98 : f32 to vector<2x32xf32>
    %328 = arith.addf %327, %326 : vector<2x32xf32>
    %329 = arith.divf %327, %328 : vector<2x32xf32>
    %330 = arith.mulf %321, %240 : vector<2x32xf32>
    %331 = arith.mulf %315, %323 : vector<2x32xf32>
    %332 = arith.addf %330, %331 : vector<2x32xf32>
    %333 = math.tanh %332 : vector<2x32xf32>
    %334 = arith.mulf %329, %333 : vector<2x32xf32>
    %cst_99 = arith.constant dense<0.000000e+00> : vector<2x32xf32>
    %335 = tpu.matmul %334, %13, %cst_99 {dimension_numbers = #tpu.dot_dimension_numbers<[1], [0], [0], [1], [0, 0, 1, 1], [], []>} : vector<2x32xf32>, vector<32x32xf32>, vector<2x32xf32> -> vector<2x32xf32>
    %cst_100 = arith.constant dense<0.000000e+00> : vector<2x32xf32>
    %336 = tpu.matmul %334, %6, %cst_100 {dimension_numbers = #tpu.dot_dimension_numbers<[1], [0], [0], [1], [0, 0, 1, 1], [], []>} : vector<2x32xf32>, vector<32x32xf32>, vector<2x32xf32> -> vector<2x32xf32>
    %337 = vector.broadcast %7 : vector<1x32xf32> to vector<2x32xf32>
    %338 = arith.addf %336, %337 : vector<2x32xf32>
    %339 = vector.shape_cast %338 : vector<2x32xf32> to vector<2x1x32xf32>
    %340 = vector.broadcast %339 : vector<2x1x32xf32> to vector<2x8x32xf32>
    %341 = arith.addf %340, %19 : vector<2x8x32xf32>
    %342 = math.tanh %341 : vector<2x8x32xf32>
    %343 = vector.broadcast %11 : vector<1x1x32xf32> to vector<2x8x32xf32>
    %344 = arith.mulf %342, %343 : vector<2x8x32xf32>
    %cst_101 = arith.constant dense<0.000000e+00> : vector<2x8xf32>
    %345 = vector.multi_reduction <add>, %344, %cst_101 [2] : vector<2x8x32xf32> to vector<2x8xf32>
    %cst_102 = arith.constant 0.000000e+00 : f32
    %346 = vector.broadcast %cst_102 : f32 to vector<2x8xf32>
    %347 = arith.cmpf oeq, %281, %346 : vector<2x8xf32>
    %348 = vector.broadcast %cst_36 : f32 to vector<2x8xf32>
    %349 = arith.select %347, %348, %345 : vector<2x8xi1>, vector<2x8xf32>
    %cst_103 = arith.constant dense<0xFF800000> : vector<2xf32>
    %350 = vector.multi_reduction <maximumf>, %349, %cst_103 [1] : vector<2x8xf32> to vector<2xf32>
    %351 = vector.shape_cast %350 : vector<2xf32> to vector<2x1xf32>
    %352 = vector.broadcast %351 : vector<2x1xf32> to vector<2x8xf32>
    %353 = arith.subf %349, %352 : vector<2x8xf32>
    %354 = math.exp %353 : vector<2x8xf32>
    %cst_104 = arith.constant dense<0.000000e+00> : vector<2xf32>
    %355 = vector.multi_reduction <add>, %354, %cst_104 [1] : vector<2x8xf32> to vector<2xf32>
    %356 = vector.shape_cast %355 : vector<2xf32> to vector<2x1xf32>
    %357 = vector.broadcast %356 : vector<2x1xf32> to vector<2x8xf32>
    %358 = arith.divf %354, %357 : vector<2x8xf32>
    %cst_105 = arith.constant dense<0xFF800000> : vector<2xf32>
    %359 = vector.multi_reduction <maximumf>, %358, %cst_105 [1] : vector<2x8xf32> to vector<2xf32>
    %360 = vector.shape_cast %359 : vector<2xf32> to vector<2x1xf32>
    %361 = vector.broadcast %360 : vector<2x1xf32> to vector<2x8xf32>
    %362 = arith.cmpf oeq, %358, %361 : vector<2x8xf32>
    %c8_i32_106 = arith.constant 8 : i32
    %363 = vector.broadcast %c8_i32_106 : i32 to vector<2x8xi32>
    %364 = arith.select %362, %21, %363 : vector<2x8xi1>, vector<2x8xi32>
    %cst_107 = arith.constant dense<2147483647> : vector<2xi32>
    %365 = vector.multi_reduction <minsi>, %364, %cst_107 [1] : vector<2x8xi32> to vector<2xi32>
    %366 = vector.shape_cast %365 : vector<2xi32> to vector<2x1xi32>
    %367 = vector.broadcast %366 : vector<2x1xi32> to vector<2x8xi32>
    %368 = arith.cmpi eq, %21, %367 : vector<2x8xi32>
    %369 = arith.extui %368 : vector<2x8xi1> to vector<2x8xi32>
    %370 = arith.sitofp %369 : vector<2x8xi32> to vector<2x8xf32>
    %cst_108 = arith.constant 1.000000e+00 : f32
    %371 = vector.broadcast %cst_108 : f32 to vector<2x8xf32>
    %372 = arith.subf %371, %370 : vector<2x8xf32>
    %373 = arith.mulf %281, %372 : vector<2x8xf32>
    %374 = vector.shape_cast %358 : vector<2x8xf32> to vector<2x1x8xf32>
    %375 = vector.shape_cast %370 : vector<2x8xf32> to vector<2x1x8xf32>
    %376 = tpu.concatenate %374, %375 in 1 : vector<2x1x8xf32>, vector<2x1x8xf32> -> vector<2x2x8xf32>
    "tpu.trace_start"() <{level = 10 : i32, message = "bkl,blf->bkf"}> : () -> ()
    %cst_109 = arith.constant dense<0.000000e+00> : vector<2x2x64xf32>
    %377 = tpu.matmul %376, %20, %cst_109 {dimension_numbers = #tpu.dot_dimension_numbers<[2], [1], [1], [2], [0, 0, 0, 1, 1, 2], [0], [0]>} : vector<2x2x8xf32>, vector<2x8x64xf32>, vector<2x2x64xf32> -> vector<2x2x64xf32>
    "tpu.trace_stop"() : () -> ()
    %378 = vector.extract_strided_slice %377 {offsets = [0, 0, 0], sizes = [2, 1, 32], strides = [1, 1, 1]} : vector<2x2x64xf32> to vector<2x1x32xf32>
    %379 = vector.shape_cast %378 : vector<2x1x32xf32> to vector<2x32xf32>
    %380 = vector.extract_strided_slice %377 {offsets = [0, 1, 32], sizes = [2, 1, 32], strides = [1, 1, 1]} : vector<2x2x64xf32> to vector<2x1x32xf32>
    %381 = vector.shape_cast %380 : vector<2x1x32xf32> to vector<2x32xf32>
    %cst_110 = arith.constant dense<0.000000e+00> : vector<2x32xf32>
    %382 = tpu.matmul %379, %12, %cst_110 {dimension_numbers = #tpu.dot_dimension_numbers<[1], [0], [0], [1], [0, 0, 1, 1], [], []>} : vector<2x32xf32>, vector<32x32xf32>, vector<2x32xf32> -> vector<2x32xf32>
    %383 = arith.addf %382, %335 : vector<2x32xf32>
    %384 = vector.broadcast %14 : vector<1x32xf32> to vector<2x32xf32>
    %385 = arith.addf %383, %384 : vector<2x32xf32>
    %386 = math.tanh %385 : vector<2x32xf32>
    %387 = vector.shape_cast %358 : vector<2x8xf32> to vector<2x1x8xf32>
    %c0_111 = arith.constant 0 : index
    %388 = arith.index_cast %c3_i32 : i32 to index
    %c0_112 = arith.constant 0 : index
    %389 = vector.load %arg17[%c0_111, %388, %c0_112] : memref<2x8x8xf32, #tpu.memory_space<vmem>>, vector<2x1x8xf32>
    tpu.vector_store %arg17[%c0_111, %388, %c0_112], %387 {strides = array<i32>} : memref<2x8x8xf32, #tpu.memory_space<vmem>>, vector<2x1x8xf32>,
    %390 = vector.broadcast %c3_i32 : i32 to vector<2x8xi32>
    %391 = arith.cmpi eq, %21, %390 : vector<2x8xi32>
    %392 = vector.shape_cast %366 : vector<2x1xi32> to vector<2x1xi32>
    %393 = vector.broadcast %392 : vector<2x1xi32> to vector<2x8xi32>
    %394 = arith.select %391, %393, %302 : vector<2x8xi1>, vector<2x8xi32>
    %c4_i32 = arith.constant 4 : i32
    %cst_113 = arith.constant dense<0.000000e+00> : vector<2x128xf32>
    %395 = tpu.matmul %381, %2, %cst_113 {dimension_numbers = #tpu.dot_dimension_numbers<[1], [0], [0], [1], [0, 0, 1, 1], [], []>} : vector<2x32xf32>, vector<32x128xf32>, vector<2x128xf32> -> vector<2x128xf32>
    %396 = vector.broadcast %3 : vector<1x128xf32> to vector<2x128xf32>
    %397 = arith.addf %395, %396 : vector<2x128xf32>
    %cst_114 = arith.constant dense<0.000000e+00> : vector<2x128xf32>
    %398 = tpu.matmul %386, %4, %cst_114 {dimension_numbers = #tpu.dot_dimension_numbers<[1], [0], [0], [1], [0, 0, 1, 1], [], []>} : vector<2x32xf32>, vector<32x128xf32>, vector<2x128xf32> -> vector<2x128xf32>
    %399 = vector.broadcast %5 : vector<1x128xf32> to vector<2x128xf32>
    %400 = arith.addf %398, %399 : vector<2x128xf32>
    %401 = arith.addf %397, %400 : vector<2x128xf32>
    %402 = vector.extract_strided_slice %401 {offsets = [0, 0], sizes = [2, 32], strides = [1, 1]} : vector<2x128xf32> to vector<2x32xf32>
    %403 = arith.negf %402 : vector<2x32xf32>
    %404 = math.exp %403 : vector<2x32xf32>
    %cst_115 = arith.constant 1.000000e+00 : f32
    %405 = vector.broadcast %cst_115 : f32 to vector<2x32xf32>
    %406 = arith.addf %405, %404 : vector<2x32xf32>
    %407 = arith.divf %405, %406 : vector<2x32xf32>
    %408 = vector.extract_strided_slice %401 {offsets = [0, 32], sizes = [2, 32], strides = [1, 1]} : vector<2x128xf32> to vector<2x32xf32>
    %409 = arith.negf %408 : vector<2x32xf32>
    %410 = math.exp %409 : vector<2x32xf32>
    %cst_116 = arith.constant 1.000000e+00 : f32
    %411 = vector.broadcast %cst_116 : f32 to vector<2x32xf32>
    %412 = arith.addf %411, %410 : vector<2x32xf32>
    %413 = arith.divf %411, %412 : vector<2x32xf32>
    %414 = vector.extract_strided_slice %401 {offsets = [0, 64], sizes = [2, 32], strides = [1, 1]} : vector<2x128xf32> to vector<2x32xf32>
    %415 = math.tanh %414 : vector<2x32xf32>
    %416 = vector.extract_strided_slice %401 {offsets = [0, 96], sizes = [2, 32], strides = [1, 1]} : vector<2x128xf32> to vector<2x32xf32>
    %417 = arith.negf %416 : vector<2x32xf32>
    %418 = math.exp %417 : vector<2x32xf32>
    %cst_117 = arith.constant 1.000000e+00 : f32
    %419 = vector.broadcast %cst_117 : f32 to vector<2x32xf32>
    %420 = arith.addf %419, %418 : vector<2x32xf32>
    %421 = arith.divf %419, %420 : vector<2x32xf32>
    %422 = arith.mulf %413, %332 : vector<2x32xf32>
    %423 = arith.mulf %407, %415 : vector<2x32xf32>
    %424 = arith.addf %422, %423 : vector<2x32xf32>
    %425 = math.tanh %424 : vector<2x32xf32>
    %426 = arith.mulf %421, %425 : vector<2x32xf32>
    %cst_118 = arith.constant dense<0.000000e+00> : vector<2x32xf32>
    %427 = tpu.matmul %426, %13, %cst_118 {dimension_numbers = #tpu.dot_dimension_numbers<[1], [0], [0], [1], [0, 0, 1, 1], [], []>} : vector<2x32xf32>, vector<32x32xf32>, vector<2x32xf32> -> vector<2x32xf32>
    %cst_119 = arith.constant dense<0.000000e+00> : vector<2x32xf32>
    %428 = tpu.matmul %426, %6, %cst_119 {dimension_numbers = #tpu.dot_dimension_numbers<[1], [0], [0], [1], [0, 0, 1, 1], [], []>} : vector<2x32xf32>, vector<32x32xf32>, vector<2x32xf32> -> vector<2x32xf32>
    %429 = vector.broadcast %7 : vector<1x32xf32> to vector<2x32xf32>
    %430 = arith.addf %428, %429 : vector<2x32xf32>
    %431 = vector.shape_cast %430 : vector<2x32xf32> to vector<2x1x32xf32>
    %432 = vector.broadcast %431 : vector<2x1x32xf32> to vector<2x8x32xf32>
    %433 = arith.addf %432, %19 : vector<2x8x32xf32>
    %434 = math.tanh %433 : vector<2x8x32xf32>
    %435 = vector.broadcast %11 : vector<1x1x32xf32> to vector<2x8x32xf32>
    %436 = arith.mulf %434, %435 : vector<2x8x32xf32>
    %cst_120 = arith.constant dense<0.000000e+00> : vector<2x8xf32>
    %437 = vector.multi_reduction <add>, %436, %cst_120 [2] : vector<2x8x32xf32> to vector<2x8xf32>
    %cst_121 = arith.constant 0.000000e+00 : f32
    %438 = vector.broadcast %cst_121 : f32 to vector<2x8xf32>
    %439 = arith.cmpf oeq, %373, %438 : vector<2x8xf32>
    %440 = vector.broadcast %cst_36 : f32 to vector<2x8xf32>
    %441 = arith.select %439, %440, %437 : vector<2x8xi1>, vector<2x8xf32>
    %cst_122 = arith.constant dense<0xFF800000> : vector<2xf32>
    %442 = vector.multi_reduction <maximumf>, %441, %cst_122 [1] : vector<2x8xf32> to vector<2xf32>
    %443 = vector.shape_cast %442 : vector<2xf32> to vector<2x1xf32>
    %444 = vector.broadcast %443 : vector<2x1xf32> to vector<2x8xf32>
    %445 = arith.subf %441, %444 : vector<2x8xf32>
    %446 = math.exp %445 : vector<2x8xf32>
    %cst_123 = arith.constant dense<0.000000e+00> : vector<2xf32>
    %447 = vector.multi_reduction <add>, %446, %cst_123 [1] : vector<2x8xf32> to vector<2xf32>
    %448 = vector.shape_cast %447 : vector<2xf32> to vector<2x1xf32>
    %449 = vector.broadcast %448 : vector<2x1xf32> to vector<2x8xf32>
    %450 = arith.divf %446, %449 : vector<2x8xf32>
    %cst_124 = arith.constant dense<0xFF800000> : vector<2xf32>
    %451 = vector.multi_reduction <maximumf>, %450, %cst_124 [1] : vector<2x8xf32> to vector<2xf32>
    %452 = vector.shape_cast %451 : vector<2xf32> to vector<2x1xf32>
    %453 = vector.broadcast %452 : vector<2x1xf32> to vector<2x8xf32>
    %454 = arith.cmpf oeq, %450, %453 : vector<2x8xf32>
    %c8_i32_125 = arith.constant 8 : i32
    %455 = vector.broadcast %c8_i32_125 : i32 to vector<2x8xi32>
    %456 = arith.select %454, %21, %455 : vector<2x8xi1>, vector<2x8xi32>
    %cst_126 = arith.constant dense<2147483647> : vector<2xi32>
    %457 = vector.multi_reduction <minsi>, %456, %cst_126 [1] : vector<2x8xi32> to vector<2xi32>
    %458 = vector.shape_cast %457 : vector<2xi32> to vector<2x1xi32>
    %459 = vector.broadcast %458 : vector<2x1xi32> to vector<2x8xi32>
    %460 = arith.cmpi eq, %21, %459 : vector<2x8xi32>
    %461 = arith.extui %460 : vector<2x8xi1> to vector<2x8xi32>
    %462 = arith.sitofp %461 : vector<2x8xi32> to vector<2x8xf32>
    %cst_127 = arith.constant 1.000000e+00 : f32
    %463 = vector.broadcast %cst_127 : f32 to vector<2x8xf32>
    %464 = arith.subf %463, %462 : vector<2x8xf32>
    %465 = arith.mulf %373, %464 : vector<2x8xf32>
    %466 = vector.shape_cast %450 : vector<2x8xf32> to vector<2x1x8xf32>
    %467 = vector.shape_cast %462 : vector<2x8xf32> to vector<2x1x8xf32>
    %468 = tpu.concatenate %466, %467 in 1 : vector<2x1x8xf32>, vector<2x1x8xf32> -> vector<2x2x8xf32>
    "tpu.trace_start"() <{level = 10 : i32, message = "bkl,blf->bkf"}> : () -> ()
    %cst_128 = arith.constant dense<0.000000e+00> : vector<2x2x64xf32>
    %469 = tpu.matmul %468, %20, %cst_128 {dimension_numbers = #tpu.dot_dimension_numbers<[2], [1], [1], [2], [0, 0, 0, 1, 1, 2], [0], [0]>} : vector<2x2x8xf32>, vector<2x8x64xf32>, vector<2x2x64xf32> -> vector<2x2x64xf32>
    "tpu.trace_stop"() : () -> ()
    %470 = vector.extract_strided_slice %469 {offsets = [0, 0, 0], sizes = [2, 1, 32], strides = [1, 1, 1]} : vector<2x2x64xf32> to vector<2x1x32xf32>
    %471 = vector.shape_cast %470 : vector<2x1x32xf32> to vector<2x32xf32>
    %472 = vector.extract_strided_slice %469 {offsets = [0, 1, 32], sizes = [2, 1, 32], strides = [1, 1, 1]} : vector<2x2x64xf32> to vector<2x1x32xf32>
    %473 = vector.shape_cast %472 : vector<2x1x32xf32> to vector<2x32xf32>
    %cst_129 = arith.constant dense<0.000000e+00> : vector<2x32xf32>
    %474 = tpu.matmul %471, %12, %cst_129 {dimension_numbers = #tpu.dot_dimension_numbers<[1], [0], [0], [1], [0, 0, 1, 1], [], []>} : vector<2x32xf32>, vector<32x32xf32>, vector<2x32xf32> -> vector<2x32xf32>
    %475 = arith.addf %474, %427 : vector<2x32xf32>
    %476 = vector.broadcast %14 : vector<1x32xf32> to vector<2x32xf32>
    %477 = arith.addf %475, %476 : vector<2x32xf32>
    %478 = math.tanh %477 : vector<2x32xf32>
    %479 = vector.shape_cast %450 : vector<2x8xf32> to vector<2x1x8xf32>
    %c0_130 = arith.constant 0 : index
    %480 = arith.index_cast %c4_i32 : i32 to index
    %c0_131 = arith.constant 0 : index
    %481 = vector.load %arg17[%c0_130, %480, %c0_131] : memref<2x8x8xf32, #tpu.memory_space<vmem>>, vector<2x1x8xf32>
    tpu.vector_store %arg17[%c0_130, %480, %c0_131], %479 {strides = array<i32>} : memref<2x8x8xf32, #tpu.memory_space<vmem>>, vector<2x1x8xf32>,
    %482 = vector.broadcast %c4_i32 : i32 to vector<2x8xi32>
    %483 = arith.cmpi eq, %21, %482 : vector<2x8xi32>
    %484 = vector.shape_cast %458 : vector<2x1xi32> to vector<2x1xi32>
    %485 = vector.broadcast %484 : vector<2x1xi32> to vector<2x8xi32>
    %486 = arith.select %483, %485, %394 : vector<2x8xi1>, vector<2x8xi32>
    %c5_i32 = arith.constant 5 : i32
    %cst_132 = arith.constant dense<0.000000e+00> : vector<2x128xf32>
    %487 = tpu.matmul %473, %2, %cst_132 {dimension_numbers = #tpu.dot_dimension_numbers<[1], [0], [0], [1], [0, 0, 1, 1], [], []>} : vector<2x32xf32>, vector<32x128xf32>, vector<2x128xf32> -> vector<2x128xf32>
    %488 = vector.broadcast %3 : vector<1x128xf32> to vector<2x128xf32>
    %489 = arith.addf %487, %488 : vector<2x128xf32>
    %cst_133 = arith.constant dense<0.000000e+00> : vector<2x128xf32>
    %490 = tpu.matmul %478, %4, %cst_133 {dimension_numbers = #tpu.dot_dimension_numbers<[1], [0], [0], [1], [0, 0, 1, 1], [], []>} : vector<2x32xf32>, vector<32x128xf32>, vector<2x128xf32> -> vector<2x128xf32>
    %491 = vector.broadcast %5 : vector<1x128xf32> to vector<2x128xf32>
    %492 = arith.addf %490, %491 : vector<2x128xf32>
    %493 = arith.addf %489, %492 : vector<2x128xf32>
    %494 = vector.extract_strided_slice %493 {offsets = [0, 0], sizes = [2, 32], strides = [1, 1]} : vector<2x128xf32> to vector<2x32xf32>
    %495 = arith.negf %494 : vector<2x32xf32>
    %496 = math.exp %495 : vector<2x32xf32>
    %cst_134 = arith.constant 1.000000e+00 : f32
    %497 = vector.broadcast %cst_134 : f32 to vector<2x32xf32>
    %498 = arith.addf %497, %496 : vector<2x32xf32>
    %499 = arith.divf %497, %498 : vector<2x32xf32>
    %500 = vector.extract_strided_slice %493 {offsets = [0, 32], sizes = [2, 32], strides = [1, 1]} : vector<2x128xf32> to vector<2x32xf32>
    %501 = arith.negf %500 : vector<2x32xf32>
    %502 = math.exp %501 : vector<2x32xf32>
    %cst_135 = arith.constant 1.000000e+00 : f32
    %503 = vector.broadcast %cst_135 : f32 to vector<2x32xf32>
    %504 = arith.addf %503, %502 : vector<2x32xf32>
    %505 = arith.divf %503, %504 : vector<2x32xf32>
    %506 = vector.extract_strided_slice %493 {offsets = [0, 64], sizes = [2, 32], strides = [1, 1]} : vector<2x128xf32> to vector<2x32xf32>
    %507 = math.tanh %506 : vector<2x32xf32>
    %508 = vector.extract_strided_slice %493 {offsets = [0, 96], sizes = [2, 32], strides = [1, 1]} : vector<2x128xf32> to vector<2x32xf32>
    %509 = arith.negf %508 : vector<2x32xf32>
    %510 = math.exp %509 : vector<2x32xf32>
    %cst_136 = arith.constant 1.000000e+00 : f32
    %511 = vector.broadcast %cst_136 : f32 to vector<2x32xf32>
    %512 = arith.addf %511, %510 : vector<2x32xf32>
    %513 = arith.divf %511, %512 : vector<2x32xf32>
    %514 = arith.mulf %505, %424 : vector<2x32xf32>
    %515 = arith.mulf %499, %507 : vector<2x32xf32>
    %516 = arith.addf %514, %515 : vector<2x32xf32>
    %517 = math.tanh %516 : vector<2x32xf32>
    %518 = arith.mulf %513, %517 : vector<2x32xf32>
    %cst_137 = arith.constant dense<0.000000e+00> : vector<2x32xf32>
    %519 = tpu.matmul %518, %13, %cst_137 {dimension_numbers = #tpu.dot_dimension_numbers<[1], [0], [0], [1], [0, 0, 1, 1], [], []>} : vector<2x32xf32>, vector<32x32xf32>, vector<2x32xf32> -> vector<2x32xf32>
    %cst_138 = arith.constant dense<0.000000e+00> : vector<2x32xf32>
    %520 = tpu.matmul %518, %6, %cst_138 {dimension_numbers = #tpu.dot_dimension_numbers<[1], [0], [0], [1], [0, 0, 1, 1], [], []>} : vector<2x32xf32>, vector<32x32xf32>, vector<2x32xf32> -> vector<2x32xf32>
    %521 = vector.broadcast %7 : vector<1x32xf32> to vector<2x32xf32>
    %522 = arith.addf %520, %521 : vector<2x32xf32>
    %523 = vector.shape_cast %522 : vector<2x32xf32> to vector<2x1x32xf32>
    %524 = vector.broadcast %523 : vector<2x1x32xf32> to vector<2x8x32xf32>
    %525 = arith.addf %524, %19 : vector<2x8x32xf32>
    %526 = math.tanh %525 : vector<2x8x32xf32>
    %527 = vector.broadcast %11 : vector<1x1x32xf32> to vector<2x8x32xf32>
    %528 = arith.mulf %526, %527 : vector<2x8x32xf32>
    %cst_139 = arith.constant dense<0.000000e+00> : vector<2x8xf32>
    %529 = vector.multi_reduction <add>, %528, %cst_139 [2] : vector<2x8x32xf32> to vector<2x8xf32>
    %cst_140 = arith.constant 0.000000e+00 : f32
    %530 = vector.broadcast %cst_140 : f32 to vector<2x8xf32>
    %531 = arith.cmpf oeq, %465, %530 : vector<2x8xf32>
    %532 = vector.broadcast %cst_36 : f32 to vector<2x8xf32>
    %533 = arith.select %531, %532, %529 : vector<2x8xi1>, vector<2x8xf32>
    %cst_141 = arith.constant dense<0xFF800000> : vector<2xf32>
    %534 = vector.multi_reduction <maximumf>, %533, %cst_141 [1] : vector<2x8xf32> to vector<2xf32>
    %535 = vector.shape_cast %534 : vector<2xf32> to vector<2x1xf32>
    %536 = vector.broadcast %535 : vector<2x1xf32> to vector<2x8xf32>
    %537 = arith.subf %533, %536 : vector<2x8xf32>
    %538 = math.exp %537 : vector<2x8xf32>
    %cst_142 = arith.constant dense<0.000000e+00> : vector<2xf32>
    %539 = vector.multi_reduction <add>, %538, %cst_142 [1] : vector<2x8xf32> to vector<2xf32>
    %540 = vector.shape_cast %539 : vector<2xf32> to vector<2x1xf32>
    %541 = vector.broadcast %540 : vector<2x1xf32> to vector<2x8xf32>
    %542 = arith.divf %538, %541 : vector<2x8xf32>
    %cst_143 = arith.constant dense<0xFF800000> : vector<2xf32>
    %543 = vector.multi_reduction <maximumf>, %542, %cst_143 [1] : vector<2x8xf32> to vector<2xf32>
    %544 = vector.shape_cast %543 : vector<2xf32> to vector<2x1xf32>
    %545 = vector.broadcast %544 : vector<2x1xf32> to vector<2x8xf32>
    %546 = arith.cmpf oeq, %542, %545 : vector<2x8xf32>
    %c8_i32_144 = arith.constant 8 : i32
    %547 = vector.broadcast %c8_i32_144 : i32 to vector<2x8xi32>
    %548 = arith.select %546, %21, %547 : vector<2x8xi1>, vector<2x8xi32>
    %cst_145 = arith.constant dense<2147483647> : vector<2xi32>
    %549 = vector.multi_reduction <minsi>, %548, %cst_145 [1] : vector<2x8xi32> to vector<2xi32>
    %550 = vector.shape_cast %549 : vector<2xi32> to vector<2x1xi32>
    %551 = vector.broadcast %550 : vector<2x1xi32> to vector<2x8xi32>
    %552 = arith.cmpi eq, %21, %551 : vector<2x8xi32>
    %553 = arith.extui %552 : vector<2x8xi1> to vector<2x8xi32>
    %554 = arith.sitofp %553 : vector<2x8xi32> to vector<2x8xf32>
    %cst_146 = arith.constant 1.000000e+00 : f32
    %555 = vector.broadcast %cst_146 : f32 to vector<2x8xf32>
    %556 = arith.subf %555, %554 : vector<2x8xf32>
    %557 = arith.mulf %465, %556 : vector<2x8xf32>
    %558 = vector.shape_cast %542 : vector<2x8xf32> to vector<2x1x8xf32>
    %559 = vector.shape_cast %554 : vector<2x8xf32> to vector<2x1x8xf32>
    %560 = tpu.concatenate %558, %559 in 1 : vector<2x1x8xf32>, vector<2x1x8xf32> -> vector<2x2x8xf32>
    "tpu.trace_start"() <{level = 10 : i32, message = "bkl,blf->bkf"}> : () -> ()
    %cst_147 = arith.constant dense<0.000000e+00> : vector<2x2x64xf32>
    %561 = tpu.matmul %560, %20, %cst_147 {dimension_numbers = #tpu.dot_dimension_numbers<[2], [1], [1], [2], [0, 0, 0, 1, 1, 2], [0], [0]>} : vector<2x2x8xf32>, vector<2x8x64xf32>, vector<2x2x64xf32> -> vector<2x2x64xf32>
    "tpu.trace_stop"() : () -> ()
    %562 = vector.extract_strided_slice %561 {offsets = [0, 0, 0], sizes = [2, 1, 32], strides = [1, 1, 1]} : vector<2x2x64xf32> to vector<2x1x32xf32>
    %563 = vector.shape_cast %562 : vector<2x1x32xf32> to vector<2x32xf32>
    %564 = vector.extract_strided_slice %561 {offsets = [0, 1, 32], sizes = [2, 1, 32], strides = [1, 1, 1]} : vector<2x2x64xf32> to vector<2x1x32xf32>
    %565 = vector.shape_cast %564 : vector<2x1x32xf32> to vector<2x32xf32>
    %cst_148 = arith.constant dense<0.000000e+00> : vector<2x32xf32>
    %566 = tpu.matmul %563, %12, %cst_148 {dimension_numbers = #tpu.dot_dimension_numbers<[1], [0], [0], [1], [0, 0, 1, 1], [], []>} : vector<2x32xf32>, vector<32x32xf32>, vector<2x32xf32> -> vector<2x32xf32>
    %567 = arith.addf %566, %519 : vector<2x32xf32>
    %568 = vector.broadcast %14 : vector<1x32xf32> to vector<2x32xf32>
    %569 = arith.addf %567, %568 : vector<2x32xf32>
    %570 = math.tanh %569 : vector<2x32xf32>
    %571 = vector.shape_cast %542 : vector<2x8xf32> to vector<2x1x8xf32>
    %c0_149 = arith.constant 0 : index
    %572 = arith.index_cast %c5_i32 : i32 to index
    %c0_150 = arith.constant 0 : index
    %573 = vector.load %arg17[%c0_149, %572, %c0_150] : memref<2x8x8xf32, #tpu.memory_space<vmem>>, vector<2x1x8xf32>
    tpu.vector_store %arg17[%c0_149, %572, %c0_150], %571 {strides = array<i32>} : memref<2x8x8xf32, #tpu.memory_space<vmem>>, vector<2x1x8xf32>,
    %574 = vector.broadcast %c5_i32 : i32 to vector<2x8xi32>
    %575 = arith.cmpi eq, %21, %574 : vector<2x8xi32>
    %576 = vector.shape_cast %550 : vector<2x1xi32> to vector<2x1xi32>
    %577 = vector.broadcast %576 : vector<2x1xi32> to vector<2x8xi32>
    %578 = arith.select %575, %577, %486 : vector<2x8xi1>, vector<2x8xi32>
    %c6_i32 = arith.constant 6 : i32
    %cst_151 = arith.constant dense<0.000000e+00> : vector<2x128xf32>
    %579 = tpu.matmul %565, %2, %cst_151 {dimension_numbers = #tpu.dot_dimension_numbers<[1], [0], [0], [1], [0, 0, 1, 1], [], []>} : vector<2x32xf32>, vector<32x128xf32>, vector<2x128xf32> -> vector<2x128xf32>
    %580 = vector.broadcast %3 : vector<1x128xf32> to vector<2x128xf32>
    %581 = arith.addf %579, %580 : vector<2x128xf32>
    %cst_152 = arith.constant dense<0.000000e+00> : vector<2x128xf32>
    %582 = tpu.matmul %570, %4, %cst_152 {dimension_numbers = #tpu.dot_dimension_numbers<[1], [0], [0], [1], [0, 0, 1, 1], [], []>} : vector<2x32xf32>, vector<32x128xf32>, vector<2x128xf32> -> vector<2x128xf32>
    %583 = vector.broadcast %5 : vector<1x128xf32> to vector<2x128xf32>
    %584 = arith.addf %582, %583 : vector<2x128xf32>
    %585 = arith.addf %581, %584 : vector<2x128xf32>
    %586 = vector.extract_strided_slice %585 {offsets = [0, 0], sizes = [2, 32], strides = [1, 1]} : vector<2x128xf32> to vector<2x32xf32>
    %587 = arith.negf %586 : vector<2x32xf32>
    %588 = math.exp %587 : vector<2x32xf32>
    %cst_153 = arith.constant 1.000000e+00 : f32
    %589 = vector.broadcast %cst_153 : f32 to vector<2x32xf32>
    %590 = arith.addf %589, %588 : vector<2x32xf32>
    %591 = arith.divf %589, %590 : vector<2x32xf32>
    %592 = vector.extract_strided_slice %585 {offsets = [0, 32], sizes = [2, 32], strides = [1, 1]} : vector<2x128xf32> to vector<2x32xf32>
    %593 = arith.negf %592 : vector<2x32xf32>
    %594 = math.exp %593 : vector<2x32xf32>
    %cst_154 = arith.constant 1.000000e+00 : f32
    %595 = vector.broadcast %cst_154 : f32 to vector<2x32xf32>
    %596 = arith.addf %595, %594 : vector<2x32xf32>
    %597 = arith.divf %595, %596 : vector<2x32xf32>
    %598 = vector.extract_strided_slice %585 {offsets = [0, 64], sizes = [2, 32], strides = [1, 1]} : vector<2x128xf32> to vector<2x32xf32>
    %599 = math.tanh %598 : vector<2x32xf32>
    %600 = vector.extract_strided_slice %585 {offsets = [0, 96], sizes = [2, 32], strides = [1, 1]} : vector<2x128xf32> to vector<2x32xf32>
    %601 = arith.negf %600 : vector<2x32xf32>
    %602 = math.exp %601 : vector<2x32xf32>
    %cst_155 = arith.constant 1.000000e+00 : f32
    %603 = vector.broadcast %cst_155 : f32 to vector<2x32xf32>
    %604 = arith.addf %603, %602 : vector<2x32xf32>
    %605 = arith.divf %603, %604 : vector<2x32xf32>
    %606 = arith.mulf %597, %516 : vector<2x32xf32>
    %607 = arith.mulf %591, %599 : vector<2x32xf32>
    %608 = arith.addf %606, %607 : vector<2x32xf32>
    %609 = math.tanh %608 : vector<2x32xf32>
    %610 = arith.mulf %605, %609 : vector<2x32xf32>
    %cst_156 = arith.constant dense<0.000000e+00> : vector<2x32xf32>
    %611 = tpu.matmul %610, %13, %cst_156 {dimension_numbers = #tpu.dot_dimension_numbers<[1], [0], [0], [1], [0, 0, 1, 1], [], []>} : vector<2x32xf32>, vector<32x32xf32>, vector<2x32xf32> -> vector<2x32xf32>
    %cst_157 = arith.constant dense<0.000000e+00> : vector<2x32xf32>
    %612 = tpu.matmul %610, %6, %cst_157 {dimension_numbers = #tpu.dot_dimension_numbers<[1], [0], [0], [1], [0, 0, 1, 1], [], []>} : vector<2x32xf32>, vector<32x32xf32>, vector<2x32xf32> -> vector<2x32xf32>
    %613 = vector.broadcast %7 : vector<1x32xf32> to vector<2x32xf32>
    %614 = arith.addf %612, %613 : vector<2x32xf32>
    %615 = vector.shape_cast %614 : vector<2x32xf32> to vector<2x1x32xf32>
    %616 = vector.broadcast %615 : vector<2x1x32xf32> to vector<2x8x32xf32>
    %617 = arith.addf %616, %19 : vector<2x8x32xf32>
    %618 = math.tanh %617 : vector<2x8x32xf32>
    %619 = vector.broadcast %11 : vector<1x1x32xf32> to vector<2x8x32xf32>
    %620 = arith.mulf %618, %619 : vector<2x8x32xf32>
    %cst_158 = arith.constant dense<0.000000e+00> : vector<2x8xf32>
    %621 = vector.multi_reduction <add>, %620, %cst_158 [2] : vector<2x8x32xf32> to vector<2x8xf32>
    %cst_159 = arith.constant 0.000000e+00 : f32
    %622 = vector.broadcast %cst_159 : f32 to vector<2x8xf32>
    %623 = arith.cmpf oeq, %557, %622 : vector<2x8xf32>
    %624 = vector.broadcast %cst_36 : f32 to vector<2x8xf32>
    %625 = arith.select %623, %624, %621 : vector<2x8xi1>, vector<2x8xf32>
    %cst_160 = arith.constant dense<0xFF800000> : vector<2xf32>
    %626 = vector.multi_reduction <maximumf>, %625, %cst_160 [1] : vector<2x8xf32> to vector<2xf32>
    %627 = vector.shape_cast %626 : vector<2xf32> to vector<2x1xf32>
    %628 = vector.broadcast %627 : vector<2x1xf32> to vector<2x8xf32>
    %629 = arith.subf %625, %628 : vector<2x8xf32>
    %630 = math.exp %629 : vector<2x8xf32>
    %cst_161 = arith.constant dense<0.000000e+00> : vector<2xf32>
    %631 = vector.multi_reduction <add>, %630, %cst_161 [1] : vector<2x8xf32> to vector<2xf32>
    %632 = vector.shape_cast %631 : vector<2xf32> to vector<2x1xf32>
    %633 = vector.broadcast %632 : vector<2x1xf32> to vector<2x8xf32>
    %634 = arith.divf %630, %633 : vector<2x8xf32>
    %cst_162 = arith.constant dense<0xFF800000> : vector<2xf32>
    %635 = vector.multi_reduction <maximumf>, %634, %cst_162 [1] : vector<2x8xf32> to vector<2xf32>
    %636 = vector.shape_cast %635 : vector<2xf32> to vector<2x1xf32>
    %637 = vector.broadcast %636 : vector<2x1xf32> to vector<2x8xf32>
    %638 = arith.cmpf oeq, %634, %637 : vector<2x8xf32>
    %c8_i32_163 = arith.constant 8 : i32
    %639 = vector.broadcast %c8_i32_163 : i32 to vector<2x8xi32>
    %640 = arith.select %638, %21, %639 : vector<2x8xi1>, vector<2x8xi32>
    %cst_164 = arith.constant dense<2147483647> : vector<2xi32>
    %641 = vector.multi_reduction <minsi>, %640, %cst_164 [1] : vector<2x8xi32> to vector<2xi32>
    %642 = vector.shape_cast %641 : vector<2xi32> to vector<2x1xi32>
    %643 = vector.broadcast %642 : vector<2x1xi32> to vector<2x8xi32>
    %644 = arith.cmpi eq, %21, %643 : vector<2x8xi32>
    %645 = arith.extui %644 : vector<2x8xi1> to vector<2x8xi32>
    %646 = arith.sitofp %645 : vector<2x8xi32> to vector<2x8xf32>
    %cst_165 = arith.constant 1.000000e+00 : f32
    %647 = vector.broadcast %cst_165 : f32 to vector<2x8xf32>
    %648 = arith.subf %647, %646 : vector<2x8xf32>
    %649 = arith.mulf %557, %648 : vector<2x8xf32>
    %650 = vector.shape_cast %634 : vector<2x8xf32> to vector<2x1x8xf32>
    %651 = vector.shape_cast %646 : vector<2x8xf32> to vector<2x1x8xf32>
    %652 = tpu.concatenate %650, %651 in 1 : vector<2x1x8xf32>, vector<2x1x8xf32> -> vector<2x2x8xf32>
    "tpu.trace_start"() <{level = 10 : i32, message = "bkl,blf->bkf"}> : () -> ()
    %cst_166 = arith.constant dense<0.000000e+00> : vector<2x2x64xf32>
    %653 = tpu.matmul %652, %20, %cst_166 {dimension_numbers = #tpu.dot_dimension_numbers<[2], [1], [1], [2], [0, 0, 0, 1, 1, 2], [0], [0]>} : vector<2x2x8xf32>, vector<2x8x64xf32>, vector<2x2x64xf32> -> vector<2x2x64xf32>
    "tpu.trace_stop"() : () -> ()
    %654 = vector.extract_strided_slice %653 {offsets = [0, 0, 0], sizes = [2, 1, 32], strides = [1, 1, 1]} : vector<2x2x64xf32> to vector<2x1x32xf32>
    %655 = vector.shape_cast %654 : vector<2x1x32xf32> to vector<2x32xf32>
    %656 = vector.extract_strided_slice %653 {offsets = [0, 1, 32], sizes = [2, 1, 32], strides = [1, 1, 1]} : vector<2x2x64xf32> to vector<2x1x32xf32>
    %657 = vector.shape_cast %656 : vector<2x1x32xf32> to vector<2x32xf32>
    %cst_167 = arith.constant dense<0.000000e+00> : vector<2x32xf32>
    %658 = tpu.matmul %655, %12, %cst_167 {dimension_numbers = #tpu.dot_dimension_numbers<[1], [0], [0], [1], [0, 0, 1, 1], [], []>} : vector<2x32xf32>, vector<32x32xf32>, vector<2x32xf32> -> vector<2x32xf32>
    %659 = arith.addf %658, %611 : vector<2x32xf32>
    %660 = vector.broadcast %14 : vector<1x32xf32> to vector<2x32xf32>
    %661 = arith.addf %659, %660 : vector<2x32xf32>
    %662 = math.tanh %661 : vector<2x32xf32>
    %663 = vector.shape_cast %634 : vector<2x8xf32> to vector<2x1x8xf32>
    %c0_168 = arith.constant 0 : index
    %664 = arith.index_cast %c6_i32 : i32 to index
    %c0_169 = arith.constant 0 : index
    %665 = vector.load %arg17[%c0_168, %664, %c0_169] : memref<2x8x8xf32, #tpu.memory_space<vmem>>, vector<2x1x8xf32>
    tpu.vector_store %arg17[%c0_168, %664, %c0_169], %663 {strides = array<i32>} : memref<2x8x8xf32, #tpu.memory_space<vmem>>, vector<2x1x8xf32>,
    %666 = vector.broadcast %c6_i32 : i32 to vector<2x8xi32>
    %667 = arith.cmpi eq, %21, %666 : vector<2x8xi32>
    %668 = vector.shape_cast %642 : vector<2x1xi32> to vector<2x1xi32>
    %669 = vector.broadcast %668 : vector<2x1xi32> to vector<2x8xi32>
    %670 = arith.select %667, %669, %578 : vector<2x8xi1>, vector<2x8xi32>
    %c7_i32 = arith.constant 7 : i32
    %cst_170 = arith.constant dense<0.000000e+00> : vector<2x128xf32>
    %671 = tpu.matmul %657, %2, %cst_170 {dimension_numbers = #tpu.dot_dimension_numbers<[1], [0], [0], [1], [0, 0, 1, 1], [], []>} : vector<2x32xf32>, vector<32x128xf32>, vector<2x128xf32> -> vector<2x128xf32>
    %672 = vector.broadcast %3 : vector<1x128xf32> to vector<2x128xf32>
    %673 = arith.addf %671, %672 : vector<2x128xf32>
    %cst_171 = arith.constant dense<0.000000e+00> : vector<2x128xf32>
    %674 = tpu.matmul %662, %4, %cst_171 {dimension_numbers = #tpu.dot_dimension_numbers<[1], [0], [0], [1], [0, 0, 1, 1], [], []>} : vector<2x32xf32>, vector<32x128xf32>, vector<2x128xf32> -> vector<2x128xf32>
    %675 = vector.broadcast %5 : vector<1x128xf32> to vector<2x128xf32>
    %676 = arith.addf %674, %675 : vector<2x128xf32>
    %677 = arith.addf %673, %676 : vector<2x128xf32>
    %678 = vector.extract_strided_slice %677 {offsets = [0, 0], sizes = [2, 32], strides = [1, 1]} : vector<2x128xf32> to vector<2x32xf32>
    %679 = arith.negf %678 : vector<2x32xf32>
    %680 = math.exp %679 : vector<2x32xf32>
    %cst_172 = arith.constant 1.000000e+00 : f32
    %681 = vector.broadcast %cst_172 : f32 to vector<2x32xf32>
    %682 = arith.addf %681, %680 : vector<2x32xf32>
    %683 = arith.divf %681, %682 : vector<2x32xf32>
    %684 = vector.extract_strided_slice %677 {offsets = [0, 32], sizes = [2, 32], strides = [1, 1]} : vector<2x128xf32> to vector<2x32xf32>
    %685 = arith.negf %684 : vector<2x32xf32>
    %686 = math.exp %685 : vector<2x32xf32>
    %cst_173 = arith.constant 1.000000e+00 : f32
    %687 = vector.broadcast %cst_173 : f32 to vector<2x32xf32>
    %688 = arith.addf %687, %686 : vector<2x32xf32>
    %689 = arith.divf %687, %688 : vector<2x32xf32>
    %690 = vector.extract_strided_slice %677 {offsets = [0, 64], sizes = [2, 32], strides = [1, 1]} : vector<2x128xf32> to vector<2x32xf32>
    %691 = math.tanh %690 : vector<2x32xf32>
    %692 = vector.extract_strided_slice %677 {offsets = [0, 96], sizes = [2, 32], strides = [1, 1]} : vector<2x128xf32> to vector<2x32xf32>
    %693 = arith.negf %692 : vector<2x32xf32>
    %694 = math.exp %693 : vector<2x32xf32>
    %cst_174 = arith.constant 1.000000e+00 : f32
    %695 = vector.broadcast %cst_174 : f32 to vector<2x32xf32>
    %696 = arith.addf %695, %694 : vector<2x32xf32>
    %697 = arith.divf %695, %696 : vector<2x32xf32>
    %698 = arith.mulf %689, %608 : vector<2x32xf32>
    %699 = arith.mulf %683, %691 : vector<2x32xf32>
    %700 = arith.addf %698, %699 : vector<2x32xf32>
    %701 = math.tanh %700 : vector<2x32xf32>
    %702 = arith.mulf %697, %701 : vector<2x32xf32>
    %cst_175 = arith.constant dense<0.000000e+00> : vector<2x32xf32>
    %703 = tpu.matmul %702, %13, %cst_175 {dimension_numbers = #tpu.dot_dimension_numbers<[1], [0], [0], [1], [0, 0, 1, 1], [], []>} : vector<2x32xf32>, vector<32x32xf32>, vector<2x32xf32> -> vector<2x32xf32>
    %cst_176 = arith.constant dense<0.000000e+00> : vector<2x32xf32>
    %704 = tpu.matmul %702, %6, %cst_176 {dimension_numbers = #tpu.dot_dimension_numbers<[1], [0], [0], [1], [0, 0, 1, 1], [], []>} : vector<2x32xf32>, vector<32x32xf32>, vector<2x32xf32> -> vector<2x32xf32>
    %705 = vector.broadcast %7 : vector<1x32xf32> to vector<2x32xf32>
    %706 = arith.addf %704, %705 : vector<2x32xf32>
    %707 = vector.shape_cast %706 : vector<2x32xf32> to vector<2x1x32xf32>
    %708 = vector.broadcast %707 : vector<2x1x32xf32> to vector<2x8x32xf32>
    %709 = arith.addf %708, %19 : vector<2x8x32xf32>
    %710 = math.tanh %709 : vector<2x8x32xf32>
    %711 = vector.broadcast %11 : vector<1x1x32xf32> to vector<2x8x32xf32>
    %712 = arith.mulf %710, %711 : vector<2x8x32xf32>
    %cst_177 = arith.constant dense<0.000000e+00> : vector<2x8xf32>
    %713 = vector.multi_reduction <add>, %712, %cst_177 [2] : vector<2x8x32xf32> to vector<2x8xf32>
    %cst_178 = arith.constant 0.000000e+00 : f32
    %714 = vector.broadcast %cst_178 : f32 to vector<2x8xf32>
    %715 = arith.cmpf oeq, %649, %714 : vector<2x8xf32>
    %716 = vector.broadcast %cst_36 : f32 to vector<2x8xf32>
    %717 = arith.select %715, %716, %713 : vector<2x8xi1>, vector<2x8xf32>
    %cst_179 = arith.constant dense<0xFF800000> : vector<2xf32>
    %718 = vector.multi_reduction <maximumf>, %717, %cst_179 [1] : vector<2x8xf32> to vector<2xf32>
    %719 = vector.shape_cast %718 : vector<2xf32> to vector<2x1xf32>
    %720 = vector.broadcast %719 : vector<2x1xf32> to vector<2x8xf32>
    %721 = arith.subf %717, %720 : vector<2x8xf32>
    %722 = math.exp %721 : vector<2x8xf32>
    %cst_180 = arith.constant dense<0.000000e+00> : vector<2xf32>
    %723 = vector.multi_reduction <add>, %722, %cst_180 [1] : vector<2x8xf32> to vector<2xf32>
    %724 = vector.shape_cast %723 : vector<2xf32> to vector<2x1xf32>
    %725 = vector.broadcast %724 : vector<2x1xf32> to vector<2x8xf32>
    %726 = arith.divf %722, %725 : vector<2x8xf32>
    %cst_181 = arith.constant dense<0xFF800000> : vector<2xf32>
    %727 = vector.multi_reduction <maximumf>, %726, %cst_181 [1] : vector<2x8xf32> to vector<2xf32>
    %728 = vector.shape_cast %727 : vector<2xf32> to vector<2x1xf32>
    %729 = vector.broadcast %728 : vector<2x1xf32> to vector<2x8xf32>
    %730 = arith.cmpf oeq, %726, %729 : vector<2x8xf32>
    %c8_i32_182 = arith.constant 8 : i32
    %731 = vector.broadcast %c8_i32_182 : i32 to vector<2x8xi32>
    %732 = arith.select %730, %21, %731 : vector<2x8xi1>, vector<2x8xi32>
    %cst_183 = arith.constant dense<2147483647> : vector<2xi32>
    %733 = vector.multi_reduction <minsi>, %732, %cst_183 [1] : vector<2x8xi32> to vector<2xi32>
    %734 = vector.shape_cast %733 : vector<2xi32> to vector<2x1xi32>
    %735 = vector.broadcast %734 : vector<2x1xi32> to vector<2x8xi32>
    %736 = arith.cmpi eq, %21, %735 : vector<2x8xi32>
    %737 = arith.extui %736 : vector<2x8xi1> to vector<2x8xi32>
    %738 = arith.sitofp %737 : vector<2x8xi32> to vector<2x8xf32>
    %cst_184 = arith.constant 1.000000e+00 : f32
    %739 = vector.broadcast %cst_184 : f32 to vector<2x8xf32>
    %740 = arith.subf %739, %738 : vector<2x8xf32>
    %741 = arith.mulf %649, %740 : vector<2x8xf32>
    %742 = vector.shape_cast %726 : vector<2x8xf32> to vector<2x1x8xf32>
    %743 = vector.shape_cast %738 : vector<2x8xf32> to vector<2x1x8xf32>
    %744 = tpu.concatenate %742, %743 in 1 : vector<2x1x8xf32>, vector<2x1x8xf32> -> vector<2x2x8xf32>
    "tpu.trace_start"() <{level = 10 : i32, message = "bkl,blf->bkf"}> : () -> ()
    %cst_185 = arith.constant dense<0.000000e+00> : vector<2x2x64xf32>
    %745 = tpu.matmul %744, %20, %cst_185 {dimension_numbers = #tpu.dot_dimension_numbers<[2], [1], [1], [2], [0, 0, 0, 1, 1, 2], [0], [0]>} : vector<2x2x8xf32>, vector<2x8x64xf32>, vector<2x2x64xf32> -> vector<2x2x64xf32>
    "tpu.trace_stop"() : () -> ()
    %746 = vector.extract_strided_slice %745 {offsets = [0, 0, 0], sizes = [2, 1, 32], strides = [1, 1, 1]} : vector<2x2x64xf32> to vector<2x1x32xf32>
    %747 = vector.shape_cast %746 : vector<2x1x32xf32> to vector<2x32xf32>
    %748 = vector.extract_strided_slice %745 {offsets = [0, 1, 32], sizes = [2, 1, 32], strides = [1, 1, 1]} : vector<2x2x64xf32> to vector<2x1x32xf32>
    %749 = vector.shape_cast %748 : vector<2x1x32xf32> to vector<2x32xf32>
    %cst_186 = arith.constant dense<0.000000e+00> : vector<2x32xf32>
    %750 = tpu.matmul %747, %12, %cst_186 {dimension_numbers = #tpu.dot_dimension_numbers<[1], [0], [0], [1], [0, 0, 1, 1], [], []>} : vector<2x32xf32>, vector<32x32xf32>, vector<2x32xf32> -> vector<2x32xf32>
    %751 = arith.addf %750, %703 : vector<2x32xf32>
    %752 = vector.broadcast %14 : vector<1x32xf32> to vector<2x32xf32>
    %753 = arith.addf %751, %752 : vector<2x32xf32>
    %754 = math.tanh %753 : vector<2x32xf32>
    %755 = vector.shape_cast %726 : vector<2x8xf32> to vector<2x1x8xf32>
    %c0_187 = arith.constant 0 : index
    %756 = arith.index_cast %c7_i32 : i32 to index
    %c0_188 = arith.constant 0 : index
    %757 = vector.load %arg17[%c0_187, %756, %c0_188] : memref<2x8x8xf32, #tpu.memory_space<vmem>>, vector<2x1x8xf32>
    tpu.vector_store %arg17[%c0_187, %756, %c0_188], %755 {strides = array<i32>} : memref<2x8x8xf32, #tpu.memory_space<vmem>>, vector<2x1x8xf32>,
    %758 = vector.broadcast %c7_i32 : i32 to vector<2x8xi32>
    %759 = arith.cmpi eq, %21, %758 : vector<2x8xi32>
    %760 = vector.shape_cast %734 : vector<2x1xi32> to vector<2x1xi32>
    %761 = vector.broadcast %760 : vector<2x1xi32> to vector<2x8xi32>
    %762 = arith.select %759, %761, %670 : vector<2x8xi1>, vector<2x8xi32>
    %c8_i32_189 = arith.constant 8 : i32
    %c0_190 = arith.constant 0 : index
    %c0_191 = arith.constant 0 : index
    %763 = vector.load %arg18[%c0_190, %c0_191] : memref<2x8xi32, #tpu.memory_space<vmem>>, vector<2x8xi32>
    tpu.vector_store %arg18[%c0_190, %c0_191], %762 {strides = array<i32>} : memref<2x8xi32, #tpu.memory_space<vmem>>, vector<2x8xi32>,
    %c0_192 = arith.constant 0 : index
    %c0_193 = arith.constant 0 : index
    %764 = vector.load %arg19[%c0_192, %c0_193] : memref<2x32xf32, #tpu.memory_space<vmem>>, vector<2x32xf32>
    tpu.vector_store %arg19[%c0_192, %c0_193], %754 {strides = array<i32>} : memref<2x32xf32, #tpu.memory_space<vmem>>, vector<2x32xf32>,
    %c0_194 = arith.constant 0 : index
    %c0_195 = arith.constant 0 : index
    %765 = vector.load %arg20[%c0_194, %c0_195] : memref<2x32xf32, #tpu.memory_space<vmem>>, vector<2x32xf32>
    tpu.vector_store %arg20[%c0_194, %c0_195], %700 {strides = array<i32>} : memref<2x32xf32, #tpu.memory_space<vmem>>, vector<2x32xf32>,
    return
  }
}

</mosaic_0001>

<bundles_post_ra>
// kernel: tpu_custom_call.1
= control target key start
LH: loop header
LB: loop body
LE: loop exit
PB: predicated region body
PF: predicated region fallthrough
CT: control target
= control target key end

     0   :  { %s8896_s0 = inlined_call_operand.hbm [shape: f32[2,8,32], index: 0, kind: input, shape index: {}]   ;;  %s8897_s1 = inlined_call_operand.hbm [shape: f32[2,32], index: 1, kind: input, shape index: {}]   ;;  %s8898_s2 = inlined_call_operand.vmem [shape: f32[2,32], index: 2, kind: input, shape index: {}]   ;;  %s8899_s3 = inlined_call_operand.vmem [shape: f32[2,32], index: 3, kind: input, shape index: {}]   ;;  %s8900_s4 = inlined_call_operand.hbm [shape: f32[2,8,32], index: 4, kind: input, shape index: {}]   ;;  %s8901_s5 = inlined_call_operand.hbm [shape: f32[32,128], index: 5, kind: input, shape index: {}]   ;;  %s8902_s6 = inlined_call_operand.vmem [shape: f32[1,128], index: 6, kind: input, shape index: {}]   ;;  %s8903_s7 = inlined_call_operand.hbm [shape: f32[32,128], index: 7, kind: input, shape index: {}]   ;;  %s8904_s8 = inlined_call_operand.vmem [shape: f32[1,128], index: 8, kind: input, shape index: {}]   ;;  %s8905_s9 = inlined_call_operand.hbm [shape: f32[32,32], index: 9, kind: input, shape index: {}]   ;;  %s8906_s10 = inlined_call_operand.vmem [shape: f32[1,32], index: 10, kind: input, shape index: {}]   ;;  %s8907_s11 = inlined_call_operand.hbm [shape: f32[32,32], index: 11, kind: input, shape index: {}]   ;;  %s8908_s12 = inlined_call_operand.vmem [shape: f32[1,32], index: 12, kind: input, shape index: {}]   ;;  %s8909_s13 = inlined_call_operand.vmem [shape: f32[1,32], index: 13, kind: input, shape index: {}]   ;;  %s8910_s14 = inlined_call_operand.hbm [shape: f32[32,32], index: 14, kind: input, shape index: {}]   ;;  %s8911_s15 = inlined_call_operand.hbm [shape: f32[32,32], index: 15, kind: input, shape index: {}]   ;;  %s8912_s16 = inlined_call_operand.vmem [shape: f32[1,32], index: 16, kind: input, shape index: {}]   ;;  %s8913_s17 = inlined_call_operand.hbm [shape: f32[2,8,8], index: 17, kind: output, shape index: {0}]   ;;  %s8914_s18 = inlined_call_operand.hbm [shape: s32[2,8], index: 18, kind: output, shape index: {1}]   ;;  %s8915_s19 = inlined_call_operand.hbm [shape: f32[2,32], index: 19, kind: output, shape index: {2}]   ;;  %s8916_s20 = inlined_call_operand.hbm [shape: f32[2,32], index: 20, kind: output, shape index: {3}]  }
   0x1   :  { %8917 = sst [smem:[#allocation31_spill]] %s8896_s0 }
   0x2   :  { %8918 = sst [smem:[#allocation32_spill]] %s8897_s1 }
   0x3   :  { %8919 = sst [smem:[#allocation33_spill]] %s8898_s2 }
   0x4   :  { %8920 = sst [smem:[#allocation34_spill]] %s8899_s3 }
   0x5   :  { %8921 = sst [smem:[#allocation35_spill]] %s8900_s4 }
   0x6   :  { %26 = vsyncpa [#allocation3], 0 }
   0x7   :  { %27 = vsyncpa [#allocation6], 0 }
   0x8   :  { %28 = vsyncpa [#allocation9], 0 }
   0x9   :  { %29 = vsyncpa [#allocation12], 0 }
   0xa   :  { %30 = vsyncpa [#allocation15], 0 }
   0xb   :  { %31 = vsyncpa [#allocation4], 0 }
   0xc   :  { %32 = vsyncpa [#allocation19], 0 }
   0xd   :  { %33 = vsyncpa [#allocation22], 0  ;;  %s7458_s1 = smov [#allocation5]  }
   0xe   :  { %s52_s22 = sshll.u32 %s7458_s1, 4  ;;  %s53_s22 = int_to_ptr.vmem [resolvable:$true] %s52_s22 }
   0xf   :  { %s7190_s23 = scalar_lea.vmem %s53_s22, 32  ;;  %p7195_p1 = scmp.lt.s32.totalorder %s53_s22, %s53_s22 }
  0x10   :  { %p7191_p0 = scmp.ne.s32.totalorder %s53_s22, %s7190_s23  ;;  %p7196_p2 = scmp.lt.s32.totalorder %s7190_s23, %s7190_s23 }
  0x12   :  { %p7197_p3 = por %p7196_p2, %p7195_p1 }
  0x14   :  { %p7198_p4 = pnand %p7197_p3, %p7191_p0 }
  0x16   :  { %7201 = shalt.err (!%p7198_p4)
}
  0x17   :  { %s8922_s25 = sld [smem:[#allocation32_spill]]  ;;  %s7459_s3 = smov [#allocation8]  }
  0x18   :  { %s77_s26 = sshll.u32 %s7459_s3, 4  ;;  %s7460_s27 = smov [#allocation11]   ;;  %s78_s26 = int_to_ptr.vmem [resolvable:$true] %s77_s26 }
  0x19   :  { %s105_s28 = sshll.u32 %s7460_s27, 4  ;;  %s7210_s4 = scalar_lea.vmem %s78_s26, 512  ;;  %s106_s28 = int_to_ptr.vmem [resolvable:$true] %s105_s28 }
  0x1a   :  { %p7211_p5 = scmp.ne.s32.totalorder %s78_s26, %s7210_s4  ;;  %p7215_p6 = scmp.lt.s32.totalorder %s78_s26, %s78_s26 }
  0x1b   :  { %p7216_p7 = scmp.lt.s32.totalorder %s7210_s4, %s7210_s4 }
  0x1d   :  { %55 = dma.hbm_to_vmem [thread:$0]  %s8922_s25, 32, %s53_s22, [#allocation6]  }
  0x1e   :  { %p7217_p8 = por %p7216_p7, %p7215_p6 }
  0x20   :  { %p7218_p9 = pnand %p7217_p8, %p7211_p5 }
  0x22   :  { %7221 = shalt.err (!%p7218_p9)
}
  0x23   :  { %s7461_s29 = smov 128   ;;  %s7462_s30 = smov 8  }
  0x24   :  { %83 = dma.hbm_to_vmem [thread:$0]  %s8901_s5, 512, %s78_s26, [#allocation9], %s7461_s29, %s7461_s29, %s7462_s30  }
  0x25   :  { %s7230_s1 = scalar_lea.vmem %s106_s28, 512  ;;  %p7235_p11 = scmp.lt.s32.totalorder %s106_s28, %s106_s28 }
  0x26   :  { %p7231_p10 = scmp.ne.s32.totalorder %s106_s28, %s7230_s1  ;;  %p7236_p12 = scmp.lt.s32.totalorder %s7230_s1, %s7230_s1 }
  0x28   :  { %p7237_p13 = por %p7236_p12, %p7235_p11 }
  0x2a   :  { %p7238_p0 = pnand %p7237_p13, %p7231_p10 }
  0x2c   :  { %7241 = shalt.err (!%p7238_p0)
}
  0x2d   :  { %111 = dma.hbm_to_vmem [thread:$0]  %s8905_s9, 512, %s106_s28, [#allocation12], %s7461_s29, %s7461_s29, %s7462_s30  }
  0x2e   :  { %s7463_s24 = smov [#allocation14]   ;;  %s7464_s25 = smov [#allocation2]  }
  0x2f   :  { %s135_s2 = sshll.u32 %s7463_s24, 4  ;;  %s39_s5 = sshll.u32 %s7464_s25, 4  ;;  %s136_s2 = int_to_ptr.vmem [resolvable:$true] %s135_s2  ;;  %s40_s5 = int_to_ptr.vmem [resolvable:$true] %s39_s5 }
  0x30   :  { %s7250_s3 = scalar_lea.vmem %s136_s2, 512  ;;  %p7255_p2 = scmp.lt.s32.totalorder %s136_s2, %s136_s2 }
  0x31   :  { %p7251_p1 = scmp.ne.s32.totalorder %s136_s2, %s7250_s3  ;;  %p7256_p3 = scmp.lt.s32.totalorder %s7250_s3, %s7250_s3 }
  0x33   :  { %p7257_p4 = por %p7256_p3, %p7255_p2 }
  0x35   :  { %p7258_p5 = pnand %p7257_p4, %p7251_p1 }
  0x37   :  { %7261 = shalt.err (!%p7258_p5)
}
  0x38   :  { %141 = dma.hbm_to_vmem [thread:$0]  %s8910_s14, 512, %s136_s2, [#allocation15], %s7461_s29, %s7461_s29, %s7462_s30  }
  0x39   :  { %s7270_s9 = scalar_lea.vmem %s40_s5, 256  ;;  %p7275_p7 = scmp.lt.s32.totalorder %s40_s5, %s40_s5 }
  0x3a   :  { %p7271_p6 = scmp.ne.s32.totalorder %s40_s5, %s7270_s9  ;;  %p7276_p8 = scmp.lt.s32.totalorder %s7270_s9, %s7270_s9 }
  0x3c   :  { %p7277_p9 = por %p7276_p8, %p7275_p7 }
  0x3e   :  { %p7278_p10 = pnand %p7277_p9, %p7271_p6 }
  0x40   :  { %7281 = shalt.err (!%p7278_p10)
}
  0x41   :  { %s8923_s0 = sld [smem:[#allocation31_spill]]  ;;  %s7465_s21 = smov [#allocation7]  }
  0x42   :  { %s65_s1 = sshll.u32 %s7465_s21, 4  ;;  %s7466_s22 = smov [#allocation10]   ;;  %s66_s1 = int_to_ptr.vmem [resolvable:$true] %s65_s1 }
  0x43   :  { %s91_s14 = sshll.u32 %s7466_s22, 4  ;;  %s7290_s23 = scalar_lea.vmem %s66_s1, 256  ;;  %s92_s14 = int_to_ptr.vmem [resolvable:$true] %s91_s14 }
  0x44   :  { %p7291_p11 = scmp.ne.s32.totalorder %s66_s1, %s7290_s23  ;;  %p7295_p12 = scmp.lt.s32.totalorder %s66_s1, %s66_s1 }
  0x45   :  { %p7296_p13 = scmp.lt.s32.totalorder %s7290_s23, %s7290_s23 }
  0x47   :  { %45 = dma.hbm_to_vmem [thread:$0]  %s8923_s0, 256, %s40_s5, [#allocation3], %s7461_s29, %s7461_s29, %s7462_s30  }
  0x48   :  { %p7297_p0 = por %p7296_p13, %p7295_p12 }
  0x4a   :  { %p7298_p1 = pnand %p7297_p0, %p7291_p11 }
  0x4c   :  { %7301 = shalt.err (!%p7298_p1)
}
  0x4d   :  { %s8924_s25 = sld [smem:[#allocation35_spill]]  ;;  %s7310_s5 = scalar_lea.vmem %s92_s14, 512 }
  0x4e   :  { %p7311_p2 = scmp.ne.s32.totalorder %s92_s14, %s7310_s5  ;;  %p7315_p3 = scmp.lt.s32.totalorder %s92_s14, %s92_s14 }
  0x4f   :  { %p7316_p4 = scmp.lt.s32.totalorder %s7310_s5, %s7310_s5 }
  0x51   :  { %p7317_p5 = por %p7316_p4, %p7315_p3 }
  0x53   :  { %71 = dma.hbm_to_vmem [thread:$0]  %s8924_s25, 256, %s66_s1, [#allocation6], %s7461_s29, %s7461_s29, %s7462_s30  }
  0x54   :  { %p7318_p6 = pnand %p7317_p5, %p7311_p2 }
  0x56   :  { %7321 = shalt.err (!%p7318_p6)
}
  0x57   :  { %97 = dma.hbm_to_vmem [thread:$0]  %s8903_s7, 512, %s92_s14, [#allocation9], %s7461_s29, %s7461_s29, %s7462_s30  }
  0x58   :  { %s7467_s27 = smov [#allocation13]   ;;  %s7468_s28 = smov [#allocation16]  }
  0x59   :  { %s119_s9 = sshll.u32 %s7467_s27, 4  ;;  %s147_s4 = sshll.u32 %s7468_s28, 4  ;;  %s120_s9 = int_to_ptr.vmem [resolvable:$true] %s119_s9  ;;  %s148_s4 = int_to_ptr.vmem [resolvable:$true] %s147_s4 }
  0x5a   :  { %s7330_s0 = scalar_lea.vmem %s120_s9, 512  ;;  %p7335_p8 = scmp.lt.s32.totalorder %s120_s9, %s120_s9 }
  0x5b   :  { %p7331_p7 = scmp.ne.s32.totalorder %s120_s9, %s7330_s0  ;;  %p7336_p9 = scmp.lt.s32.totalorder %s7330_s0, %s7330_s0 }
  0x5d   :  { %p7337_p10 = por %p7336_p9, %p7335_p8 }
  0x5f   :  { %p7338_p11 = pnand %p7337_p10, %p7331_p7 }
  0x61   :  { %7341 = shalt.err (!%p7338_p11)
}
  0x62   :  { %125 = dma.hbm_to_vmem [thread:$0]  %s8907_s11, 512, %s120_s9, [#allocation12], %s7461_s29, %s7461_s29, %s7462_s30  }
  0x63   :  { %s7350_s7 = scalar_lea.vmem %s148_s4, 512  ;;  %p7355_p13 = scmp.lt.s32.totalorder %s148_s4, %s148_s4 }
  0x64   :  { %p7351_p12 = scmp.ne.s32.totalorder %s148_s4, %s7350_s7  ;;  %p7356_p0 = scmp.lt.s32.totalorder %s7350_s7, %s7350_s7 }
  0x66   :  { %p7357_p1 = por %p7356_p0, %p7355_p13 }
  0x68   :  { %p7358_p2 = pnand %p7357_p1, %p7351_p12 }
  0x6a   :  { %7361 = shalt.err (!%p7358_p2)
}
  0x6b   :  { %153 = dma.hbm_to_vmem [thread:$0]  %s8911_s15, 512, %s148_s4, [#allocation15], %s7461_s29, %s7461_s29, %s7462_s30  }
  0x6c   :  { %7442 = dma.done.wait [#allocation3], 256  }
  0x6d   :  { %7443 = vsyncadd [#allocation3], 4294967040 }
  0x6e   :  { %7444 = dma.done.wait [#allocation6], 288  }
  0x6f   :  { %7445 = vsyncadd [#allocation6], 4294967008 }
  0x70   :  { %7446 = dma.done.wait [#allocation9], 1024  }
  0x71   :  { %7447 = vsyncadd [#allocation9], 4294966272 }
  0x72   :  { %7448 = dma.done.wait [#allocation12], 1024  }
  0x73   :  { %7449 = vsyncadd [#allocation12], 4294966272 }
  0x74   :  { %7450 = dma.done.wait [#allocation15], 1024  }
  0x75   :  { %7451 = vsyncadd [#allocation15], 4294966272  ;;  %v7469_v0 = vmov 0.0   ;;  %vm7470_vm0 = vmmov 0   ;;  %vm223_vm1 = vcmask 261120   ;;  %v205_v1 = vld [vmem:[#allocation13 + $0x18] sm:$0xff]  ;;  %v315_v52 = vlaneseq }
  0x76   :  { %6440 = vmatprep.subr.mxu1 %v7469_v0  ;;  %6448 = vmatprep.mubr.msk.f32.mxu1 %vm7470_vm0, %v7469_v0  ;;  %v204_v2 = vld [vmem:[#allocation13 + $0x10] sm:$0xff]  ;;  %v7639_v4 = vld [vmem:[#allocation8 + $0x18] sm:$0xff]  ;;  %v203_v5 = vld [vmem:[#allocation13 + $0x8] sm:$0xff]  ;;  %s8925_s23 = sld [smem:[#allocation33_spill]]  ;;  %s7471_s3 = smov 64   ;;  %vm722_vm2 = vcmask 1041409  }
  0x77   :  { %6429 = vmatprep.subr.mxu0 %v205_v1  ;;  %v185_v3 = vld [vmem:[#allocation7] sm:$0xff]  ;;  %6441 = vmatpush3.msra.mxu1 %v7639_v4  ;;  %v202_v7 = vld [vmem:[#allocation13] sm:$0xff]  ;;  %v7646_v8 = vld [vmem:[#allocation8 + $0x8] sm:$0xff]  ;;  %s8926_s9 = sld [smem:[#allocation34_spill]]  ;;  %s7472_s28 = smov 32   ;;  %v663_v56 = vshrl.u32 %v315_v52, 7 }
  0x78   :  { %6430 = vmatpush3.msra.mxu0 %v205_v1  ;;  %6437 = vmatprep.mubr.msk.f32.mxu0 %vm223_vm1, %v185_v3  ;;  %v7642_v6 = vld [vmem:[#allocation8 + $0x10] sm:$0xff]  ;;  %v186_v9 = vld [vmem:[#allocation7 + $0x8] sm:$0xff]  ;;  %v7653_v11 = vld [vmem:[#allocation8] sm:$0xff]  ;;  %v7473_v53 = vmov 1966171168   ;;  %vm725_vm3 = vcmask 58368  }
  0x79   :  { %6431 = vmatprep.subr.mxu0 %v204_v2  ;;  %6442 = vmatprep.subr.mxu1 %v7469_v0  ;;  %v7650_v10 = vld [vmem:[#allocation10 + $0x18] sm:$0xff]  ;;  %v319_v12 = vld [vmem:[#allocation5] sm:$0x3]  ;;  %v7658_v13 = vld [vmem:[#allocation10 + $0x10] sm:$0xff]  ;;  %v660_v54 = vunpack.c.l.s4 %v7473_v53  ;;  %vm1124_vm4 = vcmask 57344   ;;  %vm890_vm9 = vcmask 1040384  }
  0x7a   :  { %6432 = vmatpush3.msra.mxu0 %v204_v2  ;;  %6443 = vmatpush3.msra.mxu1 %v7642_v6  ;;  %v7663_v14 = vld [vmem:[#allocation10 + $0x8] sm:$0xff]  ;;  %v7670_v15 = vld [vmem:[#allocation10] sm:$0xff]  ;;  %v7690_v19 = vld [vmem:[%s8902_s6] ss:$0 sm:$0xff]  ;;  %v7761_v2 = vsub.s32 0, %v663_v56  ;;  %vm893_vm10 = vcmask 64512  }
  0x7b   :  { %6433 = vmatprep.subr.mxu0 %v203_v5  ;;  %6444 = vmatprep.subr.mxu1 %v7469_v0  ;;  %v7697_v22 = vld [vmem:[%s8904_s8] ss:$0 sm:$0xff]  ;;  %v7714_v42 = vld [vmem:[#allocation16 + $0x10] sm:$0xff]  ;;  %v7722_v44 = vld [vmem:[#allocation16 + $0x8] sm:$0xff]  ;;  %v661_v55 = vunpack.c.0.s8 %v660_v54  ;;  %s7475_s22 = smov 96  }
  0x7c   :  { %6434 = vmatpush3.msra.mxu0 %v203_v5  ;;  %6445 = vmatpush3.msra.mxu1 %v7646_v8  ;;  %v317_v16 = vld [vmem:[%s8925_s23] sm:$0x3]  ;;  %v7718_v43 = vld [vmem:[#allocation11 + $0x10] sm:$0xff]  ;;  %v7724_v45 = vld [vmem:[#allocation11 + $0x8] sm:$0xff] }
  0x7d   :  { %6435 = vmatprep.subr.mxu0 %v202_v7  ;;  %6446 = vmatprep.subr.mxu1 %v7469_v0  ;;  %v318_v29 = vld [vmem:[%s8926_s9] sm:$0x3]  ;;  %v7730_v46 = vld [vmem:[#allocation16] sm:$0xff]  ;;  %v7755_v58 = vsub.s32 %v661_v55, %v663_v56 }
  0x7e   :  { %6436 = vmatpush3.msra.mxu0 %v202_v7  ;;  %6447 = vmatpush3.msra.mxu1 %v7653_v11  ;;  %v7710_v40 = vld [vmem:[#allocation16 + $0x18] sm:$0xff]  ;;  %v7732_v47 = vld [vmem:[#allocation11] sm:$0xff] }
  0x7f   :  { %6438 = vmatmul.mubr.msk.f32.vlgmr.msra.gmra.mxu0 %vm223_vm1, %v186_v9  ;;  %6451 = vmatprep.subr.mxu0 %v7469_v0  ;;  %v7712_v41 = vld [vmem:[#allocation11 + $0x18] sm:$0xff] }
  0x80   :  { %6452 = vmatpush3.msra.mxu0 %v7650_v10  ;;  %6449 = vmatmul.mubr.msk.f32.vlgmr.msra.gmra.mxu1 %vm223_vm1, %v319_v12  ;;  %v7753_v57 = vld [vmem:[%s8906_s10] ss:$0 sm:$0xff] }
  0x81   :  { %6453 = vmatprep.subr.mxu0 %v7469_v0  ;;  %6459 = vmatprep.mubr.msk.f32.mxu0 %vm7470_vm0, %v7469_v0  ;;  %v6111_v3 = vld [vmem:[%s8908_s12] ss:$0 sm:$0xff] }
  0x82   :  { %6454 = vmatpush3.msra.mxu0 %v7658_v13  ;;  %6462 = vmatprep.subr.mxu1 %v7469_v0 }
  0x83   :  { %6455 = vmatprep.subr.mxu0 %v7469_v0  ;;  %6470 = vmatprep.mubr.msk.f32.mxu1 %vm7470_vm0, %v7469_v0 }
  0x84   :  { %6456 = vmatpush3.msra.mxu0 %v7663_v14  ;;  %6463 = vmatpush3.msra.mxu1 %v7710_v40 }
  0x85   :  { %6457 = vmatprep.subr.mxu0 %v7469_v0  ;;  %6464 = vmatprep.subr.mxu1 %v7469_v0 }
  0x86   :  { %6458 = vmatpush3.msra.mxu0 %v7670_v15  ;;  %6465 = vmatpush3.msra.mxu1 %v7714_v42 }
  0x87   :  { %6460 = vmatmul.mubr.msk.f32.vlgmr.msra.gmra.mxu0 %vm223_vm1, %v317_v16  ;;  %6473 = vmatprep.subr.mxu0 %v7469_v0 }
  0x88   :  { %6481 = vmatprep.mubr.msk.f32.mxu0 %vm7470_vm0, %v7469_v0  ;;  %6474 = vmatpush3.msra.mxu0 %v7712_v41 }
  0x89   :  { %6475 = vmatprep.subr.mxu0 %v7469_v0  ;;  %6466 = vmatprep.subr.mxu1 %v7469_v0 }
  0x8a   :  { %6476 = vmatpush3.msra.mxu0 %v7718_v43  ;;  %6467 = vmatpush3.msra.mxu1 %v7722_v44 }
  0x8b   :  { %6477 = vmatprep.subr.mxu0 %v7469_v0  ;;  %6468 = vmatprep.subr.mxu1 %v7469_v0 }
  0x8c   :  { %6478 = vmatpush3.msra.mxu0 %v7724_v45  ;;  %6469 = vmatpush3.msra.mxu1 %v7730_v46 }
  0x8d   :  { %6479 = vmatprep.subr.mxu0 %v7469_v0  ;;  %6484 = vmatprep.subr.mxu1 %v7469_v0 }
  0x8e   :  { %6480 = vmatpush3.msra.mxu0 %v7732_v47 }
  0x8f   :  { %6494 = vmatprep.subr.mxu0 %v7469_v0 }
 0x13f   :  { %v7685_v17 = vpop.f32.mrf.mxu0 }
 0x140   :  { %v395_v18 = vpop.f32.mrf.mxu1 }
 0x141   :  { %v7692_v21 = vpop.f32.mrf.mxu0  ;;  %v396_v23 = vadd.f32 %v7690_v19, %v395_v18  ;;  %v7773_v18 = vadd.f32 %v7685_v17, %v6111_v3 }
 0x142   :  { %v6450_v20 = vpop.f32.mrf.mxu1  ;;  %v7768_v9 = vadd.f32 %v6111_v3, %v7692_v21  ;;  %v7781_v21 = vld [vmem:[%s8909_s13] ss:$0 sm:$0xff] }
 0x147   :  { %v474_v24 = vpop.f32.mrf.mxu0 }
 0x148   :  { %v475_v25 = vadd.f32 %v7697_v22, %v474_v24 }
 0x149   :  { %v6461_v26 = vpop.f32.mrf.mxu0 }
 0x14a   :  { %v478_v27 = vadd.f32 %v475_v25, %v396_v23 }
 0x14c   :  { %6984 = vtanh.f32 %v478_v27  ;;  %v6118_v30 = vmul.f32 -1.442695, %v478_v27 }
 0x14e   :  { %6986 = vpow2.f32 %v6118_v30  ;;  %v7787_v30 = vand.u32 127, %v315_v52 }
 0x150   :  { %vm1127_vm14 = vcmp.eq.s32.totalorder %v7787_v30, 0  ;;  %vm1829_vm15 = vcmp.eq.s32.totalorder %v7787_v30, 1 }
 0x159   :  { %v6985_v28 = vpop.eup %6984 }
 0x15a   :  { %492 = vrot.lane.b32.xlu0 %v6985_v28, %s7471_s3 }
 0x15b   :  { %v6987_v31 = vpop.eup %6986 }
 0x15c   :  { %v482_v32 = vadd.f32 1.0, %v6987_v31  ;;  %v7790_v31 = vsub.s32 %v7787_v30, %v663_v56 }
 0x15e   :  { %487 = vrot.lane.b32.xlu0 %v318_v29, %s7472_s28  ;;  %6988 = vrcp.f32 %v482_v32 }
 0x16b   :  { %v6989_v33 = vpop.eup %6988 }
 0x1cc   :  { %v493_v34 = vpop.permute.xlu0 %492 }
 0x1cd   :  { %v495_v35 = vmul.f32 %v6989_v33, %v493_v34 }
 0x1cf   :  { %497 = vrot.lane.b32.xlu1 %v495_v35, %s7472_s28 }
 0x1d0   :  { %v488_v36 = vpop.permute.xlu0 %487 }
 0x1d1   :  { %v490_v37 = vmul.f32 %v6989_v33, %v488_v36 }
 0x241   :  { %v498_v38 = vpop.permute.xlu1 %497 }
 0x242   :  { %v7707_v39 = vadd.f32 %v498_v38, %v490_v37  ;;  %v7474_v38 = vmov 0  }
 0x243   :  { %6983 = vset.pattern.permute.xlu0 %v7474_v38  ;;  %6982 = vset.pattern.permute.xlu1 %v7474_v38 }
 0x244   :  { %6990 = vtanh.f32 %v7707_v39 }
 0x251   :  { %v6991_v48 = vpop.eup %6990 }
 0x252   :  { %503 = vrot.lane.b32.xlu1 %v6991_v48, %s7471_s3  ;;  %v736_v48 = vsub.s32 1, %v663_v56 }
 0x2c4   :  { %v504_v49 = vpop.permute.xlu1 %503 }
 0x2c5   :  { %v506_v50 = vmul.f32 %v6989_v33, %v504_v49 }
 0x2c7   :  { %508 = vrot.lane.b32.xlu0 %v506_v50, %s7472_s28 }
 0x339   :  { %v509_v51 = vpop.permute.xlu0 %508 }
 0x33a   :  { %6471 = vmatmul.mubr.msk.f32.vlgmr.msra.gmra.mxu1 %vm223_vm1, %v509_v51  ;;  %6482 = vmatmul.mubr.msk.f32.vlgmr.msra.gmra.mxu0 %vm223_vm1, %v509_v51 }
 0x33b   :  { %6486 = vmatprep.mubr.msk.f32.mxu1 %vm7470_vm0, %v7469_v0  ;;  %6502 = vmatprep.mubr.msk.f32.mxu0 %vm7470_vm0, %v7469_v0 }
 0x3fa   :  { %v7757_v59 = vpop.f32.mrf.mxu1  ;;  %v654_v60 = vpop.f32.mrf.mxu0 }
 0x3fb   :  { %v655_v61 = vadd.f32 %v7753_v57, %v654_v60 }
 0x3fc   :  { %v6472_v62 = vpop.f32.mrf.mxu1  ;;  %v6483_v63 = vpop.f32.mrf.mxu0 }
 0x3fd   :  { %v665_v1 = vrot.slane %v655_v61, %v7755_v58 }
 0x3ff   :  { %v666_v5 = vcombine.high %v665_v1, %v665_v1  ;;  %v673_v7 = vrot.slane %v665_v1, %v7755_v58 }
 0x401   :  { %v680_v12 = vrot.slane %v666_v5, %v7755_v58  ;;  %v684_v16 = vrot.slane %v673_v7, %v7761_v2 }
 0x403   :  { %v688_v20 = vrot.slane %v680_v12, %v7761_v2  ;;  %v691_v23 = vadd.f32 %v684_v16, %v7768_v9 }
 0x405   :  { %v692_v24 = vadd.f32 %v688_v20, %v7773_v18  ;;  %6992 = vtanh.f32 %v691_v23 }
 0x407   :  { %6994 = vtanh.f32 %v692_v24 }
 0x412   :  { %v6993_v25 = vpop.eup %6992 }
 0x413   :  { %v701_v26 = vmul.f32 %v6993_v25, %v7781_v21 }
 0x414   :  { %v6995_v27 = vpop.eup %6994 }
 0x415   :  { %v703_v17 = vsel %vm223_vm1, %v701_v26, 0.0  ;;  %v702_v28 = vmul.f32 %v6995_v27, %v7781_v21 }
 0x416   :  { %704 = vadd.xlane.f32.xlu1 %v703_v17 }
 0x417   :  { %v706_v29 = vsel %vm223_vm1, %v702_v28, 0.0 }
 0x418   :  { %707 = vadd.xlane.f32.xlu0 %v706_v29 }
 0x49f   :  { %v705_v32 = vpop.xlane.xlu1 %704 }
 0x4a0   :  { %v717_v34 = vrot.slane %v705_v32, %v7790_v31 }
 0x4a1   :  { %v708_v33 = vpop.xlane.xlu0 %707 }
 0x4a2   :  { %v721_v35 = vrot.slane %v708_v33, %v7790_v31 }
 0x4a4   :  { %v723_v36 = vsel %vm722_vm2, %v721_v35, %v717_v34 }
 0x4a5   :  { %v726_v37 = vsel %vm725_vm3, %v723_v36, -inf }
 0x4a6   :  { %727 = vmax.xlane.f32.xlu0 %v726_v37 }
 0x52f   :  { %v728_v49 = vpop.xlane.xlu0 %727 }
 0x530   :  { %v733_v50 = vrot.slane %v728_v49, %v7761_v2  ;;  %v737_v51 = vrot.slane %v728_v49, %v736_v48 }
 0x532   :  { %v740_v52 = vsub.f32 %v705_v32, %v733_v50  ;;  %v741_v53 = vsub.f32 %v708_v33, %v737_v51 }
 0x534   :  { %v742_v54 = vmul.f32 1.442695, %v740_v52  ;;  %v744_v55 = vmul.f32 1.442695, %v741_v53 }
 0x536   :  { %6996 = vpow2.f32 %v742_v54 }
 0x537   :  { %6998 = vpow2.f32 %v744_v55 }
 0x543   :  { %v6997_v60 = vpop.eup %6996 }
 0x544   :  { %v6999_v61 = vpop.eup %6998  ;;  %749 = vperm.xlu1 %6982, %v6997_v60  }
 0x545   :  { %752 = vperm.xlu0 %6983, %v6999_v61  }
 0x5bf   :  { %v750_v62 = vpop.permute.xlu1 %749 }
 0x5c0   :  { %v753_v63 = vpop.permute.xlu0 %752  ;;  %v757_v1 = vrot.slane %v750_v62, %v7790_v31 }
 0x5c1   :  { %v761_v56 = vrot.slane %v753_v63, %v7790_v31 }
 0x5c3   :  { %v762_v3 = vsel %vm722_vm2, %v761_v56, %v757_v1 }
 0x5c4   :  { %v764_v5 = vsel %vm725_vm3, %v762_v3, 0.0 }
 0x5c5   :  { %765 = vadd.xlane.f32.xlu1 %v764_v5  ;;  %v184_v5 = vld [vmem:[#allocation2 + $0x8] sm:$0xff] }
 0x64e   :  { %v766_v7 = vpop.xlane.xlu1 %765 }
 0x64f   :  { %v771_v12 = vrot.slane %v766_v7, %v7761_v2  ;;  %v775_v16 = vrot.slane %v766_v7, %v736_v48 }
 0x651   :  { %7000 = vrcp.f32 %v771_v12 }
 0x652   :  { %7002 = vrcp.f32 %v775_v16 }
 0x65e   :  { %v7001_v20 = vpop.eup %7000 }
 0x65f   :  { %v779_v23 = vmul.f32 %v7001_v20, %v6997_v60  ;;  %v7003_v24 = vpop.eup %7002 }
 0x660   :  { %v781_v25 = vmul.f32 %v7003_v24, %v6999_v61 }
 0x661   :  { %785 = vperm.xlu0 %6983, %v779_v23  }
 0x665   :  { %788 = vperm.xlu0 %6983, %v781_v25  }
 0x669   :  { %817 = vbcast.lane.b32.xlu0 %v7787_v30, 256 }
 0x6dc   :  { %v786_v26 = vpop.permute.xlu0 %785 }
 0x6dd   :  { %v793_v27 = vrot.slane %v786_v26, %v7790_v31 }
 0x6df   :  { %1125 = vst.msk [vmem:[#allocation17] sm:$0x1] %vm1124_vm4, %v793_v27 }
 0x6e0   :  { %v789_v17 = vpop.permute.xlu0 %788 }
 0x6e1   :  { %v797_v28 = vrot.slane %v789_v17, %v7790_v31 }
 0x6e3   :  { %1126 = vst.msk [vmem:[#allocation17 + $0x8] sm:$0x1] %vm1124_vm4, %v797_v28  ;;  %v798_v29 = vsel %vm722_vm2, %v797_v28, %v793_v27 }
 0x6e4   :  { %v800_v32 = vsel %vm725_vm3, %v798_v29, -inf  ;;  %v818_v36 = vpop.permute.xlu0 %817 }
 0x6e5   :  { %801 = vmax.xlane.f32.xlu1 %v800_v32 }
 0x76e   :  { %v802_v33 = vpop.xlane.xlu1 %801 }
 0x76f   :  { %v807_v34 = vrot.slane %v802_v33, %v7761_v2  ;;  %v811_v35 = vrot.slane %v802_v33, %v736_v48  ;;  %v183_v48 = vld [vmem:[#allocation2] sm:$0xff] }
 0x771   :  { %vm815_vm5 = vcmp.eq.f32.partialorder %v781_v25, %v811_v35  ;;  %vm814_vm6 = vcmp.eq.f32.partialorder %v779_v23, %v807_v34 }
 0x772   :  { %v820_v37 = vsel %vm815_vm5, %v818_v36, 8  ;;  %v819_v38 = vsel %vm814_vm6, %v818_v36, 8 }
 0x773   :  { %825 = vperm.xlu0 %6983, %v820_v37   ;;  %822 = vperm.xlu1 %6982, %v819_v38   ;;  %v7865_v38 = vld [vmem:[#allocation14 + $0x8] sm:$0xff] }
 0x7ee   :  { %v826_v49 = vpop.permute.xlu0 %825  ;;  %v823_v50 = vpop.permute.xlu1 %822 }
 0x7ef   :  { %v834_v51 = vrot.slane %v826_v49, %v7790_v31  ;;  %v830_v52 = vrot.slane %v823_v50, %v7790_v31  ;;  %v7868_v49 = vld [vmem:[#allocation14] sm:$0xff] }
 0x7f1   :  { %v835_v53 = vsel %vm722_vm2, %v834_v51, %v830_v52 }
 0x7f2   :  { %v836_v54 = vsel %vm725_vm3, %v835_v53, 2147483647 }
 0x7f3   :  { %v838_v55 = vshra.s32 %v836_v54, 16  ;;  %v837_v61 = vand.u32 65535, %v836_v54 }
 0x7f5   :  { %v840_v60 = vcvt.s32.f32 %v838_v55  ;;  %v839_v63 = vcvt.s32.f32 %v837_v61 }
 0x7f7   :  { %841 = vmin.xlane.f32.xlu0 %v840_v60 }
 0x80d   :  { %307 = vrot.lane.b32.xlu0 %v183_v48, %s7472_s28 }
 0x880   :  { %v842_v62 = vpop.xlane.xlu0 %841 }
 0x881   :  { %vm843_vm7 = vcmp.eq.f32.partialorder %v840_v60, %v842_v62  ;;  %v848_v7 = vcvt.f32.s32 %v842_v62  ;;  %v7901_v62 = vld [vmem:[%s8912_s16] ss:$0 sm:$0xff] }
 0x882   :  { %v844_v1 = vsel %vm843_vm7, %v839_v63, inf }
 0x883   :  { %845 = vmin.xlane.f32.xlu1 %v844_v1  ;;  %v849_v16 = vshll.u32 %v848_v7, 16 }
 0x884   :  { %v308_v56 = vpop.permute.xlu0 %307 }
 0x885   :  { %v7817_v3 = vsel %vm223_vm1, %v7768_v9, %v308_v56 }
 0x886   :  { %6485 = vmatpush3.msra.mxu1 %v7817_v3 }
 0x887   :  { %6489 = vmatprep.subr.mxu1 %v7469_v0 }
 0x894   :  { %309 = vrot.lane.b32.xlu1 %v184_v5, %s7472_s28 }
 0x90c   :  { %v846_v12 = vpop.xlane.xlu1 %845 }
 0x90d   :  { %v847_v20 = vcvt.f32.s32 %v846_v12 }
 0x90f   :  { %v7822_v23 = vadd.s32 %v849_v16, %v847_v20 }
 0x910   :  { %v310_v32 = vpop.permute.xlu1 %309 }
 0x911   :  { %vm851_vm8 = vcmp.eq.s32.totalorder %v7787_v30, %v7822_v23  ;;  %v7838_v36 = vsel %vm223_vm1, %v7773_v18, %v310_v32 }
 0x912   :  { %v7827_v24 = vsel %vm851_vm8, 1.0, %v7469_v0 }
 0x913   :  { %v862_v25 = vrot.slane %v7827_v24, %v7755_v58 }
 0x915   :  { %v863_v26 = vcombine.high %v862_v25, %v862_v25  ;;  %v870_v17 = vrot.slane %v862_v25, %v7755_v58 }
 0x917   :  { %v877_v29 = vrot.slane %v863_v26, %v7755_v58  ;;  %v883_v33 = vrot.slane %v870_v17, %v7761_v2 }
 0x919   :  { %v891_v34 = vsel %vm890_vm9, %v793_v27, %v883_v33  ;;  %v887_v35 = vrot.slane %v877_v29, %v7761_v2  ;;  %v7857_v27 = vld [vmem:[#allocation14 + $0x18] sm:$0xff] }
 0x91a   :  { %6487 = vmatmul.mubr.msk.f32.vlgmr.msra.gmra.mxu1 %vm893_vm10, %v891_v34  ;;  %6495 = vmatpush3.msra.mxu0 %v7857_v27 }
 0x91b   :  { %6490 = vmatpush3.msra.mxu1 %v7838_v36  ;;  %6491 = vmatprep.mubr.msk.f32.mxu1 %vm7470_vm0, %v7469_v0  ;;  %v892_v37 = vsel %vm890_vm9, %v797_v28, %v887_v35  ;;  %v7860_v28 = vld [vmem:[#allocation14 + $0x10] sm:$0xff] }
 0x91c   :  { %6505 = vmatprep.subr.mxu1 %v7469_v0  ;;  %6496 = vmatprep.subr.mxu0 %v7469_v0 }
 0x91d   :  { %6497 = vmatpush3.msra.mxu0 %v7860_v28 }
 0x91e   :  { %6492 = vmatmul.mubr.msk.f32.vlgmr.msra.gmra.mxu1 %vm893_vm10, %v892_v37  ;;  %6498 = vmatprep.subr.mxu0 %v7469_v0 }
 0x91f   :  { %6506 = vmatpush3.msra.mxu1 %v7639_v4  ;;  %6513 = vmatprep.mubr.msk.f32.mxu1 %vm7470_vm0, %v7469_v0 }
 0x920   :  { %6507 = vmatprep.subr.mxu1 %v7469_v0  ;;  %6499 = vmatpush3.msra.mxu0 %v7865_v38 }
 0x921   :  { %6508 = vmatpush3.msra.mxu1 %v7642_v6  ;;  %6500 = vmatprep.subr.mxu0 %v7469_v0 }
 0x922   :  { %6509 = vmatprep.subr.mxu1 %v7469_v0  ;;  %6501 = vmatpush3.msra.mxu0 %v7868_v49 }
 0x923   :  { %6510 = vmatpush3.msra.mxu1 %v7646_v8  ;;  %6516 = vmatprep.subr.mxu0 %v7469_v0 }
 0x924   :  { %6511 = vmatprep.subr.mxu1 %v7469_v0 }
 0x925   :  { %6512 = vmatpush3.msra.mxu1 %v7653_v11 }
 0x926   :  { %6527 = vmatprep.subr.mxu1 %v7469_v0 }
 0x9da   :  { %v963_v50 = vpop.f32.mrf.mxu1 }
 0x9db   :  { %v1129_v52 = vrot.slane %v963_v50, 1 }
 0x9dc   :  { %v6488_v51 = vpop.f32.mrf.mxu1 }
 0x9de   :  { %v1036_v53 = vpop.f32.mrf.mxu1 }
 0x9df   :  { %v1042_v54 = vrot.slane %v1036_v53, 7  ;;  %v1130_v55 = vsel %vm722_vm2, %v1036_v53, %v1129_v52 }
 0x9e0   :  { %1131 = vrot.lane.b32.xlu0 %v1130_v55, %s7475_s22  ;;  %v6493_v60 = vpop.f32.mrf.mxu1 }
 0x9e1   :  { %v1043_v48 = vsel %vm722_vm2, %v1042_v54, %v963_v50 }
 0x9e2   :  { %6503 = vmatmul.mubr.msk.f32.vlgmr.msra.gmra.mxu0 %vm223_vm1, %v1043_v48 }
 0x9e3   :  { %6517 = vmatpush3.msra.mxu0 %v7650_v10  ;;  %6524 = vmatprep.mubr.msk.f32.mxu0 %vm7470_vm0, %v7469_v0 }
 0x9e4   :  { %6518 = vmatprep.subr.mxu0 %v7469_v0 }
 0x9e5   :  { %6519 = vmatpush3.msra.mxu0 %v7658_v13 }
 0x9e6   :  { %6520 = vmatprep.subr.mxu0 %v7469_v0 }
 0x9e7   :  { %6521 = vmatpush3.msra.mxu0 %v7663_v14 }
 0x9e8   :  { %6522 = vmatprep.subr.mxu0 %v7469_v0 }
 0x9e9   :  { %6523 = vmatpush3.msra.mxu0 %v7670_v15 }
 0x9ea   :  { %6538 = vmatprep.subr.mxu0 %v7469_v0 }
 0xa52   :  { %v1132_v61 = vpop.permute.xlu0 %1131 }
 0xa53   :  { %6514 = vmatmul.mubr.msk.f32.vlgmr.msra.gmra.mxu1 %vm223_vm1, %v1132_v61 }
 0xa54   :  { %6528 = vmatpush3.msra.mxu1 %v7710_v40  ;;  %6535 = vmatprep.mubr.msk.f32.mxu1 %vm7470_vm0, %v7469_v0 }
 0xa55   :  { %6529 = vmatprep.subr.mxu1 %v7469_v0 }
 0xa56   :  { %6530 = vmatpush3.msra.mxu1 %v7714_v42 }
 0xa57   :  { %6531 = vmatprep.subr.mxu1 %v7469_v0 }
 0xa58   :  { %6532 = vmatpush3.msra.mxu1 %v7722_v44 }
 0xa59   :  { %6533 = vmatprep.subr.mxu1 %v7469_v0 }
 0xa5a   :  { %6534 = vmatpush3.msra.mxu1 %v7730_v46 }
 0xa5b   :  { %6549 = vmatprep.subr.mxu1 %v7469_v0 }
 0xaa2   :  { %v1112_v63 = vpop.f32.mrf.mxu0 }
 0xaa3   :  { %v1113_v1 = vadd.f32 %v1112_v63, %v7757_v59 }
 0xaa4   :  { %v6504_v56 = vpop.f32.mrf.mxu0 }
 0xaa5   :  { %v1122_v5 = vadd.f32 %v7901_v62, %v1113_v1 }
 0xaa7   :  { %7004 = vtanh.f32 %v1122_v5 }
 0xab4   :  { %v7005_v7 = vpop.eup %7004 }
 0xab5   :  { %6525 = vmatmul.mubr.msk.f32.vlgmr.msra.gmra.mxu0 %vm223_vm1, %v7005_v7 }
 0xab6   :  { %6539 = vmatpush3.msra.mxu0 %v7712_v41  ;;  %6546 = vmatprep.mubr.msk.f32.mxu0 %vm7470_vm0, %v7469_v0 }
 0xab7   :  { %6540 = vmatprep.subr.mxu0 %v7469_v0 }
 0xab8   :  { %6541 = vmatpush3.msra.mxu0 %v7718_v43 }
 0xab9   :  { %6542 = vmatprep.subr.mxu0 %v7469_v0 }
 0xaba   :  { %6543 = vmatpush3.msra.mxu0 %v7724_v45 }
 0xabb   :  { %6544 = vmatprep.subr.mxu0 %v7469_v0 }
 0xabc   :  { %6545 = vmatpush3.msra.mxu0 %v7732_v47 }
 0xabd   :  { %6559 = vmatprep.subr.mxu0 %v7469_v0 }
 0xb13   :  { %v1201_v59 = vpop.f32.mrf.mxu1 }
 0xb14   :  { %v1202_v20 = vadd.f32 %v7690_v19, %v1201_v59 }
 0xb15   :  { %v6515_v12 = vpop.f32.mrf.mxu1 }
 0xb75   :  { %v1274_v16 = vpop.f32.mrf.mxu0 }
 0xb76   :  { %v1275_v25 = vadd.f32 %v7697_v22, %v1274_v16 }
 0xb77   :  { %v6526_v26 = vpop.f32.mrf.mxu0 }
 0xb78   :  { %v1278_v17 = vadd.f32 %v1275_v25, %v1202_v20 }
 0xb7a   :  { %7006 = vtanh.f32 %v1278_v17  ;;  %v6130_v32 = vmul.f32 -1.442695, %v1278_v17 }
 0xb7c   :  { %7008 = vpow2.f32 %v6130_v32 }
 0xb87   :  { %v7007_v29 = vpop.eup %7006 }
 0xb88   :  { %1288 = vrot.lane.b32.xlu0 %v7007_v29, %s7471_s3 }
 0xb89   :  { %v7009_v33 = vpop.eup %7008 }
 0xb8a   :  { %v1282_v34 = vadd.f32 1.0, %v7009_v33 }
 0xb8c   :  { %7010 = vrcp.f32 %v1282_v34 }
 0xb99   :  { %v7011_v35 = vpop.eup %7010 }
 0xb9a   :  { %v1286_v51 = vmul.f32 %v7011_v35, %v7707_v39 }
 0xbfa   :  { %v1289_v37 = vpop.permute.xlu0 %1288 }
 0xbfb   :  { %v1291_v50 = vmul.f32 %v7011_v35, %v1289_v37 }
 0xbfd   :  { %1293 = vrot.lane.b32.xlu0 %v1291_v50, %s7472_s28  ;;  %v854_v50 = vsub.f32 1.0, %v7827_v24 }
 0xbff   :  { %vm1493_vm11 = vcmp.eq.f32.partialorder %v854_v50, 0.0 }
 0xc6f   :  { %v1294_v52 = vpop.permute.xlu0 %1293 }
 0xc70   :  { %v7921_v53 = vadd.f32 %v1294_v52, %v1286_v51 }
 0xc72   :  { %7012 = vtanh.f32 %v7921_v53 }
 0xc7f   :  { %v7013_v54 = vpop.eup %7012 }
 0xc80   :  { %1299 = vrot.lane.b32.xlu1 %v7013_v54, %s7471_s3 }
 0xcf2   :  { %v1300_v55 = vpop.permute.xlu1 %1299 }
 0xcf3   :  { %v1302_v60 = vmul.f32 %v7011_v35, %v1300_v55 }
 0xcf5   :  { %1304 = vrot.lane.b32.xlu0 %v1302_v60, %s7472_s28 }
 0xd67   :  { %v1305_v48 = vpop.permute.xlu0 %1304 }
 0xd68   :  { %6536 = vmatmul.mubr.msk.f32.vlgmr.msra.gmra.mxu1 %vm223_vm1, %v1305_v48  ;;  %6547 = vmatmul.mubr.msk.f32.vlgmr.msra.gmra.mxu0 %vm223_vm1, %v1305_v48 }
 0xd69   :  { %6550 = vmatpush3.msra.mxu1 %v7817_v3  ;;  %6551 = vmatprep.mubr.msk.f32.mxu1 %vm7470_vm0, %v7469_v0 }
 0xd6a   :  { %6554 = vmatprep.subr.mxu1 %v7469_v0  ;;  %6560 = vmatpush3.msra.mxu0 %v7857_v27 }
 0xd6b   :  { %6561 = vmatprep.subr.mxu0 %v7469_v0  ;;  %6567 = vmatprep.mubr.msk.f32.mxu0 %vm7470_vm0, %v7469_v0 }
 0xd6c   :  { %6562 = vmatpush3.msra.mxu0 %v7860_v28 }
 0xd6d   :  { %6563 = vmatprep.subr.mxu0 %v7469_v0 }
 0xd6e   :  { %6564 = vmatpush3.msra.mxu0 %v7865_v38 }
 0xd6f   :  { %6565 = vmatprep.subr.mxu0 %v7469_v0 }
 0xd70   :  { %6566 = vmatpush3.msra.mxu0 %v7868_v49 }
 0xd71   :  { %6581 = vmatprep.subr.mxu0 %v7469_v0 }
 0xe28   :  { %v7942_v39 = vpop.f32.mrf.mxu1  ;;  %v1444_v61 = vpop.f32.mrf.mxu0 }
 0xe29   :  { %v1445_v63 = vadd.f32 %v7753_v57, %v1444_v61 }
 0xe2a   :  { %v6537_v1 = vpop.f32.mrf.mxu1  ;;  %v6548_v56 = vpop.f32.mrf.mxu0 }
 0xe2b   :  { %v1455_v5 = vrot.slane %v1445_v63, %v7755_v58 }
 0xe2d   :  { %v1456_v7 = vcombine.high %v1455_v5, %v1455_v5  ;;  %v1463_v59 = vrot.slane %v1455_v5, %v7755_v58 }
 0xe2f   :  { %v1470_v12 = vrot.slane %v1456_v7, %v7755_v58  ;;  %v1474_v16 = vrot.slane %v1463_v59, %v7761_v2 }
 0xe31   :  { %v1478_v20 = vrot.slane %v1470_v12, %v7761_v2  ;;  %v1481_v25 = vadd.f32 %v1474_v16, %v7768_v9 }
 0xe33   :  { %v1482_v26 = vadd.f32 %v1478_v20, %v7773_v18  ;;  %7014 = vtanh.f32 %v1481_v25 }
 0xe35   :  { %7016 = vtanh.f32 %v1482_v26 }
 0xe40   :  { %v7015_v17 = vpop.eup %7014 }
 0xe41   :  { %v1485_v29 = vmul.f32 %v7015_v17, %v7781_v21 }
 0xe42   :  { %v7017_v32 = vpop.eup %7016 }
 0xe43   :  { %v1487_v33 = vsel %vm223_vm1, %v1485_v29, 0.0  ;;  %v1486_v34 = vmul.f32 %v7017_v32, %v7781_v21 }
 0xe44   :  { %1488 = vadd.xlane.f32.xlu1 %v1487_v33 }
 0xe45   :  { %v1490_v35 = vsel %vm223_vm1, %v1486_v34, 0.0 }
 0xe46   :  { %1491 = vadd.xlane.f32.xlu0 %v1490_v35 }
 0xecd   :  { %v1489_v37 = vpop.xlane.xlu1 %1488 }
 0xece   :  { %v1499_v52 = vrot.slane %v1489_v37, %v7790_v31 }
 0xecf   :  { %v1492_v51 = vpop.xlane.xlu0 %1491 }
 0xed0   :  { %v1503_v54 = vrot.slane %v1492_v51, %v7790_v31 }
 0xed2   :  { %v1504_v55 = vsel %vm722_vm2, %v1503_v54, %v1499_v52 }
 0xed3   :  { %v1506_v60 = vsel %vm1493_vm11, -inf, %v1504_v55  ;;  %vm2531_vm11 = vcmp.eq.s32.totalorder %v7787_v30, 2 }
 0xed4   :  { %v1507_v48 = vsel %vm725_vm3, %v1506_v60, -inf }
 0xed5   :  { %1508 = vmax.xlane.f32.xlu0 %v1507_v48 }
 0xf5e   :  { %v1509_v61 = vpop.xlane.xlu0 %1508 }
 0xf5f   :  { %v1510_v63 = vsub.f32 %v1506_v60, %v1509_v61 }
 0xf61   :  { %v1511_v1 = vmul.f32 1.442695, %v1510_v63 }
 0xf63   :  { %7018 = vpow2.f32 %v1511_v1  ;;  %v1128_v1 = vsel %vm1127_vm14, %v7822_v23, 0 }
 0xf70   :  { %v7019_v56 = vpop.eup %7018 }
 0xf71   :  { %v1513_v5 = vsel %vm725_vm3, %v7019_v56, 0.0 }
 0xf72   :  { %1514 = vadd.xlane.f32.xlu0 %v1513_v5 }
 0xffb   :  { %v1515_v7 = vpop.xlane.xlu0 %1514 }
 0xffc   :  { %7020 = vrcp.f32 %v1515_v7 }
0x1009   :  { %v7021_v59 = vpop.eup %7020 }
0x100a   :  { %v1517_v12 = vmul.f32 %v7021_v59, %v7019_v56 }
0x100c   :  { %v1518_v16 = vsel %vm725_vm3, %v1517_v12, -inf  ;;  %v1550_v20 = vrot.slane %v1517_v12, %v7755_v58 }
0x100d   :  { %1519 = vmax.xlane.f32.xlu1 %v1518_v16 }
0x100e   :  { %v1551_v25 = vcombine.high %v1550_v20, %v1550_v20  ;;  %v1558_v26 = vrot.slane %v1550_v20, %v7755_v58 }
0x1010   :  { %1827 = vst.msk [vmem:[#allocation17 + $0x1] sm:$0x1] %vm1124_vm4, %v1558_v26  ;;  %v1565_v17 = vrot.slane %v1551_v25, %v7755_v58 }
0x1012   :  { %1828 = vst.msk [vmem:[#allocation17 + $0x9] sm:$0x1] %vm1124_vm4, %v1565_v17 }
0x1096   :  { %v1520_v29 = vpop.xlane.xlu1 %1519 }
0x1097   :  { %vm1521_vm12 = vcmp.eq.f32.partialorder %v1517_v12, %v1520_v29 }
0x1098   :  { %v1522_v32 = vsel %vm1521_vm12, %v7787_v30, 8 }
0x1099   :  { %v1523_v33 = vsel %vm725_vm3, %v1522_v32, 2147483647 }
0x109a   :  { %v1525_v34 = vshra.s32 %v1523_v33, 16  ;;  %v1524_v37 = vand.u32 65535, %v1523_v33 }
0x109c   :  { %v1527_v35 = vcvt.s32.f32 %v1525_v34  ;;  %v1526_v52 = vcvt.s32.f32 %v1524_v37 }
0x109e   :  { %1528 = vmin.xlane.f32.xlu0 %v1527_v35 }
0x1127   :  { %v1529_v51 = vpop.xlane.xlu0 %1528 }
0x1128   :  { %vm1530_vm13 = vcmp.eq.f32.partialorder %v1527_v35, %v1529_v51  ;;  %v1535_v55 = vcvt.f32.s32 %v1529_v51 }
0x1129   :  { %v1531_v54 = vsel %vm1530_vm13, %v1526_v52, inf }
0x112a   :  { %1532 = vmin.xlane.f32.xlu1 %v1531_v54  ;;  %v1536_v48 = vshll.u32 %v1535_v55, 16 }
0x11b3   :  { %v1533_v60 = vpop.xlane.xlu1 %1532 }
0x11b4   :  { %v1534_v61 = vcvt.f32.s32 %v1533_v60 }
0x11b6   :  { %v1537_v63 = vadd.s32 %v1536_v48, %v1534_v61 }
0x11b8   :  { %vm1538_vm5 = vcmp.eq.s32.totalorder %v7787_v30, %v1537_v63  ;;  %v7976_v56 = vsel %vm1829_vm15, %v1537_v63, %v1128_v1 }
0x11b9   :  { %v7979_v5 = vsel %vm1538_vm5, 1.0, %v7469_v0  ;;  %vm3233_vm5 = vcmp.eq.s32.totalorder %v7787_v30, 3 }
0x11ba   :  { %v1575_v7 = vrot.slane %v7979_v5, %v7755_v58 }
0x11bc   :  { %v1576_v59 = vcombine.high %v1575_v7, %v1575_v7  ;;  %v1583_v12 = vrot.slane %v1575_v7, %v7755_v58 }
0x11be   :  { %v1590_v16 = vrot.slane %v1576_v59, %v7755_v58  ;;  %v1594_v20 = vrot.slane %v1583_v12, %v7761_v2 }
0x11c0   :  { %v1601_v25 = vsel %vm890_vm9, %v1558_v26, %v1594_v20  ;;  %v1598_v23 = vrot.slane %v1590_v16, %v7761_v2 }
0x11c1   :  { %6552 = vmatmul.mubr.msk.f32.vlgmr.msra.gmra.mxu1 %vm893_vm10, %v1601_v25 }
0x11c2   :  { %6555 = vmatpush3.msra.mxu1 %v7838_v36  ;;  %6556 = vmatprep.mubr.msk.f32.mxu1 %vm7470_vm0, %v7469_v0  ;;  %v1602_v29 = vsel %vm890_vm9, %v1565_v17, %v1598_v23 }
0x11c3   :  { %6570 = vmatprep.subr.mxu1 %v7469_v0 }
0x11c5   :  { %6557 = vmatmul.mubr.msk.f32.vlgmr.msra.gmra.mxu1 %vm893_vm10, %v1602_v29 }
0x11c6   :  { %6571 = vmatpush3.msra.mxu1 %v7639_v4  ;;  %6578 = vmatprep.mubr.msk.f32.mxu1 %vm7470_vm0, %v7469_v0 }
0x11c7   :  { %6572 = vmatprep.subr.mxu1 %v7469_v0 }
0x11c8   :  { %6573 = vmatpush3.msra.mxu1 %v7642_v6 }
0x11c9   :  { %6574 = vmatprep.subr.mxu1 %v7469_v0 }
0x11ca   :  { %6575 = vmatpush3.msra.mxu1 %v7646_v8 }
0x11cb   :  { %6576 = vmatprep.subr.mxu1 %v7469_v0 }
0x11cc   :  { %6577 = vmatpush3.msra.mxu1 %v7653_v11 }
0x11cd   :  { %6592 = vmatprep.subr.mxu1 %v7469_v0 }
0x1281   :  { %v1672_v26 = vpop.f32.mrf.mxu1 }
0x1282   :  { %v1831_v4 = vrot.slane %v1672_v26, 1 }
0x1283   :  { %v6553_v17 = vpop.f32.mrf.mxu1 }
0x1285   :  { %v1745_v32 = vpop.f32.mrf.mxu1 }
0x1286   :  { %v1751_v33 = vrot.slane %v1745_v32, 7  ;;  %v1832_v34 = vsel %vm722_vm2, %v1745_v32, %v1831_v4 }
0x1287   :  { %1833 = vrot.lane.b32.xlu0 %v1832_v34, %s7475_s22  ;;  %v6558_v6 = vpop.f32.mrf.mxu1 }
0x1288   :  { %v1752_v35 = vsel %vm722_vm2, %v1751_v33, %v1672_v26 }
0x1289   :  { %6568 = vmatmul.mubr.msk.f32.vlgmr.msra.gmra.mxu0 %vm223_vm1, %v1752_v35 }
0x128a   :  { %6582 = vmatpush3.msra.mxu0 %v7650_v10  ;;  %6589 = vmatprep.mubr.msk.f32.mxu0 %vm7470_vm0, %v7469_v0 }
0x128b   :  { %6583 = vmatprep.subr.mxu0 %v7469_v0 }
0x128c   :  { %6584 = vmatpush3.msra.mxu0 %v7658_v13 }
0x128d   :  { %6585 = vmatprep.subr.mxu0 %v7469_v0 }
0x128e   :  { %6586 = vmatpush3.msra.mxu0 %v7663_v14 }
0x128f   :  { %6587 = vmatprep.subr.mxu0 %v7469_v0 }
0x1290   :  { %6588 = vmatpush3.msra.mxu0 %v7670_v15 }
0x1291   :  { %6603 = vmatprep.subr.mxu0 %v7469_v0 }
0x12f9   :  { %v1834_v8 = vpop.permute.xlu0 %1833 }
0x12fa   :  { %6579 = vmatmul.mubr.msk.f32.vlgmr.msra.gmra.mxu1 %vm223_vm1, %v1834_v8 }
0x12fb   :  { %6593 = vmatpush3.msra.mxu1 %v7710_v40  ;;  %6600 = vmatprep.mubr.msk.f32.mxu1 %vm7470_vm0, %v7469_v0 }
0x12fc   :  { %6594 = vmatprep.subr.mxu1 %v7469_v0 }
0x12fd   :  { %6595 = vmatpush3.msra.mxu1 %v7714_v42 }
0x12fe   :  { %6596 = vmatprep.subr.mxu1 %v7469_v0 }
0x12ff   :  { %6597 = vmatpush3.msra.mxu1 %v7722_v44 }
0x1300   :  { %6598 = vmatprep.subr.mxu1 %v7469_v0 }
0x1301   :  { %6599 = vmatpush3.msra.mxu1 %v7730_v46 }
0x1302   :  { %6614 = vmatprep.subr.mxu1 %v7469_v0 }
0x1349   :  { %v1821_v10 = vpop.f32.mrf.mxu0 }
0x134a   :  { %v1822_v11 = vadd.f32 %v1821_v10, %v7942_v39  ;;  %v1541_v10 = vsub.f32 1.0, %v7979_v5 }
0x134b   :  { %v6569_v13 = vpop.f32.mrf.mxu0 }
0x134c   :  { %v1825_v14 = vadd.f32 %v7901_v62, %v1822_v11  ;;  %v8086_v13 = vmul.f32 %v1541_v10, %v854_v50  ;;  %v8134_v10 = vld [vmem:[#allocation8 + $0x8] sm:$0xff] }
0x134e   :  { %7022 = vtanh.f32 %v1825_v14  ;;  %vm2195_vm6 = vcmp.eq.f32.partialorder %v8086_v13, 0.0 }
0x135b   :  { %v7023_v15 = vpop.eup %7022 }
0x135c   :  { %6590 = vmatmul.mubr.msk.f32.vlgmr.msra.gmra.mxu0 %vm223_vm1, %v7023_v15 }
0x135d   :  { %6604 = vmatpush3.msra.mxu0 %v7712_v41  ;;  %6611 = vmatprep.mubr.msk.f32.mxu0 %vm7470_vm0, %v7469_v0 }
0x135e   :  { %6605 = vmatprep.subr.mxu0 %v7469_v0 }
0x135f   :  { %6606 = vmatpush3.msra.mxu0 %v7718_v43 }
0x1360   :  { %6607 = vmatprep.subr.mxu0 %v7469_v0 }
0x1361   :  { %6608 = vmatpush3.msra.mxu0 %v7724_v45 }
0x1362   :  { %6609 = vmatprep.subr.mxu0 %v7469_v0 }
0x1363   :  { %6610 = vmatpush3.msra.mxu0 %v7732_v47 }
0x1364   :  { %6624 = vmatprep.subr.mxu0 %v7469_v0 }
0x13ba   :  { %v1903_v40 = vpop.f32.mrf.mxu1 }
0x13bb   :  { %v1904_v44 = vadd.f32 %v7690_v19, %v1903_v40 }
0x13bc   :  { %v6580_v42 = vpop.f32.mrf.mxu1 }
0x141c   :  { %v1976_v41 = vpop.f32.mrf.mxu0 }
0x141d   :  { %v1977_v46 = vadd.f32 %v7697_v22, %v1976_v41 }
0x141e   :  { %v6591_v39 = vpop.f32.mrf.mxu0 }
0x141f   :  { %v1980_v37 = vadd.f32 %v1977_v46, %v1904_v44 }
0x1421   :  { %7024 = vtanh.f32 %v1980_v37  ;;  %v6139_v45 = vmul.f32 -1.442695, %v1980_v37 }
0x1423   :  { %7026 = vpow2.f32 %v6139_v45 }
0x142e   :  { %v7025_v43 = vpop.eup %7024 }
0x142f   :  { %1990 = vrot.lane.b32.xlu1 %v7025_v43, %s7471_s3 }
0x1430   :  { %v7027_v51 = vpop.eup %7026 }
0x1431   :  { %v1984_v52 = vadd.f32 1.0, %v7027_v51 }
0x1433   :  { %7028 = vrcp.f32 %v1984_v52 }
0x1440   :  { %v7029_v47 = vpop.eup %7028 }
0x1441   :  { %v1988_v19 = vmul.f32 %v7029_v47, %v7921_v53 }
0x14a1   :  { %v1991_v54 = vpop.permute.xlu1 %1990 }
0x14a2   :  { %v1993_v55 = vmul.f32 %v7029_v47, %v1991_v54 }
0x14a4   :  { %1995 = vrot.lane.b32.xlu1 %v1993_v55, %s7472_s28 }
0x1516   :  { %v1996_v60 = vpop.permute.xlu1 %1995 }
0x1517   :  { %v8048_v22 = vadd.f32 %v1996_v60, %v1988_v19 }
0x1519   :  { %7030 = vtanh.f32 %v8048_v22 }
0x1526   :  { %v7031_v48 = vpop.eup %7030 }
0x1527   :  { %2001 = vrot.lane.b32.xlu1 %v7031_v48, %s7471_s3 }
0x1599   :  { %v2002_v61 = vpop.permute.xlu1 %2001 }
0x159a   :  { %v2004_v63 = vmul.f32 %v7029_v47, %v2002_v61 }
0x159c   :  { %2006 = vrot.lane.b32.xlu0 %v2004_v63, %s7472_s28 }
0x160e   :  { %v2007_v1 = vpop.permute.xlu0 %2006 }
0x160f   :  { %6601 = vmatmul.mubr.msk.f32.vlgmr.msra.gmra.mxu1 %vm223_vm1, %v2007_v1  ;;  %6612 = vmatmul.mubr.msk.f32.vlgmr.msra.gmra.mxu0 %vm223_vm1, %v2007_v1 }
0x1610   :  { %6615 = vmatpush3.msra.mxu1 %v7817_v3  ;;  %6616 = vmatprep.mubr.msk.f32.mxu1 %vm7470_vm0, %v7469_v0 }
0x1611   :  { %6619 = vmatprep.subr.mxu1 %v7469_v0  ;;  %6625 = vmatpush3.msra.mxu0 %v7857_v27 }
0x1612   :  { %6626 = vmatprep.subr.mxu0 %v7469_v0  ;;  %6632 = vmatprep.mubr.msk.f32.mxu0 %vm7470_vm0, %v7469_v0 }
0x1613   :  { %6627 = vmatpush3.msra.mxu0 %v7860_v28 }
0x1614   :  { %6628 = vmatprep.subr.mxu0 %v7469_v0 }
0x1615   :  { %6629 = vmatpush3.msra.mxu0 %v7865_v38 }
0x1616   :  { %6630 = vmatprep.subr.mxu0 %v7469_v0 }
0x1617   :  { %6631 = vmatpush3.msra.mxu0 %v7868_v49 }
0x1618   :  { %6646 = vmatprep.subr.mxu0 %v7469_v0 }
0x16cf   :  { %v8069_v53 = vpop.f32.mrf.mxu1  ;;  %v2146_v7 = vpop.f32.mrf.mxu0 }
0x16d0   :  { %v2147_v59 = vadd.f32 %v7753_v57, %v2146_v7 }
0x16d1   :  { %v6602_v12 = vpop.f32.mrf.mxu1  ;;  %v6613_v16 = vpop.f32.mrf.mxu0 }
0x16d2   :  { %v2157_v20 = vrot.slane %v2147_v59, %v7755_v58 }
0x16d4   :  { %v2158_v25 = vcombine.high %v2157_v20, %v2157_v20  ;;  %v2165_v23 = vrot.slane %v2157_v20, %v7755_v58 }
0x16d6   :  { %v2172_v29 = vrot.slane %v2158_v25, %v7755_v58  ;;  %v2176_v26 = vrot.slane %v2165_v23, %v7761_v2 }
0x16d8   :  { %v2180_v17 = vrot.slane %v2172_v29, %v7761_v2  ;;  %v2183_v4 = vadd.f32 %v2176_v26, %v7768_v9 }
0x16da   :  { %v2184_v32 = vadd.f32 %v2180_v17, %v7773_v18  ;;  %7032 = vtanh.f32 %v2183_v4 }
0x16dc   :  { %7034 = vtanh.f32 %v2184_v32 }
0x16e7   :  { %v7033_v57 = vpop.eup %7032 }
0x16e8   :  { %v2187_v33 = vmul.f32 %v7033_v57, %v7781_v21 }
0x16e9   :  { %v7035_v34 = vpop.eup %7034 }
0x16ea   :  { %v2189_v6 = vsel %vm223_vm1, %v2187_v33, 0.0  ;;  %v2188_v35 = vmul.f32 %v7035_v34, %v7781_v21 }
0x16eb   :  { %2190 = vadd.xlane.f32.xlu1 %v2189_v6 }
0x16ec   :  { %v2192_v8 = vsel %vm223_vm1, %v2188_v35, 0.0  ;;  %v8124_v35 = vld [vmem:[#allocation8 + $0x18] sm:$0xff] }
0x16ed   :  { %2193 = vadd.xlane.f32.xlu0 %v2192_v8  ;;  %v8130_v8 = vld [vmem:[#allocation8 + $0x10] sm:$0xff] }
0x1774   :  { %v2191_v11 = vpop.xlane.xlu1 %2190 }
0x1775   :  { %v2201_v15 = vrot.slane %v2191_v11, %v7790_v31  ;;  %v8138_v11 = vld [vmem:[#allocation8] sm:$0xff] }
0x1776   :  { %v2194_v14 = vpop.xlane.xlu0 %2193 }
0x1777   :  { %v2205_v40 = vrot.slane %v2194_v14, %v7790_v31 }
0x1779   :  { %v2206_v21 = vsel %vm722_vm2, %v2205_v40, %v2201_v15 }
0x177a   :  { %v2208_v42 = vsel %vm2195_vm6, -inf, %v2206_v21 }
0x177b   :  { %v2209_v41 = vsel %vm725_vm3, %v2208_v42, -inf }
0x177c   :  { %2210 = vmax.xlane.f32.xlu0 %v2209_v41 }
0x1805   :  { %v2211_v44 = vpop.xlane.xlu0 %2210 }
0x1806   :  { %v2212_v5 = vsub.f32 %v2208_v42, %v2211_v44 }
0x1808   :  { %v2213_v46 = vmul.f32 1.442695, %v2212_v5 }
0x180a   :  { %7036 = vpow2.f32 %v2213_v46  ;;  %v8146_v46 = vld [vmem:[#allocation10 + $0x18] sm:$0xff] }
0x1817   :  { %v7037_v24 = vpop.eup %7036 }
0x1818   :  { %v2215_v50 = vsel %vm725_vm3, %v7037_v24, 0.0 }
0x1819   :  { %2216 = vadd.xlane.f32.xlu0 %v2215_v50  ;;  %v8156_v50 = vld [vmem:[#allocation10 + $0x8] sm:$0xff] }
0x18a2   :  { %v2217_v39 = vpop.xlane.xlu0 %2216 }
0x18a3   :  { %7038 = vrcp.f32 %v2217_v39  ;;  %v8160_v39 = vld [vmem:[#allocation10] sm:$0xff] }
0x18b0   :  { %v7039_v37 = vpop.eup %7038 }
0x18b1   :  { %v2219_v43 = vmul.f32 %v7039_v37, %v7037_v24  ;;  %v8152_v24 = vld [vmem:[#allocation10 + $0x10] sm:$0xff] }
0x18b3   :  { %v2220_v45 = vsel %vm725_vm3, %v2219_v43, -inf  ;;  %v2252_v51 = vrot.slane %v2219_v43, %v7755_v58 }
0x18b4   :  { %2221 = vmax.xlane.f32.xlu1 %v2220_v45  ;;  %v8171_v45 = vld [vmem:[#allocation16 + $0x10] sm:$0xff] }
0x18b5   :  { %v2253_v52 = vcombine.high %v2252_v51, %v2252_v51  ;;  %v2260_v47 = vrot.slane %v2252_v51, %v7755_v58  ;;  %v8175_v51 = vld [vmem:[#allocation16 + $0x8] sm:$0xff] }
0x18b7   :  { %2529 = vst.msk [vmem:[#allocation17 + $0x2] sm:$0x1] %vm1124_vm4, %v2260_v47  ;;  %v2267_v54 = vrot.slane %v2253_v52, %v7755_v58  ;;  %v8179_v52 = vld [vmem:[#allocation16] sm:$0xff] }
0x18b9   :  { %2530 = vst.msk [vmem:[#allocation17 + $0xa] sm:$0x1] %vm1124_vm4, %v2267_v54 }
0x193d   :  { %v2222_v55 = vpop.xlane.xlu1 %2221 }
0x193e   :  { %vm2223_vm7 = vcmp.eq.f32.partialorder %v2219_v43, %v2222_v55  ;;  %v8165_v43 = vld [vmem:[#allocation16 + $0x18] sm:$0xff] }
0x193f   :  { %v2224_v19 = vsel %vm2223_vm7, %v7787_v30, 8 }
0x1940   :  { %v2225_v60 = vsel %vm725_vm3, %v2224_v19, 2147483647 }
0x1941   :  { %v2227_v48 = vshra.s32 %v2225_v60, 16  ;;  %v2226_v63 = vand.u32 65535, %v2225_v60 }
0x1943   :  { %v2229_v61 = vcvt.s32.f32 %v2227_v48  ;;  %v2228_v7 = vcvt.s32.f32 %v2226_v63  ;;  %v8186_v48 = vld [vmem:[#allocation11 + $0x18] sm:$0xff] }
0x1945   :  { %2230 = vmin.xlane.f32.xlu0 %v2229_v61 }
0x19ce   :  { %v2231_v1 = vpop.xlane.xlu0 %2230 }
0x19cf   :  { %vm2232_vm8 = vcmp.eq.f32.partialorder %v2229_v61, %v2231_v1  ;;  %v2237_v12 = vcvt.f32.s32 %v2231_v1  ;;  %v8192_v61 = vld [vmem:[#allocation11 + $0x10] sm:$0xff] }
0x19d0   :  { %v2233_v59 = vsel %vm2232_vm8, %v2228_v7, inf }
0x19d1   :  { %2234 = vmin.xlane.f32.xlu1 %v2233_v59  ;;  %v2238_v20 = vshll.u32 %v2237_v12, 16  ;;  %v8207_v59 = vld [vmem:[%s8902_s6] ss:$0 sm:$0xff] }
0x1a5a   :  { %v2235_v16 = vpop.xlane.xlu1 %2234 }
0x1a5b   :  { %v2236_v25 = vcvt.f32.s32 %v2235_v16  ;;  %v8213_v16 = vld [vmem:[%s8904_s8] ss:$0 sm:$0xff] }
0x1a5d   :  { %v2239_v23 = vadd.s32 %v2238_v20, %v2236_v25 }
0x1a5f   :  { %vm2240_vm12 = vcmp.eq.s32.totalorder %v7787_v30, %v2239_v23  ;;  %v8105_v29 = vsel %vm2531_vm11, %v2239_v23, %v7976_v56 }
0x1a60   :  { %v8108_v26 = vsel %vm2240_vm12, 1.0, %v7469_v0  ;;  %vm3935_vm12 = vcmp.eq.s32.totalorder %v7787_v30, 4 }
0x1a61   :  { %v2277_v17 = vrot.slane %v8108_v26, %v7755_v58 }
0x1a63   :  { %v2278_v4 = vcombine.high %v2277_v17, %v2277_v17  ;;  %v2285_v32 = vrot.slane %v2277_v17, %v7755_v58 }
0x1a65   :  { %v2292_v57 = vrot.slane %v2278_v4, %v7755_v58  ;;  %v2296_v33 = vrot.slane %v2285_v32, %v7761_v2 }
0x1a67   :  { %v2303_v34 = vsel %vm890_vm9, %v2260_v47, %v2296_v33  ;;  %v2300_v6 = vrot.slane %v2292_v57, %v7761_v2 }
0x1a68   :  { %6617 = vmatmul.mubr.msk.f32.vlgmr.msra.gmra.mxu1 %vm893_vm10, %v2303_v34 }
0x1a69   :  { %6620 = vmatpush3.msra.mxu1 %v7838_v36  ;;  %6621 = vmatprep.mubr.msk.f32.mxu1 %vm7470_vm0, %v7469_v0  ;;  %v2304_v56 = vsel %vm890_vm9, %v2267_v54, %v2300_v6 }
0x1a6a   :  { %6635 = vmatprep.subr.mxu1 %v7469_v0 }
0x1a6c   :  { %6622 = vmatmul.mubr.msk.f32.vlgmr.msra.gmra.mxu1 %vm893_vm10, %v2304_v56 }
0x1a6d   :  { %6636 = vmatpush3.msra.mxu1 %v8124_v35  ;;  %6643 = vmatprep.mubr.msk.f32.mxu1 %vm7470_vm0, %v7469_v0 }
0x1a6e   :  { %6637 = vmatprep.subr.mxu1 %v7469_v0 }
0x1a6f   :  { %6638 = vmatpush3.msra.mxu1 %v8130_v8 }
0x1a70   :  { %6639 = vmatprep.subr.mxu1 %v7469_v0 }
0x1a71   :  { %6640 = vmatpush3.msra.mxu1 %v8134_v10 }
0x1a72   :  { %6641 = vmatprep.subr.mxu1 %v7469_v0 }
0x1a73   :  { %6642 = vmatpush3.msra.mxu1 %v8138_v11 }
0x1a74   :  { %6657 = vmatprep.subr.mxu1 %v7469_v0 }
0x1b28   :  { %v2374_v14 = vpop.f32.mrf.mxu1 }
0x1b29   :  { %v2533_v40 = vrot.slane %v2374_v14, 1 }
0x1b2a   :  { %v6618_v15 = vpop.f32.mrf.mxu1 }
0x1b2c   :  { %v2447_v21 = vpop.f32.mrf.mxu1 }
0x1b2d   :  { %v2453_v42 = vrot.slane %v2447_v21, 7  ;;  %v2534_v41 = vsel %vm722_vm2, %v2447_v21, %v2533_v40 }
0x1b2e   :  { %2535 = vrot.lane.b32.xlu0 %v2534_v41, %s7475_s22  ;;  %v6623_v44 = vpop.f32.mrf.mxu1 }
0x1b2f   :  { %v2454_v5 = vsel %vm722_vm2, %v2453_v42, %v2374_v14  ;;  %v8245_v44 = vld [vmem:[%s8906_s10] ss:$0 sm:$0xff] }
0x1b30   :  { %6633 = vmatmul.mubr.msk.f32.vlgmr.msra.gmra.mxu0 %vm223_vm1, %v2454_v5 }
0x1b31   :  { %6647 = vmatpush3.msra.mxu0 %v8146_v46  ;;  %6654 = vmatprep.mubr.msk.f32.mxu0 %vm7470_vm0, %v7469_v0 }
0x1b32   :  { %6648 = vmatprep.subr.mxu0 %v7469_v0 }
0x1b33   :  { %6649 = vmatpush3.msra.mxu0 %v8152_v24 }
0x1b34   :  { %6650 = vmatprep.subr.mxu0 %v7469_v0 }
0x1b35   :  { %6651 = vmatpush3.msra.mxu0 %v8156_v50 }
0x1b36   :  { %6652 = vmatprep.subr.mxu0 %v7469_v0 }
0x1b37   :  { %6653 = vmatpush3.msra.mxu0 %v8160_v39 }
0x1b38   :  { %6668 = vmatprep.subr.mxu0 %v7469_v0 }
0x1ba0   :  { %v2536_v37 = vpop.permute.xlu0 %2535 }
0x1ba1   :  { %6644 = vmatmul.mubr.msk.f32.vlgmr.msra.gmra.mxu1 %vm223_vm1, %v2536_v37 }
0x1ba2   :  { %6658 = vmatpush3.msra.mxu1 %v8165_v43  ;;  %6665 = vmatprep.mubr.msk.f32.mxu1 %vm7470_vm0, %v7469_v0 }
0x1ba3   :  { %6659 = vmatprep.subr.mxu1 %v7469_v0 }
0x1ba4   :  { %6660 = vmatpush3.msra.mxu1 %v8171_v45 }
0x1ba5   :  { %6661 = vmatprep.subr.mxu1 %v7469_v0 }
0x1ba6   :  { %6662 = vmatpush3.msra.mxu1 %v8175_v51 }
0x1ba7   :  { %6663 = vmatprep.subr.mxu1 %v7469_v0 }
0x1ba8   :  { %6664 = vmatpush3.msra.mxu1 %v8179_v52 }
0x1ba9   :  { %6679 = vmatprep.subr.mxu1 %v7469_v0 }
0x1bf0   :  { %v2523_v47 = vpop.f32.mrf.mxu0 }
0x1bf1   :  { %v2524_v54 = vadd.f32 %v2523_v47, %v8069_v53  ;;  %v8200_v53 = vld [vmem:[#allocation11] sm:$0xff] }
0x1bf2   :  { %v6634_v55 = vpop.f32.mrf.mxu0 }
0x1bf3   :  { %v2527_v19 = vadd.f32 %v7901_v62, %v2524_v54  ;;  %v8196_v62 = vld [vmem:[#allocation11 + $0x8] sm:$0xff] }
0x1bf5   :  { %7040 = vtanh.f32 %v2527_v19 }
0x1c02   :  { %v7041_v60 = vpop.eup %7040 }
0x1c03   :  { %6655 = vmatmul.mubr.msk.f32.vlgmr.msra.gmra.mxu0 %vm223_vm1, %v7041_v60 }
0x1c04   :  { %6669 = vmatpush3.msra.mxu0 %v8186_v48  ;;  %6676 = vmatprep.mubr.msk.f32.mxu0 %vm7470_vm0, %v7469_v0 }
0x1c05   :  { %6670 = vmatprep.subr.mxu0 %v7469_v0 }
0x1c06   :  { %6671 = vmatpush3.msra.mxu0 %v8192_v61 }
0x1c07   :  { %6672 = vmatprep.subr.mxu0 %v7469_v0 }
0x1c08   :  { %6673 = vmatpush3.msra.mxu0 %v8196_v62 }
0x1c09   :  { %6674 = vmatprep.subr.mxu0 %v7469_v0 }
0x1c0a   :  { %6675 = vmatpush3.msra.mxu0 %v8200_v53 }
0x1c0b   :  { %6689 = vmatprep.subr.mxu0 %v7469_v0 }
0x1c61   :  { %v2605_v63 = vpop.f32.mrf.mxu1 }
0x1c62   :  { %v2606_v12 = vadd.f32 %v8207_v59, %v2605_v63 }
0x1c63   :  { %v6645_v1 = vpop.f32.mrf.mxu1 }
0x1cc3   :  { %v2678_v7 = vpop.f32.mrf.mxu0 }
0x1cc4   :  { %v2679_v20 = vadd.f32 %v8213_v16, %v2678_v7  ;;  %v8258_v7 = vld [vmem:[%s8909_s13] ss:$0 sm:$0xff] }
0x1cc5   :  { %v6656_v25 = vpop.f32.mrf.mxu0 }
0x1cc6   :  { %v2682_v23 = vadd.f32 %v2679_v20, %v2606_v12 }
0x1cc8   :  { %7042 = vtanh.f32 %v2682_v23  ;;  %v6148_v4 = vmul.f32 -1.442695, %v2682_v23 }
0x1cca   :  { %7044 = vpow2.f32 %v6148_v4  ;;  %v2243_v4 = vsub.f32 1.0, %v8108_v26 }
0x1cd5   :  { %v7043_v17 = vpop.eup %7042 }
0x1cd6   :  { %2692 = vrot.lane.b32.xlu1 %v7043_v17, %s7471_s3 }
0x1cd7   :  { %v7045_v32 = vpop.eup %7044 }
0x1cd8   :  { %v2686_v57 = vadd.f32 1.0, %v7045_v32 }
0x1cda   :  { %7046 = vrcp.f32 %v2686_v57  ;;  %v8266_v57 = vmul.f32 %v2243_v4, %v8086_v13 }
0x1cdc   :  { %vm2897_vm13 = vcmp.eq.f32.partialorder %v8266_v57, 0.0 }
0x1ce7   :  { %v7047_v33 = vpop.eup %7046 }
0x1ce8   :  { %v2690_v56 = vmul.f32 %v7047_v33, %v8048_v22 }
0x1d48   :  { %v2693_v34 = vpop.permute.xlu1 %2692 }
0x1d49   :  { %v2695_v6 = vmul.f32 %v7047_v33, %v2693_v34 }
0x1d4b   :  { %2697 = vrot.lane.b32.xlu1 %v2695_v6, %s7472_s28 }
0x1dbd   :  { %v2698_v14 = vpop.permute.xlu1 %2697 }
0x1dbe   :  { %v8219_v15 = vadd.f32 %v2698_v14, %v2690_v56 }
0x1dc0   :  { %7048 = vtanh.f32 %v8219_v15 }
0x1dcd   :  { %v7049_v40 = vpop.eup %7048 }
0x1dce   :  { %2703 = vrot.lane.b32.xlu1 %v7049_v40, %s7471_s3 }
0x1e40   :  { %v2704_v21 = vpop.permute.xlu1 %2703 }
0x1e41   :  { %v2706_v42 = vmul.f32 %v7047_v33, %v2704_v21 }
0x1e43   :  { %2708 = vrot.lane.b32.xlu0 %v2706_v42, %s7472_s28 }
0x1eb5   :  { %v2709_v41 = vpop.permute.xlu0 %2708 }
0x1eb6   :  { %6666 = vmatmul.mubr.msk.f32.vlgmr.msra.gmra.mxu1 %vm223_vm1, %v2709_v41  ;;  %6677 = vmatmul.mubr.msk.f32.vlgmr.msra.gmra.mxu0 %vm223_vm1, %v2709_v41 }
0x1eb7   :  { %6680 = vmatpush3.msra.mxu1 %v7817_v3  ;;  %6681 = vmatprep.mubr.msk.f32.mxu1 %vm7470_vm0, %v7469_v0 }
0x1eb8   :  { %6684 = vmatprep.subr.mxu1 %v7469_v0  ;;  %6690 = vmatpush3.msra.mxu0 %v7857_v27 }
0x1eb9   :  { %6691 = vmatprep.subr.mxu0 %v7469_v0  ;;  %6697 = vmatprep.mubr.msk.f32.mxu0 %vm7470_vm0, %v7469_v0 }
0x1eba   :  { %6692 = vmatpush3.msra.mxu0 %v7860_v28 }
0x1ebb   :  { %6693 = vmatprep.subr.mxu0 %v7469_v0 }
0x1ebc   :  { %6694 = vmatpush3.msra.mxu0 %v7865_v38 }
0x1ebd   :  { %6695 = vmatprep.subr.mxu0 %v7469_v0 }
0x1ebe   :  { %6696 = vmatpush3.msra.mxu0 %v7868_v49 }
0x1ebf   :  { %6711 = vmatprep.subr.mxu0 %v7469_v0 }
0x1f76   :  { %v8240_v22 = vpop.f32.mrf.mxu1  ;;  %v2848_v27 = vpop.f32.mrf.mxu0 }
0x1f77   :  { %v2849_v28 = vadd.f32 %v8245_v44, %v2848_v27 }
0x1f78   :  { %v6667_v5 = vpop.f32.mrf.mxu1  ;;  %v6678_v37 = vpop.f32.mrf.mxu0 }
0x1f79   :  { %v2859_v38 = vrot.slane %v2849_v28, %v7755_v58 }
0x1f7b   :  { %v2860_v47 = vcombine.high %v2859_v38, %v2859_v38  ;;  %v2867_v54 = vrot.slane %v2859_v38, %v7755_v58 }
0x1f7d   :  { %v2874_v49 = vrot.slane %v2860_v47, %v7755_v58  ;;  %v2878_v55 = vrot.slane %v2867_v54, %v7761_v2 }
0x1f7f   :  { %v2882_v19 = vrot.slane %v2874_v49, %v7761_v2  ;;  %v2885_v60 = vadd.f32 %v2878_v55, %v7768_v9 }
0x1f81   :  { %v2886_v63 = vadd.f32 %v2882_v19, %v7773_v18  ;;  %7050 = vtanh.f32 %v2885_v60 }
0x1f83   :  { %7052 = vtanh.f32 %v2886_v63 }
0x1f8e   :  { %v7051_v1 = vpop.eup %7050 }
0x1f8f   :  { %v2889_v12 = vmul.f32 %v8258_v7, %v7051_v1 }
0x1f90   :  { %v7053_v20 = vpop.eup %7052 }
0x1f91   :  { %v2891_v25 = vsel %vm223_vm1, %v2889_v12, 0.0  ;;  %v2890_v23 = vmul.f32 %v8258_v7, %v7053_v20 }
0x1f92   :  { %2892 = vadd.xlane.f32.xlu1 %v2891_v25 }
0x1f93   :  { %v2894_v17 = vsel %vm223_vm1, %v2890_v23, 0.0 }
0x1f94   :  { %2895 = vadd.xlane.f32.xlu0 %v2894_v17 }
0x201b   :  { %v2893_v32 = vpop.xlane.xlu1 %2892 }
0x201c   :  { %v2903_v34 = vrot.slane %v2893_v32, %v7790_v31 }
0x201d   :  { %v2896_v33 = vpop.xlane.xlu0 %2895 }
0x201e   :  { %v2907_v6 = vrot.slane %v2896_v33, %v7790_v31 }
0x2020   :  { %v2908_v56 = vsel %vm722_vm2, %v2907_v6, %v2903_v34 }
0x2021   :  { %v2910_v14 = vsel %vm2897_vm13, -inf, %v2908_v56 }
0x2022   :  { %v2911_v40 = vsel %vm725_vm3, %v2910_v14, -inf }
0x2023   :  { %2912 = vmax.xlane.f32.xlu0 %v2911_v40 }
0x20ac   :  { %v2913_v21 = vpop.xlane.xlu0 %2912 }
0x20ad   :  { %v2914_v42 = vsub.f32 %v2910_v14, %v2913_v21 }
0x20af   :  { %v2915_v26 = vmul.f32 1.442695, %v2914_v42 }
0x20b1   :  { %7054 = vpow2.f32 %v2915_v26 }
0x20be   :  { %v7055_v41 = vpop.eup %7054 }
0x20bf   :  { %v2917_v13 = vsel %vm725_vm3, %v7055_v41, 0.0 }
0x20c0   :  { %2918 = vadd.xlane.f32.xlu0 %v2917_v13 }
0x2149   :  { %v2919_v27 = vpop.xlane.xlu0 %2918 }
0x214a   :  { %7056 = vrcp.f32 %v2919_v27 }
0x2157   :  { %v7057_v28 = vpop.eup %7056 }
0x2158   :  { %v2921_v5 = vmul.f32 %v7057_v28, %v7055_v41 }
0x215a   :  { %v2922_v37 = vsel %vm725_vm3, %v2921_v5, -inf  ;;  %v2954_v38 = vrot.slane %v2921_v5, %v7755_v58 }
0x215b   :  { %2923 = vmax.xlane.f32.xlu1 %v2922_v37 }
0x215c   :  { %v2955_v47 = vcombine.high %v2954_v38, %v2954_v38  ;;  %v2962_v54 = vrot.slane %v2954_v38, %v7755_v58 }
0x215e   :  { %3231 = vst.msk [vmem:[#allocation17 + $0x3] sm:$0x1] %vm1124_vm4, %v2962_v54  ;;  %v2969_v49 = vrot.slane %v2955_v47, %v7755_v58 }
0x2160   :  { %3232 = vst.msk [vmem:[#allocation17 + $0xb] sm:$0x1] %vm1124_vm4, %v2969_v49 }
0x21e4   :  { %v2924_v55 = vpop.xlane.xlu1 %2923 }
0x21e5   :  { %vm2925_vm14 = vcmp.eq.f32.partialorder %v2921_v5, %v2924_v55 }
0x21e6   :  { %v2926_v19 = vsel %vm2925_vm14, %v7787_v30, 8 }
0x21e7   :  { %v2927_v60 = vsel %vm725_vm3, %v2926_v19, 2147483647 }
0x21e8   :  { %v2929_v63 = vshra.s32 %v2927_v60, 16  ;;  %v2928_v12 = vand.u32 65535, %v2927_v60 }
0x21ea   :  { %v2931_v1 = vcvt.s32.f32 %v2929_v63  ;;  %v2930_v25 = vcvt.s32.f32 %v2928_v12 }
0x21ec   :  { %2932 = vmin.xlane.f32.xlu0 %v2931_v1 }
0x2275   :  { %v2933_v20 = vpop.xlane.xlu0 %2932 }
0x2276   :  { %vm2934_vm15 = vcmp.eq.f32.partialorder %v2931_v1, %v2933_v20  ;;  %v2939_v17 = vcvt.f32.s32 %v2933_v20  ;;  %v8343_v1 = vld [vmem:[%s8912_s16] ss:$0 sm:$0xff] }
0x2277   :  { %v2935_v23 = vsel %vm2934_vm15, %v2930_v25, inf }
0x2278   :  { %2936 = vmin.xlane.f32.xlu1 %v2935_v23  ;;  %v2940_v32 = vshll.u32 %v2939_v17, 16 }
0x2301   :  { %v2937_v4 = vpop.xlane.xlu1 %2936 }
0x2302   :  { %v2938_v33 = vcvt.f32.s32 %v2937_v4 }
0x2304   :  { %v2941_v34 = vadd.s32 %v2940_v32, %v2938_v33 }
0x2306   :  { %vm2942_vm6 = vcmp.eq.s32.totalorder %v7787_v30, %v2941_v34  ;;  %v8285_v6 = vsel %vm3233_vm5, %v2941_v34, %v8105_v29 }
0x2307   :  { %v8288_v56 = vsel %vm2942_vm6, 1.0, %v7469_v0  ;;  %vm4637_vm6 = vcmp.eq.s32.totalorder %v7787_v30, 5 }
0x2308   :  { %v2979_v14 = vrot.slane %v8288_v56, %v7755_v58 }
0x230a   :  { %v2980_v40 = vcombine.high %v2979_v14, %v2979_v14  ;;  %v2987_v21 = vrot.slane %v2979_v14, %v7755_v58 }
0x230c   :  { %v2994_v42 = vrot.slane %v2980_v40, %v7755_v58  ;;  %v2998_v26 = vrot.slane %v2987_v21, %v7761_v2 }
0x230e   :  { %v3005_v41 = vsel %vm890_vm9, %v2962_v54, %v2998_v26  ;;  %v3002_v13 = vrot.slane %v2994_v42, %v7761_v2 }
0x230f   :  { %6682 = vmatmul.mubr.msk.f32.vlgmr.msra.gmra.mxu1 %vm893_vm10, %v3005_v41 }
0x2310   :  { %6685 = vmatpush3.msra.mxu1 %v7838_v36  ;;  %6686 = vmatprep.mubr.msk.f32.mxu1 %vm7470_vm0, %v7469_v0  ;;  %v3006_v29 = vsel %vm890_vm9, %v2969_v49, %v3002_v13 }
0x2311   :  { %6700 = vmatprep.subr.mxu1 %v7469_v0 }
0x2313   :  { %6687 = vmatmul.mubr.msk.f32.vlgmr.msra.gmra.mxu1 %vm893_vm10, %v3006_v29 }
0x2314   :  { %6701 = vmatpush3.msra.mxu1 %v8124_v35  ;;  %6708 = vmatprep.mubr.msk.f32.mxu1 %vm7470_vm0, %v7469_v0 }
0x2315   :  { %6702 = vmatprep.subr.mxu1 %v7469_v0 }
0x2316   :  { %6703 = vmatpush3.msra.mxu1 %v8130_v8 }
0x2317   :  { %6704 = vmatprep.subr.mxu1 %v7469_v0 }
0x2318   :  { %6705 = vmatpush3.msra.mxu1 %v8134_v10 }
0x2319   :  { %6706 = vmatprep.subr.mxu1 %v7469_v0 }
0x231a   :  { %6707 = vmatpush3.msra.mxu1 %v8138_v11 }
0x231b   :  { %6722 = vmatprep.subr.mxu1 %v7469_v0 }
0x23cf   :  { %v3076_v27 = vpop.f32.mrf.mxu1 }
0x23d0   :  { %v3235_v5 = vrot.slane %v3076_v27, 1 }
0x23d1   :  { %v6683_v28 = vpop.f32.mrf.mxu1 }
0x23d3   :  { %v3149_v37 = vpop.f32.mrf.mxu1 }
0x23d4   :  { %v3155_v38 = vrot.slane %v3149_v37, 7  ;;  %v3236_v47 = vsel %vm722_vm2, %v3149_v37, %v3235_v5 }
0x23d5   :  { %3237 = vrot.lane.b32.xlu0 %v3236_v47, %s7475_s22  ;;  %v6688_v54 = vpop.f32.mrf.mxu1  ;;  %v8379_v47 = vld [vmem:[#allocation14 + $0x10] sm:$0xff] }
0x23d6   :  { %v3156_v49 = vsel %vm722_vm2, %v3155_v38, %v3076_v27  ;;  %v8383_v54 = vld [vmem:[#allocation14 + $0x8] sm:$0xff] }
0x23d7   :  { %6698 = vmatmul.mubr.msk.f32.vlgmr.msra.gmra.mxu0 %vm223_vm1, %v3156_v49  ;;  %v8387_v49 = vld [vmem:[#allocation14] sm:$0xff] }
0x23d8   :  { %6712 = vmatpush3.msra.mxu0 %v8146_v46  ;;  %6719 = vmatprep.mubr.msk.f32.mxu0 %vm7470_vm0, %v7469_v0 }
0x23d9   :  { %6713 = vmatprep.subr.mxu0 %v7469_v0 }
0x23da   :  { %6714 = vmatpush3.msra.mxu0 %v8152_v24 }
0x23db   :  { %6715 = vmatprep.subr.mxu0 %v7469_v0 }
0x23dc   :  { %6716 = vmatpush3.msra.mxu0 %v8156_v50 }
0x23dd   :  { %6717 = vmatprep.subr.mxu0 %v7469_v0 }
0x23de   :  { %6718 = vmatpush3.msra.mxu0 %v8160_v39 }
0x23df   :  { %6733 = vmatprep.subr.mxu0 %v7469_v0 }
0x2447   :  { %v3238_v55 = vpop.permute.xlu0 %3237 }
0x2448   :  { %6709 = vmatmul.mubr.msk.f32.vlgmr.msra.gmra.mxu1 %vm223_vm1, %v3238_v55 }
0x2449   :  { %6723 = vmatpush3.msra.mxu1 %v8165_v43  ;;  %6730 = vmatprep.mubr.msk.f32.mxu1 %vm7470_vm0, %v7469_v0 }
0x244a   :  { %6724 = vmatprep.subr.mxu1 %v7469_v0 }
0x244b   :  { %6725 = vmatpush3.msra.mxu1 %v8171_v45 }
0x244c   :  { %6726 = vmatprep.subr.mxu1 %v7469_v0 }
0x244d   :  { %6727 = vmatpush3.msra.mxu1 %v8175_v51 }
0x244e   :  { %6728 = vmatprep.subr.mxu1 %v7469_v0 }
0x244f   :  { %6729 = vmatpush3.msra.mxu1 %v8179_v52 }
0x2450   :  { %6744 = vmatprep.subr.mxu1 %v7469_v0 }
0x2497   :  { %v3225_v19 = vpop.f32.mrf.mxu0 }
0x2498   :  { %v3226_v60 = vadd.f32 %v3225_v19, %v8240_v22 }
0x2499   :  { %v6699_v63 = vpop.f32.mrf.mxu0 }
0x249a   :  { %v3229_v12 = vadd.f32 %v8343_v1, %v3226_v60 }
0x249c   :  { %7058 = vtanh.f32 %v3229_v12 }
0x24a9   :  { %v7059_v20 = vpop.eup %7058 }
0x24aa   :  { %6720 = vmatmul.mubr.msk.f32.vlgmr.msra.gmra.mxu0 %vm223_vm1, %v7059_v20 }
0x24ab   :  { %6734 = vmatpush3.msra.mxu0 %v8186_v48  ;;  %6741 = vmatprep.mubr.msk.f32.mxu0 %vm7470_vm0, %v7469_v0 }
0x24ac   :  { %6735 = vmatprep.subr.mxu0 %v7469_v0 }
0x24ad   :  { %6736 = vmatpush3.msra.mxu0 %v8192_v61 }
0x24ae   :  { %6737 = vmatprep.subr.mxu0 %v7469_v0 }
0x24af   :  { %6738 = vmatpush3.msra.mxu0 %v8196_v62 }
0x24b0   :  { %6739 = vmatprep.subr.mxu0 %v7469_v0 }
0x24b1   :  { %6740 = vmatpush3.msra.mxu0 %v8200_v53 }
0x24b2   :  { %6754 = vmatprep.subr.mxu0 %v7469_v0 }
0x2508   :  { %v3307_v22 = vpop.f32.mrf.mxu1 }
0x2509   :  { %v3308_v17 = vadd.f32 %v8207_v59, %v3307_v22 }
0x250a   :  { %v6710_v25 = vpop.f32.mrf.mxu1 }
0x256a   :  { %v3380_v23 = vpop.f32.mrf.mxu0 }
0x256b   :  { %v3381_v4 = vadd.f32 %v8213_v16, %v3380_v23 }
0x256c   :  { %v6721_v32 = vpop.f32.mrf.mxu0 }
0x256d   :  { %v3384_v33 = vadd.f32 %v3381_v4, %v3308_v17 }
0x256f   :  { %7060 = vtanh.f32 %v3384_v33  ;;  %v6157_v14 = vmul.f32 -1.442695, %v3384_v33 }
0x2571   :  { %7062 = vpow2.f32 %v6157_v14 }
0x257c   :  { %v7061_v34 = vpop.eup %7060 }
0x257d   :  { %3394 = vrot.lane.b32.xlu1 %v7061_v34, %s7471_s3 }
0x257e   :  { %v7063_v40 = vpop.eup %7062 }
0x257f   :  { %v3388_v21 = vadd.f32 1.0, %v7063_v40 }
0x2581   :  { %7064 = vrcp.f32 %v3388_v21 }
0x258e   :  { %v7065_v42 = vpop.eup %7064 }
0x258f   :  { %v3392_v13 = vmul.f32 %v7065_v42, %v8219_v15  ;;  %v8373_v15 = vld [vmem:[#allocation14 + $0x18] sm:$0xff] }
0x25ef   :  { %v3395_v26 = vpop.permute.xlu1 %3394 }
0x25f0   :  { %v3397_v41 = vmul.f32 %v7065_v42, %v3395_v26 }
0x25f2   :  { %3399 = vrot.lane.b32.xlu1 %v3397_v41, %s7472_s28  ;;  %v2945_v41 = vsub.f32 1.0, %v8288_v56 }
0x2664   :  { %v3400_v29 = vpop.permute.xlu1 %3399 }
0x2665   :  { %v8362_v27 = vadd.f32 %v3400_v29, %v3392_v13  ;;  %v8407_v29 = vmul.f32 %v2945_v41, %v8266_v57 }
0x2667   :  { %7066 = vtanh.f32 %v8362_v27  ;;  %vm3599_vm7 = vcmp.eq.f32.partialorder %v8407_v29, 0.0 }
0x2674   :  { %v7067_v28 = vpop.eup %7066 }
0x2675   :  { %3405 = vrot.lane.b32.xlu1 %v7067_v28, %s7471_s3 }
0x26e7   :  { %v3406_v5 = vpop.permute.xlu1 %3405 }
0x26e8   :  { %v3408_v37 = vmul.f32 %v7065_v42, %v3406_v5 }
0x26ea   :  { %3410 = vrot.lane.b32.xlu0 %v3408_v37, %s7472_s28 }
0x275c   :  { %v3411_v38 = vpop.permute.xlu0 %3410 }
0x275d   :  { %6731 = vmatmul.mubr.msk.f32.vlgmr.msra.gmra.mxu1 %vm223_vm1, %v3411_v38  ;;  %6742 = vmatmul.mubr.msk.f32.vlgmr.msra.gmra.mxu0 %vm223_vm1, %v3411_v38 }
0x275e   :  { %6745 = vmatpush3.msra.mxu1 %v7817_v3  ;;  %6746 = vmatprep.mubr.msk.f32.mxu1 %vm7470_vm0, %v7469_v0 }
0x275f   :  { %6749 = vmatprep.subr.mxu1 %v7469_v0  ;;  %6755 = vmatpush3.msra.mxu0 %v8373_v15 }
0x2760   :  { %6756 = vmatprep.subr.mxu0 %v7469_v0  ;;  %6762 = vmatprep.mubr.msk.f32.mxu0 %vm7470_vm0, %v7469_v0 }
0x2761   :  { %6757 = vmatpush3.msra.mxu0 %v8379_v47 }
0x2762   :  { %6758 = vmatprep.subr.mxu0 %v7469_v0 }
0x2763   :  { %6759 = vmatpush3.msra.mxu0 %v8383_v54 }
0x2764   :  { %6760 = vmatprep.subr.mxu0 %v7469_v0 }
0x2765   :  { %6761 = vmatpush3.msra.mxu0 %v8387_v49 }
0x2766   :  { %6776 = vmatprep.subr.mxu0 %v7469_v0 }
0x281d   :  { %v8391_v55 = vpop.f32.mrf.mxu1  ;;  %v3550_v19 = vpop.f32.mrf.mxu0 }
0x281e   :  { %v3551_v60 = vadd.f32 %v8245_v44, %v3550_v19 }
0x281f   :  { %v6732_v63 = vpop.f32.mrf.mxu1  ;;  %v6743_v12 = vpop.f32.mrf.mxu0 }
0x2820   :  { %v3561_v20 = vrot.slane %v3551_v60, %v7755_v58 }
0x2822   :  { %v3562_v22 = vcombine.high %v3561_v20, %v3561_v20  ;;  %v3569_v25 = vrot.slane %v3561_v20, %v7755_v58 }
0x2824   :  { %v3576_v23 = vrot.slane %v3562_v22, %v7755_v58  ;;  %v3580_v17 = vrot.slane %v3569_v25, %v7761_v2 }
0x2826   :  { %v3584_v4 = vrot.slane %v3576_v23, %v7761_v2  ;;  %v3587_v32 = vadd.f32 %v3580_v17, %v7768_v9 }
0x2828   :  { %v3588_v33 = vadd.f32 %v3584_v4, %v7773_v18  ;;  %7068 = vtanh.f32 %v3587_v32 }
0x282a   :  { %7070 = vtanh.f32 %v3588_v33 }
0x2835   :  { %v7069_v34 = vpop.eup %7068 }
0x2836   :  { %v3591_v14 = vmul.f32 %v8258_v7, %v7069_v34 }
0x2837   :  { %v7071_v40 = vpop.eup %7070 }
0x2838   :  { %v3593_v21 = vsel %vm223_vm1, %v3591_v14, 0.0  ;;  %v3592_v42 = vmul.f32 %v8258_v7, %v7071_v40 }
0x2839   :  { %3594 = vadd.xlane.f32.xlu1 %v3593_v21 }
0x283a   :  { %v3596_v26 = vsel %vm223_vm1, %v3592_v42, 0.0 }
0x283b   :  { %3597 = vadd.xlane.f32.xlu0 %v3596_v26 }
0x28c2   :  { %v3595_v13 = vpop.xlane.xlu1 %3594 }
0x28c3   :  { %v3605_v5 = vrot.slane %v3595_v13, %v7790_v31 }
0x28c4   :  { %v3598_v28 = vpop.xlane.xlu0 %3597 }
0x28c5   :  { %v3609_v37 = vrot.slane %v3598_v28, %v7790_v31 }
0x28c7   :  { %v3610_v38 = vsel %vm722_vm2, %v3609_v37, %v3605_v5 }
0x28c8   :  { %v3612_v19 = vsel %vm3599_vm7, -inf, %v3610_v38 }
0x28c9   :  { %v3613_v60 = vsel %vm725_vm3, %v3612_v19, -inf }
0x28ca   :  { %3614 = vmax.xlane.f32.xlu0 %v3613_v60 }
0x2953   :  { %v3615_v63 = vpop.xlane.xlu0 %3614 }
0x2954   :  { %v3616_v12 = vsub.f32 %v3612_v19, %v3615_v63 }
0x2956   :  { %v3617_v56 = vmul.f32 1.442695, %v3616_v12 }
0x2958   :  { %7072 = vpow2.f32 %v3617_v56 }
0x2965   :  { %v7073_v20 = vpop.eup %7072 }
0x2966   :  { %v3619_v57 = vsel %vm725_vm3, %v7073_v20, 0.0 }
0x2967   :  { %3620 = vadd.xlane.f32.xlu0 %v3619_v57 }
0x29f0   :  { %v3621_v22 = vpop.xlane.xlu0 %3620 }
0x29f1   :  { %7074 = vrcp.f32 %v3621_v22 }
0x29fe   :  { %v7075_v25 = vpop.eup %7074 }
0x29ff   :  { %v3623_v23 = vmul.f32 %v7075_v25, %v7073_v20 }
0x2a01   :  { %v3624_v17 = vsel %vm725_vm3, %v3623_v23, -inf  ;;  %v3656_v4 = vrot.slane %v3623_v23, %v7755_v58 }
0x2a02   :  { %3625 = vmax.xlane.f32.xlu1 %v3624_v17 }
0x2a03   :  { %v3657_v32 = vcombine.high %v3656_v4, %v3656_v4  ;;  %v3664_v33 = vrot.slane %v3656_v4, %v7755_v58 }
0x2a05   :  { %3933 = vst.msk [vmem:[#allocation17 + $0x4] sm:$0x1] %vm1124_vm4, %v3664_v33  ;;  %v3671_v34 = vrot.slane %v3657_v32, %v7755_v58 }
0x2a07   :  { %3934 = vst.msk [vmem:[#allocation17 + $0xc] sm:$0x1] %vm1124_vm4, %v3671_v34 }
0x2a8b   :  { %v3626_v14 = vpop.xlane.xlu1 %3625 }
0x2a8c   :  { %vm3627_vm8 = vcmp.eq.f32.partialorder %v3623_v23, %v3626_v14 }
0x2a8d   :  { %v3628_v40 = vsel %vm3627_vm8, %v7787_v30, 8 }
0x2a8e   :  { %v3629_v21 = vsel %vm725_vm3, %v3628_v40, 2147483647 }
0x2a8f   :  { %v3631_v42 = vshra.s32 %v3629_v21, 16  ;;  %v3630_v41 = vand.u32 65535, %v3629_v21 }
0x2a91   :  { %v3633_v26 = vcvt.s32.f32 %v3631_v42  ;;  %v3632_v28 = vcvt.s32.f32 %v3630_v41 }
0x2a93   :  { %3634 = vmin.xlane.f32.xlu0 %v3633_v26 }
0x2b1c   :  { %v3635_v13 = vpop.xlane.xlu0 %3634 }
0x2b1d   :  { %vm3636_vm11 = vcmp.eq.f32.partialorder %v3633_v26, %v3635_v13  ;;  %v3641_v37 = vcvt.f32.s32 %v3635_v13 }
0x2b1e   :  { %v3637_v5 = vsel %vm3636_vm11, %v3632_v28, inf }
0x2b1f   :  { %3638 = vmin.xlane.f32.xlu1 %v3637_v5  ;;  %v3642_v19 = vshll.u32 %v3641_v37, 16 }
0x2ba8   :  { %v3639_v38 = vpop.xlane.xlu1 %3638 }
0x2ba9   :  { %v3640_v60 = vcvt.f32.s32 %v3639_v38 }
0x2bab   :  { %v3643_v63 = vadd.s32 %v3642_v19, %v3640_v60 }
0x2bad   :  { %vm3644_vm13 = vcmp.eq.s32.totalorder %v7787_v30, %v3643_v63  ;;  %v8426_v12 = vsel %vm3935_vm12, %v3643_v63, %v8285_v6 }
0x2bae   :  { %v8429_v56 = vsel %vm3644_vm13, 1.0, %v7469_v0  ;;  %vm5339_vm13 = vcmp.eq.s32.totalorder %v7787_v30, 6 }
0x2baf   :  { %v3681_v20 = vrot.slane %v8429_v56, %v7755_v58 }
0x2bb1   :  { %v3682_v57 = vcombine.high %v3681_v20, %v3681_v20  ;;  %v3689_v22 = vrot.slane %v3681_v20, %v7755_v58 }
0x2bb3   :  { %v3696_v25 = vrot.slane %v3682_v57, %v7755_v58  ;;  %v3700_v23 = vrot.slane %v3689_v22, %v7761_v2 }
0x2bb5   :  { %v3707_v17 = vsel %vm890_vm9, %v3664_v33, %v3700_v23  ;;  %v3704_v4 = vrot.slane %v3696_v25, %v7761_v2 }
0x2bb6   :  { %6747 = vmatmul.mubr.msk.f32.vlgmr.msra.gmra.mxu1 %vm893_vm10, %v3707_v17 }
0x2bb7   :  { %6750 = vmatpush3.msra.mxu1 %v7838_v36  ;;  %6751 = vmatprep.mubr.msk.f32.mxu1 %vm7470_vm0, %v7469_v0  ;;  %v3708_v6 = vsel %vm890_vm9, %v3671_v34, %v3704_v4 }
0x2bb8   :  { %6765 = vmatprep.subr.mxu1 %v7469_v0 }
0x2bba   :  { %6752 = vmatmul.mubr.msk.f32.vlgmr.msra.gmra.mxu1 %vm893_vm10, %v3708_v6 }
0x2bbb   :  { %6766 = vmatpush3.msra.mxu1 %v8124_v35  ;;  %6773 = vmatprep.mubr.msk.f32.mxu1 %vm7470_vm0, %v7469_v0 }
0x2bbc   :  { %6767 = vmatprep.subr.mxu1 %v7469_v0 }
0x2bbd   :  { %6768 = vmatpush3.msra.mxu1 %v8130_v8 }
0x2bbe   :  { %6769 = vmatprep.subr.mxu1 %v7469_v0 }
0x2bbf   :  { %6770 = vmatpush3.msra.mxu1 %v8134_v10 }
0x2bc0   :  { %6771 = vmatprep.subr.mxu1 %v7469_v0 }
0x2bc1   :  { %6772 = vmatpush3.msra.mxu1 %v8138_v11 }
0x2bc2   :  { %6787 = vmatprep.subr.mxu1 %v7469_v0 }
0x2c76   :  { %v3778_v32 = vpop.f32.mrf.mxu1 }
0x2c77   :  { %v3937_v35 = vrot.slane %v3778_v32, 1 }
0x2c78   :  { %v6748_v33 = vpop.f32.mrf.mxu1 }
0x2c7a   :  { %v3851_v34 = vpop.f32.mrf.mxu1 }
0x2c7b   :  { %v3857_v14 = vrot.slane %v3851_v34, 7  ;;  %v3938_v40 = vsel %vm722_vm2, %v3851_v34, %v3937_v35 }
0x2c7c   :  { %3939 = vrot.lane.b32.xlu0 %v3938_v40, %s7475_s22  ;;  %v6753_v8 = vpop.f32.mrf.mxu1 }
0x2c7d   :  { %v3858_v21 = vsel %vm722_vm2, %v3857_v14, %v3778_v32 }
0x2c7e   :  { %6763 = vmatmul.mubr.msk.f32.vlgmr.msra.gmra.mxu0 %vm223_vm1, %v3858_v21 }
0x2c7f   :  { %6777 = vmatpush3.msra.mxu0 %v8146_v46  ;;  %6784 = vmatprep.mubr.msk.f32.mxu0 %vm7470_vm0, %v7469_v0 }
0x2c80   :  { %6778 = vmatprep.subr.mxu0 %v7469_v0 }
0x2c81   :  { %6779 = vmatpush3.msra.mxu0 %v8152_v24 }
0x2c82   :  { %6780 = vmatprep.subr.mxu0 %v7469_v0 }
0x2c83   :  { %6781 = vmatpush3.msra.mxu0 %v8156_v50 }
0x2c84   :  { %6782 = vmatprep.subr.mxu0 %v7469_v0 }
0x2c85   :  { %6783 = vmatpush3.msra.mxu0 %v8160_v39 }
0x2c86   :  { %6798 = vmatprep.subr.mxu0 %v7469_v0 }
0x2cee   :  { %v3940_v10 = vpop.permute.xlu0 %3939 }
0x2cef   :  { %6774 = vmatmul.mubr.msk.f32.vlgmr.msra.gmra.mxu1 %vm223_vm1, %v3940_v10  ;;  %v3647_v10 = vsub.f32 1.0, %v8429_v56 }
0x2cf0   :  { %6788 = vmatpush3.msra.mxu1 %v8165_v43  ;;  %6795 = vmatprep.mubr.msk.f32.mxu1 %vm7470_vm0, %v7469_v0 }
0x2cf1   :  { %6789 = vmatprep.subr.mxu1 %v7469_v0 }
0x2cf2   :  { %6790 = vmatpush3.msra.mxu1 %v8171_v45 }
0x2cf3   :  { %6791 = vmatprep.subr.mxu1 %v7469_v0 }
0x2cf4   :  { %6792 = vmatpush3.msra.mxu1 %v8175_v51 }
0x2cf5   :  { %6793 = vmatprep.subr.mxu1 %v7469_v0 }
0x2cf6   :  { %6794 = vmatpush3.msra.mxu1 %v8179_v52 }
0x2cf7   :  { %6809 = vmatprep.subr.mxu1 %v7469_v0 }
0x2d3e   :  { %v3927_v11 = vpop.f32.mrf.mxu0 }
0x2d3f   :  { %v3928_v46 = vadd.f32 %v3927_v11, %v8391_v55 }
0x2d40   :  { %v6764_v24 = vpop.f32.mrf.mxu0 }
0x2d41   :  { %v3931_v50 = vadd.f32 %v8343_v1, %v3928_v46  ;;  %v8535_v46 = vmul.f32 %v3647_v10, %v8407_v29  ;;  %v8583_v10 = vld [vmem:[#allocation8 + $0x8] sm:$0xff] }
0x2d43   :  { %7076 = vtanh.f32 %v3931_v50  ;;  %vm4301_vm14 = vcmp.eq.f32.partialorder %v8535_v46, 0.0 }
0x2d50   :  { %v7077_v39 = vpop.eup %7076 }
0x2d51   :  { %6785 = vmatmul.mubr.msk.f32.vlgmr.msra.gmra.mxu0 %vm223_vm1, %v7077_v39 }
0x2d52   :  { %6799 = vmatpush3.msra.mxu0 %v8186_v48  ;;  %6806 = vmatprep.mubr.msk.f32.mxu0 %vm7470_vm0, %v7469_v0 }
0x2d53   :  { %6800 = vmatprep.subr.mxu0 %v7469_v0 }
0x2d54   :  { %6801 = vmatpush3.msra.mxu0 %v8192_v61 }
0x2d55   :  { %6802 = vmatprep.subr.mxu0 %v7469_v0 }
0x2d56   :  { %6803 = vmatpush3.msra.mxu0 %v8196_v62 }
0x2d57   :  { %6804 = vmatprep.subr.mxu0 %v7469_v0 }
0x2d58   :  { %6805 = vmatpush3.msra.mxu0 %v8200_v53 }
0x2d59   :  { %6819 = vmatprep.subr.mxu0 %v7469_v0 }
0x2daf   :  { %v4009_v43 = vpop.f32.mrf.mxu1 }
0x2db0   :  { %v4010_v52 = vadd.f32 %v8207_v59, %v4009_v43 }
0x2db1   :  { %v6775_v45 = vpop.f32.mrf.mxu1 }
0x2e11   :  { %v4082_v51 = vpop.f32.mrf.mxu0 }
0x2e12   :  { %v4083_v48 = vadd.f32 %v8213_v16, %v4082_v51 }
0x2e13   :  { %v6786_v55 = vpop.f32.mrf.mxu0 }
0x2e14   :  { %v4086_v42 = vadd.f32 %v4083_v48, %v4010_v52 }
0x2e16   :  { %7078 = vtanh.f32 %v4086_v42  ;;  %v6166_v62 = vmul.f32 -1.442695, %v4086_v42 }
0x2e18   :  { %7080 = vpow2.f32 %v6166_v62 }
0x2e23   :  { %v7079_v61 = vpop.eup %7078 }
0x2e24   :  { %4096 = vrot.lane.b32.xlu1 %v7079_v61, %s7471_s3 }
0x2e25   :  { %v7081_v26 = vpop.eup %7080 }
0x2e26   :  { %v4090_v41 = vadd.f32 1.0, %v7081_v26 }
0x2e28   :  { %7082 = vrcp.f32 %v4090_v41 }
0x2e35   :  { %v7083_v53 = vpop.eup %7082 }
0x2e36   :  { %v4094_v59 = vmul.f32 %v7083_v53, %v8362_v27 }
0x2e96   :  { %v4097_v13 = vpop.permute.xlu1 %4096 }
0x2e97   :  { %v4099_v28 = vmul.f32 %v7083_v53, %v4097_v13 }
0x2e99   :  { %4101 = vrot.lane.b32.xlu1 %v4099_v28, %s7472_s28 }
0x2f0b   :  { %v4102_v5 = vpop.permute.xlu1 %4101 }
0x2f0c   :  { %v8498_v16 = vadd.f32 %v4102_v5, %v4094_v59 }
0x2f0e   :  { %7084 = vtanh.f32 %v8498_v16 }
0x2f1b   :  { %v7085_v37 = vpop.eup %7084 }
0x2f1c   :  { %4107 = vrot.lane.b32.xlu1 %v7085_v37, %s7471_s3 }
0x2f8e   :  { %v4108_v38 = vpop.permute.xlu1 %4107 }
0x2f8f   :  { %v4110_v19 = vmul.f32 %v7083_v53, %v4108_v38 }
0x2f91   :  { %4112 = vrot.lane.b32.xlu0 %v4110_v19, %s7472_s28 }
0x3003   :  { %v4113_v60 = vpop.permute.xlu0 %4112 }
0x3004   :  { %6796 = vmatmul.mubr.msk.f32.vlgmr.msra.gmra.mxu1 %vm223_vm1, %v4113_v60  ;;  %6807 = vmatmul.mubr.msk.f32.vlgmr.msra.gmra.mxu0 %vm223_vm1, %v4113_v60 }
0x3005   :  { %6810 = vmatpush3.msra.mxu1 %v7817_v3  ;;  %6811 = vmatprep.mubr.msk.f32.mxu1 %vm7470_vm0, %v7469_v0 }
0x3006   :  { %6814 = vmatprep.subr.mxu1 %v7469_v0  ;;  %6820 = vmatpush3.msra.mxu0 %v8373_v15 }
0x3007   :  { %6821 = vmatprep.subr.mxu0 %v7469_v0  ;;  %6827 = vmatprep.mubr.msk.f32.mxu0 %vm7470_vm0, %v7469_v0 }
0x3008   :  { %6822 = vmatpush3.msra.mxu0 %v8379_v47 }
0x3009   :  { %6823 = vmatprep.subr.mxu0 %v7469_v0 }
0x300a   :  { %6824 = vmatpush3.msra.mxu0 %v8383_v54 }
0x300b   :  { %6825 = vmatprep.subr.mxu0 %v7469_v0 }
0x300c   :  { %6826 = vmatpush3.msra.mxu0 %v8387_v49 }
0x300d   :  { %6841 = vmatprep.subr.mxu0 %v7469_v0 }
0x30c4   :  { %v8519_v27 = vpop.f32.mrf.mxu1  ;;  %v4252_v63 = vpop.f32.mrf.mxu0 }
0x30c5   :  { %v4253_v20 = vadd.f32 %v8245_v44, %v4252_v63 }
0x30c6   :  { %v6797_v57 = vpop.f32.mrf.mxu1  ;;  %v6808_v22 = vpop.f32.mrf.mxu0 }
0x30c7   :  { %v4263_v25 = vrot.slane %v4253_v20, %v7755_v58 }
0x30c9   :  { %v4264_v23 = vcombine.high %v4263_v25, %v4263_v25  ;;  %v4271_v17 = vrot.slane %v4263_v25, %v7755_v58 }
0x30cb   :  { %v4278_v4 = vrot.slane %v4264_v23, %v7755_v58  ;;  %v4282_v6 = vrot.slane %v4271_v17, %v7761_v2 }
0x30cd   :  { %v4286_v32 = vrot.slane %v4278_v4, %v7761_v2  ;;  %v4289_v33 = vadd.f32 %v4282_v6, %v7768_v9 }
0x30cf   :  { %v4290_v35 = vadd.f32 %v4286_v32, %v7773_v18  ;;  %7086 = vtanh.f32 %v4289_v33 }
0x30d1   :  { %7088 = vtanh.f32 %v4290_v35 }
0x30dc   :  { %v7087_v44 = vpop.eup %7086 }
0x30dd   :  { %v4293_v34 = vmul.f32 %v8258_v7, %v7087_v44 }
0x30de   :  { %v7089_v14 = vpop.eup %7088 }
0x30df   :  { %v4295_v40 = vsel %vm223_vm1, %v4293_v34, 0.0  ;;  %v4294_v8 = vmul.f32 %v8258_v7, %v7089_v14 }
0x30e0   :  { %4296 = vadd.xlane.f32.xlu1 %v4295_v40 }
0x30e1   :  { %v4298_v21 = vsel %vm223_vm1, %v4294_v8, 0.0  ;;  %v8573_v8 = vld [vmem:[#allocation8 + $0x18] sm:$0xff] }
0x30e2   :  { %4299 = vadd.xlane.f32.xlu0 %v4298_v21  ;;  %v8579_v21 = vld [vmem:[#allocation8 + $0x10] sm:$0xff] }
0x3169   :  { %v4297_v11 = vpop.xlane.xlu1 %4296 }
0x316a   :  { %v4307_v50 = vrot.slane %v4297_v11, %v7790_v31  ;;  %v8587_v11 = vld [vmem:[#allocation8] sm:$0xff] }
0x316b   :  { %v4300_v24 = vpop.xlane.xlu0 %4299 }
0x316c   :  { %v4311_v39 = vrot.slane %v4300_v24, %v7790_v31 }
0x316e   :  { %v4312_v43 = vsel %vm722_vm2, %v4311_v39, %v4307_v50 }
0x316f   :  { %v4314_v7 = vsel %vm4301_vm14, -inf, %v4312_v43 }
0x3170   :  { %v4315_v45 = vsel %vm725_vm3, %v4314_v7, -inf }
0x3171   :  { %4316 = vmax.xlane.f32.xlu0 %v4315_v45 }
0x31fa   :  { %v4317_v51 = vpop.xlane.xlu0 %4316 }
0x31fb   :  { %v4318_v52 = vsub.f32 %v4314_v7, %v4317_v51 }
0x31fd   :  { %v4319_v56 = vmul.f32 1.442695, %v4318_v52 }
0x31ff   :  { %7090 = vpow2.f32 %v4319_v56  ;;  %v8595_v56 = vld [vmem:[#allocation10 + $0x18] sm:$0xff] }
0x320c   :  { %v7091_v48 = vpop.eup %7090 }
0x320d   :  { %v4321_v29 = vsel %vm725_vm3, %v7091_v48, 0.0 }
0x320e   :  { %4322 = vadd.xlane.f32.xlu0 %v4321_v29  ;;  %v8605_v29 = vld [vmem:[#allocation10 + $0x8] sm:$0xff] }
0x3297   :  { %v4323_v55 = vpop.xlane.xlu0 %4322 }
0x3298   :  { %7092 = vrcp.f32 %v4323_v55  ;;  %v8609_v55 = vld [vmem:[#allocation10] sm:$0xff] }
0x32a5   :  { %v7093_v42 = vpop.eup %7092 }
0x32a6   :  { %v4325_v61 = vmul.f32 %v7093_v42, %v7091_v48  ;;  %v8601_v48 = vld [vmem:[#allocation10 + $0x10] sm:$0xff] }
0x32a8   :  { %v4326_v62 = vsel %vm725_vm3, %v4325_v61, -inf  ;;  %v4358_v26 = vrot.slane %v4325_v61, %v7755_v58 }
0x32a9   :  { %4327 = vmax.xlane.f32.xlu1 %v4326_v62  ;;  %v8620_v62 = vld [vmem:[#allocation16 + $0x10] sm:$0xff] }
0x32aa   :  { %v4359_v41 = vcombine.high %v4358_v26, %v4358_v26  ;;  %v4366_v53 = vrot.slane %v4358_v26, %v7755_v58  ;;  %v8624_v26 = vld [vmem:[#allocation16 + $0x8] sm:$0xff] }
0x32ac   :  { %4635 = vst.msk [vmem:[#allocation17 + $0x5] sm:$0x1] %vm1124_vm4, %v4366_v53  ;;  %v4373_v13 = vrot.slane %v4359_v41, %v7755_v58  ;;  %v8628_v41 = vld [vmem:[#allocation16] sm:$0xff] }
0x32ae   :  { %4636 = vst.msk [vmem:[#allocation17 + $0xd] sm:$0x1] %vm1124_vm4, %v4373_v13 }
0x3332   :  { %v4328_v28 = vpop.xlane.xlu1 %4327 }
0x3333   :  { %vm4329_vm15 = vcmp.eq.f32.partialorder %v4325_v61, %v4328_v28  ;;  %v8614_v61 = vld [vmem:[#allocation16 + $0x18] sm:$0xff] }
0x3334   :  { %v4330_v59 = vsel %vm4329_vm15, %v7787_v30, 8 }
0x3335   :  { %v4331_v5 = vsel %vm725_vm3, %v4330_v59, 2147483647 }
0x3336   :  { %v4333_v37 = vshra.s32 %v4331_v5, 16  ;;  %v4332_v19 = vand.u32 65535, %v4331_v5 }
0x3338   :  { %v4335_v38 = vcvt.s32.f32 %v4333_v37  ;;  %v4334_v63 = vcvt.s32.f32 %v4332_v19  ;;  %v8635_v37 = vld [vmem:[#allocation11 + $0x18] sm:$0xff] }
0x333a   :  { %4336 = vmin.xlane.f32.xlu0 %v4335_v38 }
0x33c3   :  { %v4337_v60 = vpop.xlane.xlu0 %4336 }
0x33c4   :  { %vm4338_vm5 = vcmp.eq.f32.partialorder %v4335_v38, %v4337_v60  ;;  %v4343_v57 = vcvt.f32.s32 %v4337_v60  ;;  %v8641_v38 = vld [vmem:[#allocation11 + $0x10] sm:$0xff] }
0x33c5   :  { %v4339_v20 = vsel %vm4338_vm5, %v4334_v63, inf }
0x33c6   :  { %4340 = vmin.xlane.f32.xlu1 %v4339_v20  ;;  %v4344_v25 = vshll.u32 %v4343_v57, 16  ;;  %v8656_v20 = vld [vmem:[%s8902_s6] ss:$0 sm:$0xff] }
0x344f   :  { %v4341_v22 = vpop.xlane.xlu1 %4340 }
0x3450   :  { %v4342_v23 = vcvt.f32.s32 %v4341_v22  ;;  %v8662_v22 = vld [vmem:[%s8904_s8] ss:$0 sm:$0xff] }
0x3452   :  { %v4345_v17 = vadd.s32 %v4344_v25, %v4342_v23 }
0x3454   :  { %vm4346_vm7 = vcmp.eq.s32.totalorder %v7787_v30, %v4345_v17  ;;  %v8554_v4 = vsel %vm4637_vm6, %v4345_v17, %v8426_v12 }
0x3455   :  { %v8557_v6 = vsel %vm4346_vm7, 1.0, %v7469_v0  ;;  %vm6042_vm7 = vcmask 254976  }
0x3456   :  { %v4383_v32 = vrot.slane %v8557_v6, %v7755_v58 }
0x3458   :  { %v4384_v33 = vcombine.high %v4383_v32, %v4383_v32  ;;  %v4391_v35 = vrot.slane %v4383_v32, %v7755_v58 }
0x345a   :  { %v4398_v44 = vrot.slane %v4384_v33, %v7755_v58  ;;  %v4402_v34 = vrot.slane %v4391_v35, %v7761_v2 }
0x345c   :  { %v4409_v14 = vsel %vm890_vm9, %v4366_v53, %v4402_v34  ;;  %v4406_v40 = vrot.slane %v4398_v44, %v7761_v2 }
0x345d   :  { %6812 = vmatmul.mubr.msk.f32.vlgmr.msra.gmra.mxu1 %vm893_vm10, %v4409_v14 }
0x345e   :  { %6815 = vmatpush3.msra.mxu1 %v7838_v36  ;;  %6816 = vmatprep.mubr.msk.f32.mxu1 %vm7470_vm0, %v7469_v0  ;;  %v4410_v12 = vsel %vm890_vm9, %v4373_v13, %v4406_v40 }
0x345f   :  { %6830 = vmatprep.subr.mxu1 %v7469_v0 }
0x3461   :  { %6817 = vmatmul.mubr.msk.f32.vlgmr.msra.gmra.mxu1 %vm893_vm10, %v4410_v12 }
0x3462   :  { %6831 = vmatpush3.msra.mxu1 %v8573_v8  ;;  %6838 = vmatprep.mubr.msk.f32.mxu1 %vm7470_vm0, %v7469_v0 }
0x3463   :  { %6832 = vmatprep.subr.mxu1 %v7469_v0 }
0x3464   :  { %6833 = vmatpush3.msra.mxu1 %v8579_v21 }
0x3465   :  { %6834 = vmatprep.subr.mxu1 %v7469_v0 }
0x3466   :  { %6835 = vmatpush3.msra.mxu1 %v8583_v10 }
0x3467   :  { %6836 = vmatprep.subr.mxu1 %v7469_v0 }
0x3468   :  { %6837 = vmatpush3.msra.mxu1 %v8587_v11 }
0x3469   :  { %6852 = vmatprep.subr.mxu1 %v7469_v0 }
0x351d   :  { %v4480_v24 = vpop.f32.mrf.mxu1 }
0x351e   :  { %v4639_v39 = vrot.slane %v4480_v24, 1 }
0x351f   :  { %v6813_v50 = vpop.f32.mrf.mxu1 }
0x3521   :  { %v4553_v43 = vpop.f32.mrf.mxu1 }
0x3522   :  { %v4559_v7 = vrot.slane %v4553_v43, 7  ;;  %v4640_v45 = vsel %vm722_vm2, %v4553_v43, %v4639_v39 }
0x3523   :  { %4641 = vrot.lane.b32.xlu0 %v4640_v45, %s7475_s22  ;;  %v6818_v51 = vpop.f32.mrf.mxu1 }
0x3524   :  { %v4560_v52 = vsel %vm722_vm2, %v4559_v7, %v4480_v24  ;;  %v8694_v51 = vld [vmem:[%s8906_s10] ss:$0 sm:$0xff] }
0x3525   :  { %6828 = vmatmul.mubr.msk.f32.vlgmr.msra.gmra.mxu0 %vm223_vm1, %v4560_v52 }
0x3526   :  { %6842 = vmatpush3.msra.mxu0 %v8595_v56  ;;  %6849 = vmatprep.mubr.msk.f32.mxu0 %vm7470_vm0, %v7469_v0 }
0x3527   :  { %6843 = vmatprep.subr.mxu0 %v7469_v0 }
0x3528   :  { %6844 = vmatpush3.msra.mxu0 %v8601_v48 }
0x3529   :  { %6845 = vmatprep.subr.mxu0 %v7469_v0 }
0x352a   :  { %6846 = vmatpush3.msra.mxu0 %v8605_v29 }
0x352b   :  { %6847 = vmatprep.subr.mxu0 %v7469_v0 }
0x352c   :  { %6848 = vmatpush3.msra.mxu0 %v8609_v55 }
0x352d   :  { %6863 = vmatprep.subr.mxu0 %v7469_v0 }
0x3595   :  { %v4642_v42 = vpop.permute.xlu0 %4641 }
0x3596   :  { %6839 = vmatmul.mubr.msk.f32.vlgmr.msra.gmra.mxu1 %vm223_vm1, %v4642_v42 }
0x3597   :  { %6853 = vmatpush3.msra.mxu1 %v8614_v61  ;;  %6860 = vmatprep.mubr.msk.f32.mxu1 %vm7470_vm0, %v7469_v0 }
0x3598   :  { %6854 = vmatprep.subr.mxu1 %v7469_v0 }
0x3599   :  { %6855 = vmatpush3.msra.mxu1 %v8620_v62 }
0x359a   :  { %6856 = vmatprep.subr.mxu1 %v7469_v0 }
0x359b   :  { %6857 = vmatpush3.msra.mxu1 %v8624_v26 }
0x359c   :  { %6858 = vmatprep.subr.mxu1 %v7469_v0 }
0x359d   :  { %6859 = vmatpush3.msra.mxu1 %v8628_v41 }
0x359e   :  { %6874 = vmatprep.subr.mxu1 %v7469_v0 }
0x35e5   :  { %v4629_v53 = vpop.f32.mrf.mxu0 }
0x35e6   :  { %v4630_v13 = vadd.f32 %v4629_v53, %v8519_v27  ;;  %v8649_v27 = vld [vmem:[#allocation11] sm:$0xff] }
0x35e7   :  { %v6829_v28 = vpop.f32.mrf.mxu0 }
0x35e8   :  { %v4633_v59 = vadd.f32 %v8343_v1, %v4630_v13  ;;  %v8645_v1 = vld [vmem:[#allocation11 + $0x8] sm:$0xff] }
0x35ea   :  { %7094 = vtanh.f32 %v4633_v59 }
0x35f7   :  { %v7095_v5 = vpop.eup %7094 }
0x35f8   :  { %6850 = vmatmul.mubr.msk.f32.vlgmr.msra.gmra.mxu0 %vm223_vm1, %v7095_v5 }
0x35f9   :  { %6864 = vmatpush3.msra.mxu0 %v8635_v37  ;;  %6871 = vmatprep.mubr.msk.f32.mxu0 %vm7470_vm0, %v7469_v0 }
0x35fa   :  { %6865 = vmatprep.subr.mxu0 %v7469_v0 }
0x35fb   :  { %6866 = vmatpush3.msra.mxu0 %v8641_v38 }
0x35fc   :  { %6867 = vmatprep.subr.mxu0 %v7469_v0 }
0x35fd   :  { %6868 = vmatpush3.msra.mxu0 %v8645_v1 }
0x35fe   :  { %6869 = vmatprep.subr.mxu0 %v7469_v0 }
0x35ff   :  { %6870 = vmatpush3.msra.mxu0 %v8649_v27 }
0x3600   :  { %6884 = vmatprep.subr.mxu0 %v7469_v0 }
0x3656   :  { %v4711_v19 = vpop.f32.mrf.mxu1 }
0x3657   :  { %v4712_v57 = vadd.f32 %v8656_v20, %v4711_v19 }
0x3658   :  { %v6840_v60 = vpop.f32.mrf.mxu1 }
0x36b8   :  { %v4784_v63 = vpop.f32.mrf.mxu0 }
0x36b9   :  { %v4785_v25 = vadd.f32 %v8662_v22, %v4784_v63  ;;  %v8707_v63 = vld [vmem:[%s8909_s13] ss:$0 sm:$0xff] }
0x36ba   :  { %v6851_v23 = vpop.f32.mrf.mxu0 }
0x36bb   :  { %v4788_v17 = vadd.f32 %v4785_v25, %v4712_v57 }
0x36bd   :  { %7096 = vtanh.f32 %v4788_v17  ;;  %v6175_v33 = vmul.f32 -1.442695, %v4788_v17 }
0x36bf   :  { %7098 = vpow2.f32 %v6175_v33  ;;  %v4349_v33 = vsub.f32 1.0, %v8557_v6 }
0x36ca   :  { %v7097_v32 = vpop.eup %7096 }
0x36cb   :  { %4798 = vrot.lane.b32.xlu1 %v7097_v32, %s7471_s3 }
0x36cc   :  { %v7099_v35 = vpop.eup %7098 }
0x36cd   :  { %v4792_v44 = vadd.f32 1.0, %v7099_v35 }
0x36cf   :  { %7100 = vrcp.f32 %v4792_v44  ;;  %v8715_v44 = vmul.f32 %v4349_v33, %v8535_v46 }
0x36d1   :  { %vm5003_vm8 = vcmp.eq.f32.partialorder %v8715_v44, 0.0 }
0x36dc   :  { %v7101_v34 = vpop.eup %7100 }
0x36dd   :  { %v4796_v12 = vmul.f32 %v7101_v34, %v8498_v16 }
0x373d   :  { %v4799_v14 = vpop.permute.xlu1 %4798 }
0x373e   :  { %v4801_v40 = vmul.f32 %v7101_v34, %v4799_v14 }
0x3740   :  { %4803 = vrot.lane.b32.xlu1 %v4801_v40, %s7472_s28 }
0x37b2   :  { %v4804_v24 = vpop.permute.xlu1 %4803 }
0x37b3   :  { %v8668_v50 = vadd.f32 %v4804_v24, %v4796_v12 }
0x37b5   :  { %7102 = vtanh.f32 %v8668_v50 }
0x37c2   :  { %v7103_v39 = vpop.eup %7102 }
0x37c3   :  { %4809 = vrot.lane.b32.xlu1 %v7103_v39, %s7471_s3 }
0x3835   :  { %v4810_v43 = vpop.permute.xlu1 %4809 }
0x3836   :  { %v4812_v7 = vmul.f32 %v7101_v34, %v4810_v43 }
0x3838   :  { %4814 = vrot.lane.b32.xlu0 %v4812_v7, %s7472_s28 }
0x38aa   :  { %v4815_v45 = vpop.permute.xlu0 %4814 }
0x38ab   :  { %6861 = vmatmul.mubr.msk.f32.vlgmr.msra.gmra.mxu1 %vm223_vm1, %v4815_v45  ;;  %6872 = vmatmul.mubr.msk.f32.vlgmr.msra.gmra.mxu0 %vm223_vm1, %v4815_v45 }
0x38ac   :  { %6875 = vmatpush3.msra.mxu1 %v7817_v3  ;;  %6876 = vmatprep.mubr.msk.f32.mxu1 %vm7470_vm0, %v7469_v0 }
0x38ad   :  { %6879 = vmatprep.subr.mxu1 %v7469_v0  ;;  %6885 = vmatpush3.msra.mxu0 %v8373_v15 }
0x38ae   :  { %6886 = vmatprep.subr.mxu0 %v7469_v0  ;;  %6892 = vmatprep.mubr.msk.f32.mxu0 %vm7470_vm0, %v7469_v0 }
0x38af   :  { %6887 = vmatpush3.msra.mxu0 %v8379_v47 }
0x38b0   :  { %6888 = vmatprep.subr.mxu0 %v7469_v0 }
0x38b1   :  { %6889 = vmatpush3.msra.mxu0 %v8383_v54 }
0x38b2   :  { %6890 = vmatprep.subr.mxu0 %v7469_v0 }
0x38b3   :  { %6891 = vmatpush3.msra.mxu0 %v8387_v49 }
0x38b4   :  { %6906 = vmatprep.subr.mxu0 %v7469_v0 }
0x396b   :  { %v8689_v16 = vpop.f32.mrf.mxu1  ;;  %v4954_v15 = vpop.f32.mrf.mxu0 }
0x396c   :  { %v4955_v47 = vadd.f32 %v8694_v51, %v4954_v15 }
0x396d   :  { %v6862_v52 = vpop.f32.mrf.mxu1  ;;  %v6873_v42 = vpop.f32.mrf.mxu0 }
0x396e   :  { %v4965_v54 = vrot.slane %v4955_v47, %v7755_v58 }
0x3970   :  { %v4966_v53 = vcombine.high %v4965_v54, %v4965_v54  ;;  %v4973_v13 = vrot.slane %v4965_v54, %v7755_v58 }
0x3972   :  { %v4980_v49 = vrot.slane %v4966_v53, %v7755_v58  ;;  %v4984_v28 = vrot.slane %v4973_v13, %v7761_v2 }
0x3974   :  { %v4988_v59 = vrot.slane %v4980_v49, %v7761_v2  ;;  %v4991_v5 = vadd.f32 %v4984_v28, %v7768_v9 }
0x3976   :  { %v4992_v19 = vadd.f32 %v4988_v59, %v7773_v18  ;;  %7104 = vtanh.f32 %v4991_v5 }
0x3978   :  { %7106 = vtanh.f32 %v4992_v19 }
0x3983   :  { %v7105_v60 = vpop.eup %7104 }
0x3984   :  { %v4995_v57 = vmul.f32 %v8707_v63, %v7105_v60 }
0x3985   :  { %v7107_v25 = vpop.eup %7106 }
0x3986   :  { %v4997_v23 = vsel %vm223_vm1, %v4995_v57, 0.0  ;;  %v4996_v17 = vmul.f32 %v8707_v63, %v7107_v25 }
0x3987   :  { %4998 = vadd.xlane.f32.xlu1 %v4997_v23 }
0x3988   :  { %v5000_v32 = vsel %vm223_vm1, %v4996_v17, 0.0 }
0x3989   :  { %5001 = vadd.xlane.f32.xlu0 %v5000_v32 }
0x3a10   :  { %v4999_v35 = vpop.xlane.xlu1 %4998 }
0x3a11   :  { %v5009_v14 = vrot.slane %v4999_v35, %v7790_v31 }
0x3a12   :  { %v5002_v34 = vpop.xlane.xlu0 %5001 }
0x3a13   :  { %v5013_v40 = vrot.slane %v5002_v34, %v7790_v31 }
0x3a15   :  { %v5014_v12 = vsel %vm722_vm2, %v5013_v40, %v5009_v14 }
0x3a16   :  { %v5016_v24 = vsel %vm5003_vm8, -inf, %v5014_v12 }
0x3a17   :  { %v5017_v39 = vsel %vm725_vm3, %v5016_v24, -inf }
0x3a18   :  { %5018 = vmax.xlane.f32.xlu0 %v5017_v39 }
0x3aa1   :  { %v5019_v43 = vpop.xlane.xlu0 %5018 }
0x3aa2   :  { %v5020_v7 = vsub.f32 %v5016_v24, %v5019_v43 }
0x3aa4   :  { %v5021_v6 = vmul.f32 1.442695, %v5020_v7 }
0x3aa6   :  { %7108 = vpow2.f32 %v5021_v6 }
0x3ab3   :  { %v7109_v45 = vpop.eup %7108 }
0x3ab4   :  { %v5023_v46 = vsel %vm725_vm3, %v7109_v45, 0.0 }
0x3ab5   :  { %5024 = vadd.xlane.f32.xlu0 %v5023_v46 }
0x3b3e   :  { %v5025_v15 = vpop.xlane.xlu0 %5024 }
0x3b3f   :  { %7110 = vrcp.f32 %v5025_v15 }
0x3b4c   :  { %v7111_v47 = vpop.eup %7110 }
0x3b4d   :  { %v5027_v52 = vmul.f32 %v7111_v47, %v7109_v45 }
0x3b4f   :  { %v5028_v42 = vsel %vm725_vm3, %v5027_v52, -inf  ;;  %v5060_v54 = vrot.slane %v5027_v52, %v7755_v58 }
0x3b50   :  { %5029 = vmax.xlane.f32.xlu1 %v5028_v42 }
0x3b51   :  { %v5061_v53 = vcombine.high %v5060_v54, %v5060_v54  ;;  %v5068_v13 = vrot.slane %v5060_v54, %v7755_v58 }
0x3b53   :  { %5337 = vst.msk [vmem:[#allocation17 + $0x6] sm:$0x1] %vm1124_vm4, %v5068_v13  ;;  %v5075_v49 = vrot.slane %v5061_v53, %v7755_v58 }
0x3b55   :  { %5338 = vst.msk [vmem:[#allocation17 + $0xe] sm:$0x1] %vm1124_vm4, %v5075_v49 }
0x3bd9   :  { %v5030_v28 = vpop.xlane.xlu1 %5029 }
0x3bda   :  { %vm5031_vm11 = vcmp.eq.f32.partialorder %v5027_v52, %v5030_v28 }
0x3bdb   :  { %v5032_v59 = vsel %vm5031_vm11, %v7787_v30, 8 }
0x3bdc   :  { %v5033_v5 = vsel %vm725_vm3, %v5032_v59, 2147483647 }
0x3bdd   :  { %v5035_v19 = vshra.s32 %v5033_v5, 16  ;;  %v5034_v57 = vand.u32 65535, %v5033_v5 }
0x3bdf   :  { %v5037_v60 = vcvt.s32.f32 %v5035_v19  ;;  %v5036_v23 = vcvt.s32.f32 %v5034_v57 }
0x3be1   :  { %5038 = vmin.xlane.f32.xlu0 %v5037_v60 }
0x3c6a   :  { %v5039_v25 = vpop.xlane.xlu0 %5038 }
0x3c6b   :  { %vm5040_vm12 = vcmp.eq.f32.partialorder %v5037_v60, %v5039_v25  ;;  %v5045_v32 = vcvt.f32.s32 %v5039_v25 }
0x3c6c   :  { %v5041_v17 = vsel %vm5040_vm12, %v5036_v23, inf }
0x3c6d   :  { %5042 = vmin.xlane.f32.xlu1 %v5041_v17  ;;  %v5046_v35 = vshll.u32 %v5045_v32, 16  ;;  %v7179_v32 = vld [vmem:[#allocation14 + $0x10] sm:$0xff] }
0x3cf6   :  { %v5043_v33 = vpop.xlane.xlu1 %5042 }
0x3cf7   :  { %v5044_v34 = vcvt.f32.s32 %v5043_v33  ;;  %v7180_v33 = vld [vmem:[#allocation14 + $0x8] sm:$0xff] }
0x3cf9   :  { %v5047_v14 = vadd.s32 %v5046_v35, %v5044_v34 }
0x3cfb   :  { %vm5048_vm14 = vcmp.eq.s32.totalorder %v7787_v30, %v5047_v14  ;;  %v8734_v40 = vsel %vm5339_vm13, %v5047_v14, %v8554_v4 }
0x3cfc   :  { %v8737_v12 = vsel %vm5048_vm14, 1.0, %v7469_v0 }
0x3cfd   :  { %v5085_v24 = vrot.slane %v8737_v12, %v7755_v58 }
0x3cff   :  { %v5086_v39 = vcombine.high %v5085_v24, %v5085_v24  ;;  %v5093_v43 = vrot.slane %v5085_v24, %v7755_v58 }
0x3d01   :  { %v5100_v7 = vrot.slane %v5086_v39, %v7755_v58  ;;  %v5104_v6 = vrot.slane %v5093_v43, %v7761_v2 }
0x3d03   :  { %v5111_v45 = vsel %vm890_vm9, %v5068_v13, %v5104_v6  ;;  %v5108_v46 = vrot.slane %v5100_v7, %v7761_v2 }
0x3d04   :  { %6877 = vmatmul.mubr.msk.f32.vlgmr.msra.gmra.mxu1 %vm893_vm10, %v5111_v45 }
0x3d05   :  { %6880 = vmatpush3.msra.mxu1 %v7838_v36  ;;  %6881 = vmatprep.mubr.msk.f32.mxu1 %vm7470_vm0, %v7469_v0  ;;  %v5112_v4 = vsel %vm890_vm9, %v5075_v49, %v5108_v46 }
0x3d06   :  { %6895 = vmatprep.subr.mxu1 %v7469_v0 }
0x3d08   :  { %6882 = vmatmul.mubr.msk.f32.vlgmr.msra.gmra.mxu1 %vm893_vm10, %v5112_v4 }
0x3d09   :  { %6896 = vmatpush3.msra.mxu1 %v8573_v8  ;;  %6903 = vmatprep.mubr.msk.f32.mxu1 %vm7470_vm0, %v7469_v0 }
0x3d0a   :  { %6897 = vmatprep.subr.mxu1 %v7469_v0 }
0x3d0b   :  { %6898 = vmatpush3.msra.mxu1 %v8579_v21 }
0x3d0c   :  { %6899 = vmatprep.subr.mxu1 %v7469_v0 }
0x3d0d   :  { %6900 = vmatpush3.msra.mxu1 %v8583_v10 }
0x3d0e   :  { %6901 = vmatprep.subr.mxu1 %v7469_v0 }
0x3d0f   :  { %6902 = vmatpush3.msra.mxu1 %v8587_v11 }
0x3d10   :  { %6917 = vmatprep.subr.mxu1 %v7469_v0 }
0x3dc4   :  { %v5182_v15 = vpop.f32.mrf.mxu1 }
0x3dc5   :  { %v5341_v8 = vrot.slane %v5182_v15, 1 }
0x3dc6   :  { %v6878_v47 = vpop.f32.mrf.mxu1 }
0x3dc8   :  { %v5255_v52 = vpop.f32.mrf.mxu1 }
0x3dc9   :  { %v5261_v42 = vrot.slane %v5255_v52, 7  ;;  %v5342_v54 = vsel %vm722_vm2, %v5255_v52, %v5341_v8 }
0x3dca   :  { %5343 = vrot.lane.b32.xlu0 %v5342_v54, %s7475_s22  ;;  %v6883_v21 = vpop.f32.mrf.mxu1 }
0x3dcb   :  { %v5262_v53 = vsel %vm722_vm2, %v5261_v42, %v5182_v15 }
0x3dcc   :  { %6893 = vmatmul.mubr.msk.f32.vlgmr.msra.gmra.mxu0 %vm223_vm1, %v5262_v53  ;;  %v5051_v53 = vsub.f32 1.0, %v8737_v12 }
0x3dcd   :  { %6907 = vmatpush3.msra.mxu0 %v8595_v56  ;;  %6914 = vmatprep.mubr.msk.f32.mxu0 %vm7470_vm0, %v7469_v0 }
0x3dce   :  { %6908 = vmatprep.subr.mxu0 %v7469_v0 }
0x3dcf   :  { %6909 = vmatpush3.msra.mxu0 %v8601_v48 }
0x3dd0   :  { %6910 = vmatprep.subr.mxu0 %v7469_v0 }
0x3dd1   :  { %6911 = vmatpush3.msra.mxu0 %v8605_v29  ;;  %v8792_v29 = vld [vmem:[%s8912_s16] ss:$0 sm:$0xff]  ;;  %s7476_s16 = smov [#allocation18]  }
0x3dd2   :  { %6912 = vmatprep.subr.mxu0 %v7469_v0 }
0x3dd3   :  { %6913 = vmatpush3.msra.mxu0 %v8609_v55 }
0x3dd4   :  { %6928 = vmatprep.subr.mxu0 %v7469_v0 }
0x3e3c   :  { %v5344_v10 = vpop.permute.xlu0 %5343 }
0x3e3d   :  { %6904 = vmatmul.mubr.msk.f32.vlgmr.msra.gmra.mxu1 %vm223_vm1, %v5344_v10 }
0x3e3e   :  { %6918 = vmatpush3.msra.mxu1 %v8614_v61  ;;  %6925 = vmatprep.mubr.msk.f32.mxu1 %vm7470_vm0, %v7469_v0 }
0x3e3f   :  { %6919 = vmatprep.subr.mxu1 %v7469_v0 }
0x3e40   :  { %6920 = vmatpush3.msra.mxu1 %v8620_v62 }
0x3e41   :  { %6921 = vmatprep.subr.mxu1 %v7469_v0 }
0x3e42   :  { %6922 = vmatpush3.msra.mxu1 %v8624_v26 }
0x3e43   :  { %6923 = vmatprep.subr.mxu1 %v7469_v0 }
0x3e44   :  { %6924 = vmatpush3.msra.mxu1 %v8628_v41 }
0x3e45   :  { %6939 = vmatprep.subr.mxu1 %v7469_v0 }
0x3e8c   :  { %v5331_v11 = vpop.f32.mrf.mxu0 }
0x3e8d   :  { %v5332_v56 = vadd.f32 %v5331_v11, %v8689_v16 }
0x3e8e   :  { %v6894_v48 = vpop.f32.mrf.mxu0 }
0x3e8f   :  { %v5335_v55 = vadd.f32 %v8792_v29, %v5332_v56 }
0x3e91   :  { %7112 = vtanh.f32 %v5335_v55 }
0x3e9e   :  { %v7113_v61 = vpop.eup %7112 }
0x3e9f   :  { %6915 = vmatmul.mubr.msk.f32.vlgmr.msra.gmra.mxu0 %vm223_vm1, %v7113_v61 }
0x3ea0   :  { %6929 = vmatpush3.msra.mxu0 %v8635_v37  ;;  %6936 = vmatprep.mubr.msk.f32.mxu0 %vm7470_vm0, %v7469_v0 }
0x3ea1   :  { %6930 = vmatprep.subr.mxu0 %v7469_v0 }
0x3ea2   :  { %6931 = vmatpush3.msra.mxu0 %v8641_v38 }
0x3ea3   :  { %6932 = vmatprep.subr.mxu0 %v7469_v0 }
0x3ea4   :  { %6933 = vmatpush3.msra.mxu0 %v8645_v1 }
0x3ea5   :  { %6934 = vmatprep.subr.mxu0 %v7469_v0 }
0x3ea6   :  { %6935 = vmatpush3.msra.mxu0 %v8649_v27 }
0x3ea7   :  { %6949 = vmatprep.subr.mxu0 %v7469_v0 }
0x3efd   :  { %v5413_v62 = vpop.f32.mrf.mxu1 }
0x3efe   :  { %v5414_v37 = vadd.f32 %v8656_v20, %v5413_v62 }
0x3eff   :  { %v6905_v26 = vpop.f32.mrf.mxu1 }
0x3f5f   :  { %v5486_v41 = vpop.f32.mrf.mxu0 }
0x3f60   :  { %v5487_v16 = vadd.f32 %v8662_v22, %v5486_v41 }
0x3f61   :  { %v6916_v13 = vpop.f32.mrf.mxu0 }
0x3f62   :  { %v5490_v49 = vadd.f32 %v5487_v16, %v5414_v37 }
0x3f64   :  { %7114 = vtanh.f32 %v5490_v49  ;;  %v6184_v1 = vmul.f32 -1.442695, %v5490_v49 }
0x3f66   :  { %7116 = vpow2.f32 %v6184_v1 }
0x3f71   :  { %v7115_v38 = vpop.eup %7114 }
0x3f72   :  { %5500 = vrot.lane.b32.xlu1 %v7115_v38, %s7471_s3 }
0x3f73   :  { %v7117_v28 = vpop.eup %7116 }
0x3f74   :  { %v5494_v59 = vadd.f32 1.0, %v7117_v28 }
0x3f76   :  { %7118 = vrcp.f32 %v5494_v59 }
0x3f83   :  { %v7119_v27 = vpop.eup %7118 }
0x3f84   :  { %v5498_v20 = vmul.f32 %v7119_v27, %v8668_v50  ;;  %v7178_v50 = vld [vmem:[#allocation14 + $0x18] sm:$0xff] }
0x3fe4   :  { %v5501_v5 = vpop.permute.xlu1 %5500 }
0x3fe5   :  { %v5503_v19 = vmul.f32 %v7119_v27, %v5501_v5 }
0x3fe7   :  { %5505 = vrot.lane.b32.xlu1 %v5503_v19, %s7472_s28 }
0x4059   :  { %v5506_v60 = vpop.permute.xlu1 %5505 }
0x405a   :  { %v8811_v22 = vadd.f32 %v5506_v60, %v5498_v20 }
0x405c   :  { %7120 = vtanh.f32 %v8811_v22 }
0x4069   :  { %v7121_v57 = vpop.eup %7120 }
0x406a   :  { %5511 = vrot.lane.b32.xlu1 %v7121_v57, %s7471_s3  ;;  %s6067_s3 = sshll.u32 %s7476_s16, 4  ;;  %s6068_s3 = int_to_ptr.vmem [resolvable:$true] %s6067_s3 }
0x406b   :  { %s7362_s11 = scalar_lea.vmem %s6068_s3, 32  ;;  %p7367_p4 = scmp.lt.s32.totalorder %s6068_s3, %s6068_s3 }
0x406c   :  { %p7363_p3 = scmp.ne.s32.totalorder %s6068_s3, %s7362_s11  ;;  %p7368_p5 = scmp.lt.s32.totalorder %s7362_s11, %s7362_s11 }
0x406e   :  { %p7369_p6 = por %p7368_p5, %p7367_p4 }
0x4070   :  { %p7370_p7 = pnand %p7369_p6, %p7363_p3 }
0x40dc   :  { %v5512_v25 = vpop.permute.xlu1 %5511 }
0x40dd   :  { %v5514_v23 = vmul.f32 %v7119_v27, %v5512_v25 }
0x40df   :  { %5516 = vrot.lane.b32.xlu0 %v5514_v23, %s7472_s28  ;;  %s7477_s28 = smov [#allocation17]  }
0x4151   :  { %v5517_v17 = vpop.permute.xlu0 %5516 }
0x4152   :  { %6926 = vmatmul.mubr.msk.f32.vlgmr.msra.gmra.mxu1 %vm223_vm1, %v5517_v17  ;;  %6937 = vmatmul.mubr.msk.f32.vlgmr.msra.gmra.mxu0 %vm223_vm1, %v5517_v17 }
0x4153   :  { %6940 = vmatpush3.msra.mxu1 %v7817_v3  ;;  %6941 = vmatprep.mubr.msk.f32.mxu1 %vm7470_vm0, %v7469_v0  ;;  %v7181_v3 = vld [vmem:[#allocation14] sm:$0xff] }
0x4154   :  { %6944 = vmatprep.subr.mxu1 %v7469_v0  ;;  %6950 = vmatpush3.msra.mxu0 %v7178_v50 }
0x4155   :  { %6951 = vmatprep.subr.mxu0 %v7469_v0  ;;  %6957 = vmatprep.mubr.msk.f32.mxu0 %vm7470_vm0, %v7469_v0 }
0x4156   :  { %6952 = vmatpush3.msra.mxu0 %v7179_v32 }
0x4157   :  { %6953 = vmatprep.subr.mxu0 %v7469_v0 }
0x4158   :  { %6954 = vmatpush3.msra.mxu0 %v7180_v33 }
0x4159   :  { %6955 = vmatprep.subr.mxu0 %v7469_v0 }
0x415a   :  { %6956 = vmatpush3.msra.mxu0 %v7181_v3 }
0x4212   :  { %v8827_v35 = vpop.f32.mrf.mxu1  ;;  %v5656_v34 = vpop.f32.mrf.mxu0 }
0x4213   :  { %v5657_v14 = vadd.f32 %v8694_v51, %v5656_v34 }
0x4214   :  { %v6927_v24 = vpop.f32.mrf.mxu1  ;;  %v6938_v39 = vpop.f32.mrf.mxu0 }
0x4215   :  { %v5667_v43 = vrot.slane %v5657_v14, %v7755_v58 }
0x4217   :  { %v5668_v7 = vcombine.high %v5667_v43, %v5667_v43  ;;  %v5675_v6 = vrot.slane %v5667_v43, %v7755_v58 }
0x4219   :  { %v5682_v45 = vrot.slane %v5668_v7, %v7755_v58  ;;  %v5686_v46 = vrot.slane %v5675_v6, %v7761_v2 }
0x421b   :  { %v5690_v4 = vrot.slane %v5682_v45, %v7761_v2  ;;  %v5693_v15 = vadd.f32 %v5686_v46, %v7768_v9  ;;  %v5052_v9 = vmul.f32 %v5051_v53, %v8715_v44 }
0x421d   :  { %v5694_v47 = vadd.f32 %v5690_v4, %v7773_v18  ;;  %7122 = vtanh.f32 %v5693_v15  ;;  %vm5705_vm15 = vcmp.eq.f32.partialorder %v5052_v9, 0.0 }
0x421f   :  { %7124 = vtanh.f32 %v5694_v47 }
0x422a   :  { %v7123_v51 = vpop.eup %7122 }
0x422b   :  { %v5697_v8 = vmul.f32 %v8707_v63, %v7123_v51 }
0x422c   :  { %v7125_v52 = vpop.eup %7124 }
0x422d   :  { %v5699_v42 = vsel %vm223_vm1, %v5697_v8, 0.0  ;;  %v5698_v54 = vmul.f32 %v8707_v63, %v7125_v52 }
0x422e   :  { %5700 = vadd.xlane.f32.xlu1 %v5699_v42 }
0x422f   :  { %v5702_v21 = vsel %vm223_vm1, %v5698_v54, 0.0 }
0x4230   :  { %5703 = vadd.xlane.f32.xlu0 %v5702_v21 }
0x42b7   :  { %v5701_v10 = vpop.xlane.xlu1 %5700 }
0x42b8   :  { %v5711_v11 = vrot.slane %v5701_v10, %v7790_v31 }
0x42b9   :  { %v5704_v18 = vpop.xlane.xlu0 %5703 }
0x42ba   :  { %v5715_v56 = vrot.slane %v5704_v18, %v7790_v31 }
0x42bc   :  { %v5716_v48 = vsel %vm722_vm2, %v5715_v56, %v5711_v11 }
0x42bd   :  { %v5718_v55 = vsel %vm5705_vm15, -inf, %v5716_v48 }
0x42be   :  { %v5719_v63 = vsel %vm725_vm3, %v5718_v55, -inf }
0x42bf   :  { %5720 = vmax.xlane.f32.xlu0 %v5719_v63 }
0x4348   :  { %v5721_v61 = vpop.xlane.xlu0 %5720 }
0x4349   :  { %v5722_v62 = vsub.f32 %v5718_v55, %v5721_v61 }
0x434b   :  { %v5723_v26 = vmul.f32 1.442695, %v5722_v62 }
0x434d   :  { %7126 = vpow2.f32 %v5723_v26 }
0x435a   :  { %v7127_v12 = vpop.eup %7126 }
0x435b   :  { %v5725_v41 = vsel %vm725_vm3, %v7127_v12, 0.0 }
0x435c   :  { %5726 = vadd.xlane.f32.xlu0 %v5725_v41 }
0x43e5   :  { %v5727_v44 = vpop.xlane.xlu0 %5726 }
0x43e6   :  { %7128 = vrcp.f32 %v5727_v44 }
0x43f3   :  { %v7129_v37 = vpop.eup %7128 }
0x43f4   :  { %v5729_v16 = vmul.f32 %v7129_v37, %v7127_v12 }
0x43f6   :  { %v5730_v31 = vsel %vm725_vm3, %v5729_v16, -inf  ;;  %v5760_v13 = vrot.slane %v5729_v16, %v7755_v58 }
0x43f7   :  { %5731 = vmax.xlane.f32.xlu1 %v5730_v31 }
0x43f8   :  { %v5761_v49 = vcombine.high %v5760_v13, %v5760_v13  ;;  %v5768_v38 = vrot.slane %v5760_v13, %v7755_v58 }
0x43fa   :  { %6037 = vst.msk [vmem:[#allocation17 + $0x7] sm:$0x1] %vm1124_vm4, %v5768_v38  ;;  %v5775_v1 = vrot.slane %v5761_v49, %v7755_v58 }
0x43fc   :  { %6038 = vst.msk [vmem:[#allocation17 + $0xf] sm:$0x1] %vm1124_vm4, %v5775_v1  ;;  %vm6039_vm4 = vcmp.eq.s32.totalorder %v7787_v30, 7 }
0x4480   :  { %v5732_v28 = vpop.xlane.xlu1 %5731 }
0x4481   :  { %vm5733_vm5 = vcmp.eq.f32.partialorder %v5729_v16, %v5732_v28 }
0x4482   :  { %v5734_v59 = vsel %vm5733_vm5, %v7787_v30, 8 }
0x4483   :  { %v5735_v27 = vsel %vm725_vm3, %v5734_v59, 2147483647 }
0x4484   :  { %v5737_v5 = vshra.s32 %v5735_v27, 16  ;;  %v5736_v20 = vand.u32 65535, %v5735_v27 }
0x4486   :  { %v5739_v19 = vcvt.s32.f32 %v5737_v5  ;;  %v5738_v57 = vcvt.s32.f32 %v5736_v20 }
0x4488   :  { %5740 = vmin.xlane.f32.xlu0 %v5739_v19 }
0x449e   :  { %6045 = vrot.lane.b32.xlu0 %v8811_v22, %s7475_s22  ;;  %s6054_s22 = sshll.u32 %s7477_s28, 4  ;;  %s6055_s22 = int_to_ptr.vmem [resolvable:$true] %s6054_s22 }
0x4511   :  { %v5741_v60 = vpop.xlane.xlu0 %5740 }
0x4512   :  { %vm5742_vm6 = vcmp.eq.f32.partialorder %v5739_v19, %v5741_v60  ;;  %v5747_v17 = vcvt.f32.s32 %v5741_v60 }
0x4513   :  { %v5743_v25 = vsel %vm5742_vm6, %v5738_v57, inf }
0x4514   :  { %5744 = vmin.xlane.f32.xlu1 %v5743_v25  ;;  %v5748_v32 = vshll.u32 %v5747_v17, 16 }
0x4515   :  { %v6046_v23 = vpop.permute.xlu0 %6045 }
0x4516   :  { %6048 = vst.msk [vmem:[#allocation21] sm:$0x3] %vm6042_vm7, %v6046_v23 }
0x459d   :  { %v5745_v50 = vpop.xlane.xlu1 %5744 }
0x459e   :  { %v5746_v33 = vcvt.f32.s32 %v5745_v50 }
0x45a0   :  { %v5749_v3 = vadd.s32 %v5748_v32, %v5746_v33 }
0x45a2   :  { %vm5750_vm8 = vcmp.eq.s32.totalorder %v7787_v30, %v5749_v3  ;;  %v6040_v22 = vsel %vm6039_vm4, %v5749_v3, %v8734_v40 }
0x45a3   :  { %v6187_v34 = vsel %vm5750_vm8, 1.0, %v7469_v0  ;;  %6041 = vst.msk [vmem:[#allocation18] sm:$0x3] %vm725_vm3, %v6040_v22 }
0x45a4   :  { %v5785_v14 = vrot.slane %v6187_v34, %v7755_v58 }
0x45a6   :  { %v5786_v24 = vcombine.high %v5785_v14, %v5785_v14  ;;  %v5793_v39 = vrot.slane %v5785_v14, %v7755_v58 }
0x45a8   :  { %v5800_v43 = vrot.slane %v5786_v24, %v7755_v58  ;;  %v5804_v7 = vrot.slane %v5793_v39, %v7761_v2 }
0x45aa   :  { %v5811_v6 = vsel %vm890_vm9, %v5768_v38, %v5804_v7  ;;  %v5808_v45 = vrot.slane %v5800_v43, %v7761_v2 }
0x45ab   :  { %6942 = vmatmul.mubr.msk.f32.vlgmr.msra.gmra.mxu1 %vm893_vm10, %v5811_v6 }
0x45ac   :  { %6945 = vmatpush3.msra.mxu1 %v7838_v36  ;;  %6946 = vmatprep.mubr.msk.f32.mxu1 %vm7470_vm0, %v7469_v0  ;;  %v5812_v30 = vsel %vm890_vm9, %v5775_v1, %v5808_v45 }
0x45af   :  { %6947 = vmatmul.mubr.msk.f32.vlgmr.msra.gmra.mxu1 %vm893_vm10, %v5812_v30 }
0x466b   :  { %v5882_v40 = vpop.f32.mrf.mxu1 }
0x466d   :  { %v6943_v46 = vpop.f32.mrf.mxu1 }
0x466f   :  { %v5955_v58 = vpop.f32.mrf.mxu1 }
0x4670   :  { %v5961_v4 = vrot.slane %v5955_v58, 7 }
0x4671   :  { %v6948_v15 = vpop.f32.mrf.mxu1 }
0x4672   :  { %v5962_v47 = vsel %vm722_vm2, %v5961_v4, %v5882_v40 }
0x4673   :  { %6958 = vmatmul.mubr.msk.f32.vlgmr.msra.gmra.mxu0 %vm223_vm1, %v5962_v47 }
0x4674   :  { %7373 = shalt.err (!%p7370_p7)
}
0x4675   :  { %6070 = dma.vmem_to_hbm [thread:$0]  %s6068_s3, 32, %s8914_s18, [#allocation19]  }
0x4676   :  { %s7382_s24 = scalar_lea.vmem %s6055_s22, 256  ;;  %p7387_p9 = scmp.lt.s32.totalorder %s6055_s22, %s6055_s22 }
0x4677   :  { %p7383_p8 = scmp.ne.s32.totalorder %s6055_s22, %s7382_s24  ;;  %p7388_p10 = scmp.lt.s32.totalorder %s7382_s24, %s7382_s24 }
0x4679   :  { %p7389_p11 = por %p7388_p10, %p7387_p9 }
0x467b   :  { %p7390_p12 = pnand %p7389_p11, %p7383_p8 }
0x467d   :  { %7393 = shalt.err (!%p7390_p12)
}
0x467e   :  { %6060 = dma.vmem_to_hbm [thread:$0]  %s6055_s22, 256, %s8913_s17, [#allocation4], %s7461_s29, %s7461_s29, %s7462_s30  }
0x467f   :  { %s7478_s5 = smov [#allocation21]  }
0x4680   :  { %s6087_s26 = sshll.u32 %s7478_s5, 4  ;;  %s6088_s26 = int_to_ptr.vmem [resolvable:$true] %s6087_s26 }
0x4681   :  { %s7402_s27 = scalar_lea.vmem %s6088_s26, 32  ;;  %p7407_p0 = scmp.lt.s32.totalorder %s6088_s26, %s6088_s26 }
0x4682   :  { %p7403_p13 = scmp.ne.s32.totalorder %s6088_s26, %s7402_s27  ;;  %p7408_p1 = scmp.lt.s32.totalorder %s7402_s27, %s7402_s27 }
0x4684   :  { %p7409_p2 = por %p7408_p1, %p7407_p0 }
0x4686   :  { %p7410_p3 = pnand %p7409_p2, %p7403_p13 }
0x4688   :  { %7413 = shalt.err (!%p7410_p3)
}
0x4689   :  { %6090 = dma.vmem_to_hbm [thread:$0]  %s6088_s26, 32, %s8916_s20, [#allocation22]  }
0x468a   :  { %s7479_s17 = smov [#allocation20]  }
0x468b   :  { %s6077_s29 = sshll.u32 %s7479_s17, 4  ;;  %s6078_s29 = int_to_ptr.vmem [resolvable:$true] %s6077_s29 }
0x468c   :  { %s7422_s30 = scalar_lea.vmem %s6078_s29, 32  ;;  %p7427_p5 = scmp.lt.s32.totalorder %s6078_s29, %s6078_s29 }
0x468d   :  { %p7423_p4 = scmp.ne.s32.totalorder %s6078_s29, %s7422_s30  ;;  %p7428_p6 = scmp.lt.s32.totalorder %s7422_s30, %s7422_s30 }
0x468f   :  { %p7429_p7 = por %p7428_p6, %p7427_p5 }
0x4691   :  { %p7430_p8 = pnand %p7429_p7, %p7423_p4 }
0x4733   :  { %v6031_v0 = vpop.f32.mrf.mxu0 }
0x4734   :  { %v6032_v2 = vadd.f32 %v6031_v0, %v8827_v35 }
0x4735   :  { %v6959_v36 = vpop.f32.mrf.mxu0 }
0x4736   :  { %v6035_v51 = vadd.f32 %v8792_v29, %v6032_v2 }
0x4738   :  { %7130 = vtanh.f32 %v6035_v51 }
0x4745   :  { %v7131_v8 = vpop.eup %7130 }
0x4746   :  { %6043 = vst.msk [vmem:[#allocation20] sm:$0x3] %vm6042_vm7, %v7131_v8 }
0x4747   :  { %7433 = shalt.err (!%p7430_p8)
}
0x4748   :  { %6080 = dma.vmem_to_hbm [thread:$0]  %s6078_s29, 32, %s8915_s19, [#allocation19]  }
0x4749   :  { %7452 = dma.done.wait [#allocation4], 256  }
0x474a   :  { %7453 = vsyncadd [#allocation4], 4294967040 }
0x474b   :  { %7454 = dma.done.wait [#allocation19], 64  }
0x474c   :  { %7455 = vsyncadd [#allocation19], 4294967232 }
0x474d   :  { %7456 = dma.done.wait [#allocation22], 32  }
0x474e   :  { %7457 = vsyncadd [#allocation22], 4294967264 }
0x474f   :  { %6103 = vsyncpa [#allocation3], 1 }
0x4750   :  { %6104 = vsyncpa [#allocation6], 1 }
0x4751   :  { %6105 = vsyncpa [#allocation9], 1 }
0x4752   :  { %6106 = vsyncpa [#allocation12], 1 }
0x4753   :  { %6107 = vsyncpa [#allocation15], 1 }
0x4754   :  { %6108 = vsyncpa [#allocation4], 1 }
0x4755   :  { %6109 = vsyncpa [#allocation19], 1 }
0x4756   :  { %6110 = vsyncpa [#allocation22], 1 }

</bundles_post_ra>
